<compile_context>
chip_gen: v6e
topology: v6e:2x2x1
jax: 0.10.0
libtpu: 0.0.40
codegen_flags: <defaults>
</compile_context>

<pallas_src>
import functools

import jax
import jax.numpy as jnp
from jax import lax
from jax.experimental import pallas as pl
from jax.experimental.pallas import tpu as pltpu


_LANE_CHUNK = 256   # column chunk for the H-upsample writeback (vreg pressure)
_ROW_CHUNK = 32     # row chunk for the final conv (bounds the fused-K LHS)


# --------------------------------------------------------------------------
# Fused whole-decoder kernel (one grid step = one batch image)
# --------------------------------------------------------------------------
def _decoder_kernel(*refs, num_layers):
    # refs = [x_ref,
    #         (B_l, bias_row_l, AhP_l, AwC_l) * num_layers,
    #         B_final, bias_row_final,
    #         o_ref,
    #         xbuf_1 .. xbuf_num_layers]
    n_prm = 4 * num_layers + 2
    x_ref = refs[0]
    prm = refs[1:1 + n_prm]
    o_ref = refs[1 + n_prm]
    bufs = refs[2 + n_prm:]

    def conv3x3_rows(src_ref, b_ref, r0, rows):
        # src_ref: (H+2, W*Cin) H-zero-padded bf16 activation (VMEM resident)
        # b_ref  : (3*W*Cin, W*Cout) ky-stacked banded conv weights
        #          (bf16, BN scale folded)
        # Single wide-K dot (K = 3*W*Cin) instead of 3 K=W*Cin dots.
        lhs = jnp.concatenate(
            [src_ref[r0:r0 + rows, :],
             src_ref[r0 + 1:r0 + 1 + rows, :],
             src_ref[r0 + 2:r0 + 2 + rows, :]], axis=1)
        return jnp.dot(lhs, b_ref[...], preferred_element_type=jnp.float32)

    src = x_ref
    for l in range(num_layers):                              # static unroll
        b_ref, brow_ref, ahp_ref, awc_ref = prm[4 * l:4 * l + 4]
        h = src.shape[0] - 2
        # Conv3x3 + folded BatchNorm + ReLU (f32 accumulation).
        y = jnp.maximum(conv3x3_rows(src, b_ref, 0, h) + brow_ref[...], 0.0)
        # Bilinear x2 upsample: W direction as a matmul ...
        t = jnp.dot(y.astype(jnp.bfloat16), awc_ref[...],
                    preferred_element_type=jnp.float32)      # (H, 2W*C) f32
        t = t.astype(jnp.bfloat16)
        # ... then H direction (fused with the zero H-pad rows for the next
        # conv), column-chunked so the f32 result stays ~<=16 live vregs.
        ahp = ahp_ref[...]
        n_out = t.shape[1]
        if n_out <= _LANE_CHUNK:
            bufs[l][...] = jnp.dot(
                ahp, t, preferred_element_type=jnp.float32
            ).astype(jnp.bfloat16)
        else:
            for cs in range(0, n_out, _LANE_CHUNK):
                ce = min(cs + _LANE_CHUNK, n_out)
                bufs[l][:, cs:ce] = jnp.dot(
                    ahp, t[:, cs:ce], preferred_element_type=jnp.float32
                ).astype(jnp.bfloat16)
        src = bufs[l]                                        # (2H+2, 2W*C) bf16

    # Final Conv3x3 + bias + Sigmoid, row-chunked to bound the fused-K LHS.
    bf_ref, browf_ref = prm[-2], prm[-1]
    hf = src.shape[0] - 2
    step = hf if hf <= _ROW_CHUNK else _ROW_CHUNK
    for r0 in range(0, hf, step):
        rows = min(step, hf - r0)
        logits = conv3x3_rows(src, bf_ref, r0, rows) + browf_ref[...]
        o_ref[r0:r0 + rows, :] = jax.nn.sigmoid(logits).astype(o_ref.dtype)


def _const_spec(arr):
    # Grid-invariant weight operand (fully VMEM-resident).
    return pl.BlockSpec(arr.shape, lambda n: (0, 0))


@functools.partial(jax.jit, static_argnums=(2,))
def decoder2d_forward(x_nchw, ops, out_ch):
    """x_nchw: (N, C0, H0, W0) NCHW; ops: flat tuple from build_decoder_operands."""
    N, C0, H0, W0 = x_nchw.shape
    num_layers = (len(ops) - 2) // 4
    Hf, Wf = H0 * 2 ** num_layers, W0 * 2 ** num_layers

    # NCHW -> H-zero-padded, lane-dense (H+2, W*C) bf16 layout (tiny one-time
    # glue; pre-cast to bf16 since the MXU operands are bf16 anyway).
    xp = jnp.transpose(x_nchw, (0, 2, 3, 1))
    xp = jnp.pad(xp, ((0, 0), (1, 1), (0, 0), (0, 0)))
    xp = xp.reshape(N, H0 + 2, W0 * C0).astype(jnp.bfloat16)

    in_specs = [pl.BlockSpec((None, H0 + 2, W0 * C0), lambda n: (n, 0, 0))]
    in_specs += [_const_spec(a) for a in ops]

    # Per-layer bf16 VMEM scratch holding the upsampled, H-padded activation
    # (2H+2, 2W*C) that feeds the next conv.
    scratch = []
    for l in range(num_layers):
        ahp, awc = ops[4 * l + 2], ops[4 * l + 3]
        scratch.append(pltpu.VMEM((ahp.shape[0], awc.shape[1]), jnp.bfloat16))

    out = pl.pallas_call(
        functools.partial(_decoder_kernel, num_layers=num_layers),
        out_shape=jax.ShapeDtypeStruct((N, Hf, Wf * out_ch), jnp.float32),
        grid_spec=pltpu.PrefetchScalarGridSpec(
            num_scalar_prefetch=0,
            grid=(N,),
            in_specs=in_specs,
            out_specs=pl.BlockSpec((None, Hf, Wf * out_ch),
                                   lambda n: (n, 0, 0)),
            scratch_shapes=scratch,
        ),
        compiler_params=pltpu.CompilerParams(
            dimension_semantics=("parallel",),
            vmem_limit_bytes=32 * 1024 * 1024),
    )(xp, *ops)

    out = out.reshape(N, Hf, Wf, out_ch)
    return jnp.transpose(out, (0, 3, 1, 2))                 # back to NCHW


# --------------------------------------------------------------------------
# Host-side parameter preparation (one-time, outside the kernel)
# --------------------------------------------------------------------------
def _interp_matrix(n_in):
    """PyTorch bilinear x2 upsample, align_corners=True, as a (2n, n) matrix."""
    n_out = 2 * n_in
    if n_in == 1:
        return jnp.ones((n_out, 1), jnp.float32)
    src = jnp.arange(n_out, dtype=jnp.float32) * (n_in - 1) / (n_out - 1)
    p0 = jnp.clip(jnp.floor(src).astype(jnp.int32), 0, n_in - 2)
    t = src - p0.astype(jnp.float32)
    rows = jnp.arange(n_out)
    A = jnp.zeros((n_out, n_in), jnp.float32)
    A = A.at[rows, p0].add(1.0 - t)
    A = A.at[rows, p0 + 1].add(t)
    return A


def _banded_conv_weights(w_hwio, scale, W):
    """3x3 SAME conv (+BN scale) in the (H, W*C) layout as one ky-stacked
    banded matrix B of shape (3*W*Cin, W*Cout):
      B[ky*W*Cin + (w+kx-1)*Cin + ci, w*Cout + co] = w[ky,kx,ci,co]*scale[co]
    with out-of-range (w+kx-1) taps dropped (they would multiply zeros), so
      conv_out = [Xpad[0:H] | Xpad[1:H+1] | Xpad[2:H+2]] @ B.
    """
    mats = []
    for ky in range(3):
        m = None
        for kx in range(3):
            # input column (w + kx - 1) feeds output column w
            shift = jnp.eye(W, W, k=1 - kx, dtype=jnp.float32)
            term = jnp.kron(shift, w_hwio[ky, kx])
            m = term if m is None else m + term
        mats.append(m)
    B = jnp.concatenate(mats, axis=0)                 # (3*W*Cin, W*Cout)
    return B * jnp.tile(scale, W)[None, :]


def _upsample_mats(H, W, C):
    """Separable bilinear-x2 matrices for the (H, W*C) layout.
    X_next = AhP @ (Y @ AwC) is the x2-upsampled activation with the zero
    H-pad rows required by the next 3x3 conv already in place."""
    AhP = jnp.pad(_interp_matrix(H), ((1, 1), (0, 0)))            # (2H+2, H)
    AwC = jnp.kron(_interp_matrix(W).T, jnp.eye(C, dtype=jnp.float32))
    return AhP, AwC                                               # (W*C, 2W*C)


def build_decoder_operands(layers, final, H0, W0):
    """Precompute all weight operands of the fused decoder kernel
    (bf16 for matmul operands, f32 for additive bias rows)."""
    ops = []
    H, W = H0, W0
    for (w, scale, bias) in layers:
        Cout = w.shape[-1]
        B = _banded_conv_weights(w, scale, W).astype(jnp.bfloat16)
        brow = jnp.tile(bias, W).reshape(1, W * Cout).astype(jnp.float32)
        AhP, AwC = _upsample_mats(H, W, Cout)
        ops += [B, brow, AhP.astype(jnp.bfloat16), AwC.astype(jnp.bfloat16)]
        H, W = 2 * H, 2 * W
    wf, sf, bfin = final
    CoutF = wf.shape[-1]
    Bf = _banded_conv_weights(wf, sf, W).astype(jnp.bfloat16)
    browf = jnp.tile(bfin, W).reshape(1, W * CoutF).astype(jnp.float32)
    ops += [Bf, browf]
    return tuple(ops)


def init_params(key, in_ch, features, out_ch, eps=1e-5):
    """Deterministic synthetic Conv/BN parameters; BN folded (eval mode)."""
    layers = []
    cin = in_ch
    for f in features:
        key, k1, k2, k3, k4 = jax.random.split(key, 5)
        w = 0.1 * jax.random.normal(k1, (3, 3, cin, f), jnp.float32)   # HWIO
        conv_b = 0.1 * jax.random.normal(k2, (f,), jnp.float32)
        gamma = 1.0 + 0.1 * jax.random.normal(k3, (f,), jnp.float32)
        beta = 0.1 * jax.random.normal(k4, (f,), jnp.float32)
        run_mean = jnp.zeros((f,), jnp.float32)
        run_var = jnp.ones((f,), jnp.float32)
        scale = gamma / jnp.sqrt(run_var + eps)              # folded BN (eval)
        bias = (conv_b - run_mean) * scale + beta
        layers.append((w, scale, bias))
        cin = f
    key, k1, k2 = jax.random.split(key, 3)
    wf = 0.1 * jax.random.normal(k1, (3, 3, cin, out_ch), jnp.float32)
    bf = 0.1 * jax.random.normal(k2, (out_ch,), jnp.float32)
    final = (wf, jnp.ones((out_ch,), jnp.float32), bf)
    return layers, final


# Pure-JAX f32 reference (same folded parameters) for correctness checking.
def reference_forward(x_nchw, layers, final, mats):
    x = jnp.transpose(x_nchw, (0, 2, 3, 1))

    def conv(x, w):
        return lax.conv_general_dilated(
            x, w, window_strides=(1, 1), padding="SAME",
            dimension_numbers=("NHWC", "HWIO", "NHWC"),
            precision=lax.Precision.HIGHEST)

    for (w, s, b), (ah, aw) in zip(layers, mats):
        y = jnp.maximum(conv(x, w) * s + b, 0.0)
        y = jnp.einsum("ph,nhwc->npwc", ah, y, precision=lax.Precision.HIGHEST)
        x = jnp.einsum("qw,npwc->npqc", aw, y, precision=lax.Precision.HIGHEST)
    wf, sf, bf = final
    x = jax.nn.sigmoid(conv(x, wf) * sf + bf)
    return jnp.transpose(x, (0, 3, 1, 2))


if __name__ == "__main__":
    # Small shapes consistent with the module (scaled-down channel widths).
    N, Cin, Hin, Win = 2, 32, 4, 4
    features = [16, 16, 8, 8]
    out_ch = 1

    key = jax.random.PRNGKey(0)
    kx, kp = jax.random.split(key)
    x = jax.random.normal(kx, (N, Cin, Hin, Win), jnp.float32)   # NCHW input
    layers, final = init_params(kp, Cin, features, out_ch)

    ops = build_decoder_operands(layers, final, Hin, Win)
    out = decoder2d_forward(x, ops, out_ch)
    out = jax.block_until_ready(out)

    assert out.shape == (N, out_ch, Hin * 16, Win * 16), out.shape

    mats = []
    h, w = Hin, Win
    for _ in features:
        mats.append((_interp_matrix(h), _interp_matrix(w)))
        h, w = 2 * h, 2 * w
    ref = reference_forward(x, layers, final, mats)

    assert bool(jnp.all(jnp.isfinite(out)))
    # bf16 MXU operands (f32 accumulation) per perf guidance -> tolerance
    # relaxed vs a pure-f32 kernel; layout/index bugs would give O(0.1-1) diffs.
    assert bool(jnp.allclose(out, ref, atol=2e-2, rtol=2e-2)), (
        float(jnp.max(jnp.abs(out - ref))))
    print("KERNEL_OK")
</pallas_src>

<mosaic_0001>
module attributes {stable_mosaic.version = 11 : i64} {
  func.func @_decoder_kernel(%arg0: i32, %arg1: memref<1x6x128xbf16, #tpu.memory_space<vmem>>, %arg2: memref<384x64xbf16, #tpu.memory_space<vmem>>, %arg3: memref<1x64xf32, #tpu.memory_space<vmem>>, %arg4: memref<10x4xbf16, #tpu.memory_space<vmem>>, %arg5: memref<64x128xbf16, #tpu.memory_space<vmem>>, %arg6: memref<384x128xbf16, #tpu.memory_space<vmem>>, %arg7: memref<1x128xf32, #tpu.memory_space<vmem>>, %arg8: memref<18x8xbf16, #tpu.memory_space<vmem>>, %arg9: memref<128x256xbf16, #tpu.memory_space<vmem>>, %arg10: memref<768x128xbf16, #tpu.memory_space<vmem>>, %arg11: memref<1x128xf32, #tpu.memory_space<vmem>>, %arg12: memref<34x16xbf16, #tpu.memory_space<vmem>>, %arg13: memref<128x256xbf16, #tpu.memory_space<vmem>>, %arg14: memref<768x256xbf16, #tpu.memory_space<vmem>>, %arg15: memref<1x256xf32, #tpu.memory_space<vmem>>, %arg16: memref<66x32xbf16, #tpu.memory_space<vmem>>, %arg17: memref<256x512xbf16, #tpu.memory_space<vmem>>, %arg18: memref<1536x64xbf16, #tpu.memory_space<vmem>>, %arg19: memref<1x64xf32, #tpu.memory_space<vmem>>, %arg20: memref<1x64x64xf32, #tpu.memory_space<vmem>>, %arg21: memref<10x128xbf16, #tpu.memory_space<vmem>>, %arg22: memref<18x256xbf16, #tpu.memory_space<vmem>>, %arg23: memref<34x256xbf16, #tpu.memory_space<vmem>>, %arg24: memref<66x512xbf16, #tpu.memory_space<vmem>>) attributes {dimension_semantics = [#tpu.dimension_semantics<parallel>], iteration_bounds = array<i64: 2>, scalar_prefetch = 0 : i64, scratch_operands = 4 : i64, tpu.core_type = #tpu.core_type<tc>, window_params = [{transform_indices = @transform_0, window_bounds = array<i64: 1, 6, 128>}, {pipeline_mode = #tpu.pipeline_mode<synchronous>, transform_indices = @transform_1, window_bounds = array<i64: 384, 64>}, {pipeline_mode = #tpu.pipeline_mode<synchronous>, transform_indices = @transform_2, window_bounds = array<i64: 1, 64>}, {pipeline_mode = #tpu.pipeline_mode<synchronous>, transform_indices = @transform_3, window_bounds = array<i64: 10, 4>}, {pipeline_mode = #tpu.pipeline_mode<synchronous>, transform_indices = @transform_4, window_bounds = array<i64: 64, 128>}, {pipeline_mode = #tpu.pipeline_mode<synchronous>, transform_indices = @transform_5, window_bounds = array<i64: 384, 128>}, {pipeline_mode = #tpu.pipeline_mode<synchronous>, transform_indices = @transform_6, window_bounds = array<i64: 1, 128>}, {pipeline_mode = #tpu.pipeline_mode<synchronous>, transform_indices = @transform_7, window_bounds = array<i64: 18, 8>}, {pipeline_mode = #tpu.pipeline_mode<synchronous>, transform_indices = @transform_8, window_bounds = array<i64: 128, 256>}, {pipeline_mode = #tpu.pipeline_mode<synchronous>, transform_indices = @transform_9, window_bounds = array<i64: 768, 128>}, {pipeline_mode = #tpu.pipeline_mode<synchronous>, transform_indices = @transform_10, window_bounds = array<i64: 1, 128>}, {pipeline_mode = #tpu.pipeline_mode<synchronous>, transform_indices = @transform_11, window_bounds = array<i64: 34, 16>}, {pipeline_mode = #tpu.pipeline_mode<synchronous>, transform_indices = @transform_12, window_bounds = array<i64: 128, 256>}, {pipeline_mode = #tpu.pipeline_mode<synchronous>, transform_indices = @transform_13, window_bounds = array<i64: 768, 256>}, {pipeline_mode = #tpu.pipeline_mode<synchronous>, transform_indices = @transform_14, window_bounds = array<i64: 1, 256>}, {pipeline_mode = #tpu.pipeline_mode<synchronous>, transform_indices = @transform_15, window_bounds = array<i64: 66, 32>}, {pipeline_mode = #tpu.pipeline_mode<synchronous>, transform_indices = @transform_16, window_bounds = array<i64: 256, 512>}, {pipeline_mode = #tpu.pipeline_mode<synchronous>, transform_indices = @transform_17, window_bounds = array<i64: 1536, 64>}, {pipeline_mode = #tpu.pipeline_mode<synchronous>, transform_indices = @transform_18, window_bounds = array<i64: 1, 64>}, {transform_indices = @transform_19, window_bounds = array<i64: 1, 64, 64>}]} {
    %c0 = arith.constant 0 : index
    %c0_0 = arith.constant 0 : index
    %c0_1 = arith.constant 0 : index
    %0 = vector.load %arg1[%c0, %c0_0, %c0_1] : memref<1x6x128xbf16, #tpu.memory_space<vmem>>, vector<1x4x128xbf16>
    %1 = vector.shape_cast %0 : vector<1x4x128xbf16> to vector<4x128xbf16>
    %c0_2 = arith.constant 0 : index
    %c1 = arith.constant 1 : index
    %c0_3 = arith.constant 0 : index
    %2 = vector.load %arg1[%c0_2, %c1, %c0_3] : memref<1x6x128xbf16, #tpu.memory_space<vmem>>, vector<1x4x128xbf16>
    %3 = vector.shape_cast %2 : vector<1x4x128xbf16> to vector<4x128xbf16>
    %c0_4 = arith.constant 0 : index
    %c2 = arith.constant 2 : index
    %c0_5 = arith.constant 0 : index
    %4 = vector.load %arg1[%c0_4, %c2, %c0_5] : memref<1x6x128xbf16, #tpu.memory_space<vmem>>, vector<1x4x128xbf16>
    %5 = vector.shape_cast %4 : vector<1x4x128xbf16> to vector<4x128xbf16>
    %6 = tpu.concatenate %1, %3, %5 in 1 : vector<4x128xbf16>, vector<4x128xbf16>, vector<4x128xbf16> -> vector<4x384xbf16>
    %c0_6 = arith.constant 0 : index
    %c0_7 = arith.constant 0 : index
    %7 = vector.load %arg2[%c0_6, %c0_7] : memref<384x64xbf16, #tpu.memory_space<vmem>>, vector<384x64xbf16>
    %cst = arith.constant dense<0.000000e+00> : vector<4x64xf32>
    %8 = tpu.matmul %6, %7, %cst {dimension_numbers = #tpu.dot_dimension_numbers<[1], [0], [0], [1], [0, 0, 1, 1], [], []>} : vector<4x384xbf16>, vector<384x64xbf16>, vector<4x64xf32> -> vector<4x64xf32>
    %c0_8 = arith.constant 0 : index
    %c0_9 = arith.constant 0 : index
    %9 = vector.load %arg3[%c0_8, %c0_9] : memref<1x64xf32, #tpu.memory_space<vmem>>, vector<1x64xf32>
    %10 = vector.broadcast %9 : vector<1x64xf32> to vector<4x64xf32>
    %11 = arith.addf %8, %10 : vector<4x64xf32>
    %cst_10 = arith.constant 0.000000e+00 : f32
    %12 = vector.broadcast %cst_10 : f32 to vector<4x64xf32>
    %13 = arith.maximumf %11, %12 : vector<4x64xf32>
    %14 = arith.truncf %13 : vector<4x64xf32> to vector<4x64xbf16>
    %c0_11 = arith.constant 0 : index
    %c0_12 = arith.constant 0 : index
    %15 = vector.load %arg5[%c0_11, %c0_12] : memref<64x128xbf16, #tpu.memory_space<vmem>>, vector<64x128xbf16>
    %cst_13 = arith.constant dense<0.000000e+00> : vector<4x128xf32>
    %16 = tpu.matmul %14, %15, %cst_13 {dimension_numbers = #tpu.dot_dimension_numbers<[1], [0], [0], [1], [0, 0, 1, 1], [], []>} : vector<4x64xbf16>, vector<64x128xbf16>, vector<4x128xf32> -> vector<4x128xf32>
    %17 = arith.truncf %16 : vector<4x128xf32> to vector<4x128xbf16>
    %c0_14 = arith.constant 0 : index
    %c0_15 = arith.constant 0 : index
    %18 = vector.load %arg4[%c0_14, %c0_15] : memref<10x4xbf16, #tpu.memory_space<vmem>>, vector<10x4xbf16>
    %cst_16 = arith.constant dense<0.000000e+00> : vector<10x128xf32>
    %19 = tpu.matmul %18, %17, %cst_16 {dimension_numbers = #tpu.dot_dimension_numbers<[1], [0], [0], [1], [0, 0, 1, 1], [], []>} : vector<10x4xbf16>, vector<4x128xbf16>, vector<10x128xf32> -> vector<10x128xf32>
    %20 = arith.truncf %19 : vector<10x128xf32> to vector<10x128xbf16>
    %c0_17 = arith.constant 0 : index
    %c0_18 = arith.constant 0 : index
    %21 = vector.load %arg21[%c0_17, %c0_18] : memref<10x128xbf16, #tpu.memory_space<vmem>>, vector<10x128xbf16>
    tpu.vector_store %arg21[%c0_17, %c0_18], %20 {strides = array<i32>} : memref<10x128xbf16, #tpu.memory_space<vmem>>, vector<10x128xbf16>,
    %c0_19 = arith.constant 0 : index
    %c0_20 = arith.constant 0 : index
    %22 = vector.load %arg21[%c0_19, %c0_20] : memref<10x128xbf16, #tpu.memory_space<vmem>>, vector<8x128xbf16>
    %c1_21 = arith.constant 1 : index
    %c0_22 = arith.constant 0 : index
    %23 = vector.load %arg21[%c1_21, %c0_22] : memref<10x128xbf16, #tpu.memory_space<vmem>>, vector<8x128xbf16>
    %c2_23 = arith.constant 2 : index
    %c0_24 = arith.constant 0 : index
    %24 = vector.load %arg21[%c2_23, %c0_24] : memref<10x128xbf16, #tpu.memory_space<vmem>>, vector<8x128xbf16>
    %25 = tpu.concatenate %22, %23, %24 in 1 : vector<8x128xbf16>, vector<8x128xbf16>, vector<8x128xbf16> -> vector<8x384xbf16>
    %c0_25 = arith.constant 0 : index
    %c0_26 = arith.constant 0 : index
    %26 = vector.load %arg6[%c0_25, %c0_26] : memref<384x128xbf16, #tpu.memory_space<vmem>>, vector<384x128xbf16>
    %cst_27 = arith.constant dense<0.000000e+00> : vector<8x128xf32>
    %27 = tpu.matmul %25, %26, %cst_27 {dimension_numbers = #tpu.dot_dimension_numbers<[1], [0], [0], [1], [0, 0, 1, 1], [], []>} : vector<8x384xbf16>, vector<384x128xbf16>, vector<8x128xf32> -> vector<8x128xf32>
    %c0_28 = arith.constant 0 : index
    %c0_29 = arith.constant 0 : index
    %28 = vector.load %arg7[%c0_28, %c0_29] : memref<1x128xf32, #tpu.memory_space<vmem>>, vector<1x128xf32>
    %29 = vector.broadcast %28 : vector<1x128xf32> to vector<8x128xf32>
    %30 = arith.addf %27, %29 : vector<8x128xf32>
    %cst_30 = arith.constant 0.000000e+00 : f32
    %31 = vector.broadcast %cst_30 : f32 to vector<8x128xf32>
    %32 = arith.maximumf %30, %31 : vector<8x128xf32>
    %33 = arith.truncf %32 : vector<8x128xf32> to vector<8x128xbf16>
    %c0_31 = arith.constant 0 : index
    %c0_32 = arith.constant 0 : index
    %34 = vector.load %arg9[%c0_31, %c0_32] : memref<128x256xbf16, #tpu.memory_space<vmem>>, vector<128x256xbf16>
    %cst_33 = arith.constant dense<0.000000e+00> : vector<8x256xf32>
    %35 = tpu.matmul %33, %34, %cst_33 {dimension_numbers = #tpu.dot_dimension_numbers<[1], [0], [0], [1], [0, 0, 1, 1], [], []>} : vector<8x128xbf16>, vector<128x256xbf16>, vector<8x256xf32> -> vector<8x256xf32>
    %36 = arith.truncf %35 : vector<8x256xf32> to vector<8x256xbf16>
    %c0_34 = arith.constant 0 : index
    %c0_35 = arith.constant 0 : index
    %37 = vector.load %arg8[%c0_34, %c0_35] : memref<18x8xbf16, #tpu.memory_space<vmem>>, vector<18x8xbf16>
    %cst_36 = arith.constant dense<0.000000e+00> : vector<18x256xf32>
    %38 = tpu.matmul %37, %36, %cst_36 {dimension_numbers = #tpu.dot_dimension_numbers<[1], [0], [0], [1], [0, 0, 1, 1], [], []>} : vector<18x8xbf16>, vector<8x256xbf16>, vector<18x256xf32> -> vector<18x256xf32>
    %39 = arith.truncf %38 : vector<18x256xf32> to vector<18x256xbf16>
    %c0_37 = arith.constant 0 : index
    %c0_38 = arith.constant 0 : index
    %40 = vector.load %arg22[%c0_37, %c0_38] : memref<18x256xbf16, #tpu.memory_space<vmem>>, vector<18x256xbf16>
    tpu.vector_store %arg22[%c0_37, %c0_38], %39 {strides = array<i32>} : memref<18x256xbf16, #tpu.memory_space<vmem>>, vector<18x256xbf16>,
    %c0_39 = arith.constant 0 : index
    %c0_40 = arith.constant 0 : index
    %41 = vector.load %arg22[%c0_39, %c0_40] : memref<18x256xbf16, #tpu.memory_space<vmem>>, vector<16x256xbf16>
    %c1_41 = arith.constant 1 : index
    %c0_42 = arith.constant 0 : index
    %42 = vector.load %arg22[%c1_41, %c0_42] : memref<18x256xbf16, #tpu.memory_space<vmem>>, vector<16x256xbf16>
    %c2_43 = arith.constant 2 : index
    %c0_44 = arith.constant 0 : index
    %43 = vector.load %arg22[%c2_43, %c0_44] : memref<18x256xbf16, #tpu.memory_space<vmem>>, vector<16x256xbf16>
    %44 = tpu.concatenate %41, %42, %43 in 1 : vector<16x256xbf16>, vector<16x256xbf16>, vector<16x256xbf16> -> vector<16x768xbf16>
    %c0_45 = arith.constant 0 : index
    %c0_46 = arith.constant 0 : index
    %45 = vector.load %arg10[%c0_45, %c0_46] : memref<768x128xbf16, #tpu.memory_space<vmem>>, vector<768x128xbf16>
    %cst_47 = arith.constant dense<0.000000e+00> : vector<16x128xf32>
    %46 = tpu.matmul %44, %45, %cst_47 {dimension_numbers = #tpu.dot_dimension_numbers<[1], [0], [0], [1], [0, 0, 1, 1], [], []>} : vector<16x768xbf16>, vector<768x128xbf16>, vector<16x128xf32> -> vector<16x128xf32>
    %c0_48 = arith.constant 0 : index
    %c0_49 = arith.constant 0 : index
    %47 = vector.load %arg11[%c0_48, %c0_49] : memref<1x128xf32, #tpu.memory_space<vmem>>, vector<1x128xf32>
    %48 = vector.broadcast %47 : vector<1x128xf32> to vector<16x128xf32>
    %49 = arith.addf %46, %48 : vector<16x128xf32>
    %cst_50 = arith.constant 0.000000e+00 : f32
    %50 = vector.broadcast %cst_50 : f32 to vector<16x128xf32>
    %51 = arith.maximumf %49, %50 : vector<16x128xf32>
    %52 = arith.truncf %51 : vector<16x128xf32> to vector<16x128xbf16>
    %c0_51 = arith.constant 0 : index
    %c0_52 = arith.constant 0 : index
    %53 = vector.load %arg13[%c0_51, %c0_52] : memref<128x256xbf16, #tpu.memory_space<vmem>>, vector<128x256xbf16>
    %cst_53 = arith.constant dense<0.000000e+00> : vector<16x256xf32>
    %54 = tpu.matmul %52, %53, %cst_53 {dimension_numbers = #tpu.dot_dimension_numbers<[1], [0], [0], [1], [0, 0, 1, 1], [], []>} : vector<16x128xbf16>, vector<128x256xbf16>, vector<16x256xf32> -> vector<16x256xf32>
    %55 = arith.truncf %54 : vector<16x256xf32> to vector<16x256xbf16>
    %c0_54 = arith.constant 0 : index
    %c0_55 = arith.constant 0 : index
    %56 = vector.load %arg12[%c0_54, %c0_55] : memref<34x16xbf16, #tpu.memory_space<vmem>>, vector<34x16xbf16>
    %cst_56 = arith.constant dense<0.000000e+00> : vector<34x256xf32>
    %57 = tpu.matmul %56, %55, %cst_56 {dimension_numbers = #tpu.dot_dimension_numbers<[1], [0], [0], [1], [0, 0, 1, 1], [], []>} : vector<34x16xbf16>, vector<16x256xbf16>, vector<34x256xf32> -> vector<34x256xf32>
    %58 = arith.truncf %57 : vector<34x256xf32> to vector<34x256xbf16>
    %c0_57 = arith.constant 0 : index
    %c0_58 = arith.constant 0 : index
    %59 = vector.load %arg23[%c0_57, %c0_58] : memref<34x256xbf16, #tpu.memory_space<vmem>>, vector<34x256xbf16>
    tpu.vector_store %arg23[%c0_57, %c0_58], %58 {strides = array<i32>} : memref<34x256xbf16, #tpu.memory_space<vmem>>, vector<34x256xbf16>,
    %c0_59 = arith.constant 0 : index
    %c0_60 = arith.constant 0 : index
    %60 = vector.load %arg23[%c0_59, %c0_60] : memref<34x256xbf16, #tpu.memory_space<vmem>>, vector<32x256xbf16>
    %c1_61 = arith.constant 1 : index
    %c0_62 = arith.constant 0 : index
    %61 = vector.load %arg23[%c1_61, %c0_62] : memref<34x256xbf16, #tpu.memory_space<vmem>>, vector<32x256xbf16>
    %c2_63 = arith.constant 2 : index
    %c0_64 = arith.constant 0 : index
    %62 = vector.load %arg23[%c2_63, %c0_64] : memref<34x256xbf16, #tpu.memory_space<vmem>>, vector<32x256xbf16>
    %63 = tpu.concatenate %60, %61, %62 in 1 : vector<32x256xbf16>, vector<32x256xbf16>, vector<32x256xbf16> -> vector<32x768xbf16>
    %c0_65 = arith.constant 0 : index
    %c0_66 = arith.constant 0 : index
    %64 = vector.load %arg14[%c0_65, %c0_66] : memref<768x256xbf16, #tpu.memory_space<vmem>>, vector<768x256xbf16>
    %cst_67 = arith.constant dense<0.000000e+00> : vector<32x256xf32>
    %65 = tpu.matmul %63, %64, %cst_67 {dimension_numbers = #tpu.dot_dimension_numbers<[1], [0], [0], [1], [0, 0, 1, 1], [], []>} : vector<32x768xbf16>, vector<768x256xbf16>, vector<32x256xf32> -> vector<32x256xf32>
    %c0_68 = arith.constant 0 : index
    %c0_69 = arith.constant 0 : index
    %66 = vector.load %arg15[%c0_68, %c0_69] : memref<1x256xf32, #tpu.memory_space<vmem>>, vector<1x256xf32>
    %67 = vector.broadcast %66 : vector<1x256xf32> to vector<32x256xf32>
    %68 = arith.addf %65, %67 : vector<32x256xf32>
    %cst_70 = arith.constant 0.000000e+00 : f32
    %69 = vector.broadcast %cst_70 : f32 to vector<32x256xf32>
    %70 = arith.maximumf %68, %69 : vector<32x256xf32>
    %71 = arith.truncf %70 : vector<32x256xf32> to vector<32x256xbf16>
    %c0_71 = arith.constant 0 : index
    %c0_72 = arith.constant 0 : index
    %72 = vector.load %arg17[%c0_71, %c0_72] : memref<256x512xbf16, #tpu.memory_space<vmem>>, vector<256x512xbf16>
    %cst_73 = arith.constant dense<0.000000e+00> : vector<32x512xf32>
    %73 = tpu.matmul %71, %72, %cst_73 {dimension_numbers = #tpu.dot_dimension_numbers<[1], [0], [0], [1], [0, 0, 1, 1], [], []>} : vector<32x256xbf16>, vector<256x512xbf16>, vector<32x512xf32> -> vector<32x512xf32>
    %74 = arith.truncf %73 : vector<32x512xf32> to vector<32x512xbf16>
    %c0_74 = arith.constant 0 : index
    %c0_75 = arith.constant 0 : index
    %75 = vector.load %arg16[%c0_74, %c0_75] : memref<66x32xbf16, #tpu.memory_space<vmem>>, vector<66x32xbf16>
    %76 = vector.extract_strided_slice %74 {offsets = [0, 0], sizes = [32, 256], strides = [1, 1]} : vector<32x512xbf16> to vector<32x256xbf16>
    %cst_76 = arith.constant dense<0.000000e+00> : vector<66x256xf32>
    %77 = tpu.matmul %75, %76, %cst_76 {dimension_numbers = #tpu.dot_dimension_numbers<[1], [0], [0], [1], [0, 0, 1, 1], [], []>} : vector<66x32xbf16>, vector<32x256xbf16>, vector<66x256xf32> -> vector<66x256xf32>
    %78 = arith.truncf %77 : vector<66x256xf32> to vector<66x256xbf16>
    %c0_77 = arith.constant 0 : index
    %c0_78 = arith.constant 0 : index
    %79 = vector.load %arg24[%c0_77, %c0_78] : memref<66x512xbf16, #tpu.memory_space<vmem>>, vector<66x256xbf16>
    tpu.vector_store %arg24[%c0_77, %c0_78], %78 {strides = array<i32>} : memref<66x512xbf16, #tpu.memory_space<vmem>>, vector<66x256xbf16>,
    %80 = vector.extract_strided_slice %74 {offsets = [0, 256], sizes = [32, 256], strides = [1, 1]} : vector<32x512xbf16> to vector<32x256xbf16>
    %cst_79 = arith.constant dense<0.000000e+00> : vector<66x256xf32>
    %81 = tpu.matmul %75, %80, %cst_79 {dimension_numbers = #tpu.dot_dimension_numbers<[1], [0], [0], [1], [0, 0, 1, 1], [], []>} : vector<66x32xbf16>, vector<32x256xbf16>, vector<66x256xf32> -> vector<66x256xf32>
    %82 = arith.truncf %81 : vector<66x256xf32> to vector<66x256xbf16>
    %c0_80 = arith.constant 0 : index
    %c256 = arith.constant 256 : index
    %83 = vector.load %arg24[%c0_80, %c256] : memref<66x512xbf16, #tpu.memory_space<vmem>>, vector<66x256xbf16>
    tpu.vector_store %arg24[%c0_80, %c256], %82 {strides = array<i32>} : memref<66x512xbf16, #tpu.memory_space<vmem>>, vector<66x256xbf16>,
    %c0_81 = arith.constant 0 : index
    %c0_82 = arith.constant 0 : index
    %84 = vector.load %arg24[%c0_81, %c0_82] : memref<66x512xbf16, #tpu.memory_space<vmem>>, vector<32x512xbf16>
    %c1_83 = arith.constant 1 : index
    %c0_84 = arith.constant 0 : index
    %85 = vector.load %arg24[%c1_83, %c0_84] : memref<66x512xbf16, #tpu.memory_space<vmem>>, vector<32x512xbf16>
    %c2_85 = arith.constant 2 : index
    %c0_86 = arith.constant 0 : index
    %86 = vector.load %arg24[%c2_85, %c0_86] : memref<66x512xbf16, #tpu.memory_space<vmem>>, vector<32x512xbf16>
    %87 = tpu.concatenate %84, %85, %86 in 1 : vector<32x512xbf16>, vector<32x512xbf16>, vector<32x512xbf16> -> vector<32x1536xbf16>
    %c0_87 = arith.constant 0 : index
    %c0_88 = arith.constant 0 : index
    %88 = vector.load %arg18[%c0_87, %c0_88] : memref<1536x64xbf16, #tpu.memory_space<vmem>>, vector<1536x64xbf16>
    %cst_89 = arith.constant dense<0.000000e+00> : vector<32x64xf32>
    %89 = tpu.matmul %87, %88, %cst_89 {dimension_numbers = #tpu.dot_dimension_numbers<[1], [0], [0], [1], [0, 0, 1, 1], [], []>} : vector<32x1536xbf16>, vector<1536x64xbf16>, vector<32x64xf32> -> vector<32x64xf32>
    %c0_90 = arith.constant 0 : index
    %c0_91 = arith.constant 0 : index
    %90 = vector.load %arg19[%c0_90, %c0_91] : memref<1x64xf32, #tpu.memory_space<vmem>>, vector<1x64xf32>
    %91 = vector.broadcast %90 : vector<1x64xf32> to vector<32x64xf32>
    %92 = arith.addf %89, %91 : vector<32x64xf32>
    %93 = arith.negf %92 : vector<32x64xf32>
    %94 = math.exp %93 : vector<32x64xf32>
    %cst_92 = arith.constant 1.000000e+00 : f32
    %95 = vector.broadcast %cst_92 : f32 to vector<32x64xf32>
    %96 = arith.addf %95, %94 : vector<32x64xf32>
    %97 = arith.divf %95, %96 : vector<32x64xf32>
    %c0_93 = arith.constant 0 : index
    %c0_94 = arith.constant 0 : index
    %c0_95 = arith.constant 0 : index
    %98 = vector.load %arg20[%c0_93, %c0_94, %c0_95] : memref<1x64x64xf32, #tpu.memory_space<vmem>>, vector<1x32x64xf32>
    %99 = vector.shape_cast %98 : vector<1x32x64xf32> to vector<32x64xf32>
    %100 = vector.shape_cast %97 : vector<32x64xf32> to vector<1x32x64xf32>
    tpu.vector_store %arg20[%c0_93, %c0_94, %c0_95], %100 {strides = array<i32>} : memref<1x64x64xf32, #tpu.memory_space<vmem>>, vector<1x32x64xf32>,
    %c32 = arith.constant 32 : index
    %c0_96 = arith.constant 0 : index
    %101 = vector.load %arg24[%c32, %c0_96] : memref<66x512xbf16, #tpu.memory_space<vmem>>, vector<32x512xbf16>
    %c33 = arith.constant 33 : index
    %c0_97 = arith.constant 0 : index
    %102 = vector.load %arg24[%c33, %c0_97] : memref<66x512xbf16, #tpu.memory_space<vmem>>, vector<32x512xbf16>
    %c34 = arith.constant 34 : index
    %c0_98 = arith.constant 0 : index
    %103 = vector.load %arg24[%c34, %c0_98] : memref<66x512xbf16, #tpu.memory_space<vmem>>, vector<32x512xbf16>
    %104 = tpu.concatenate %101, %102, %103 in 1 : vector<32x512xbf16>, vector<32x512xbf16>, vector<32x512xbf16> -> vector<32x1536xbf16>
    %c0_99 = arith.constant 0 : index
    %c0_100 = arith.constant 0 : index
    %105 = vector.load %arg18[%c0_99, %c0_100] : memref<1536x64xbf16, #tpu.memory_space<vmem>>, vector<1536x64xbf16>
    %cst_101 = arith.constant dense<0.000000e+00> : vector<32x64xf32>
    %106 = tpu.matmul %104, %105, %cst_101 {dimension_numbers = #tpu.dot_dimension_numbers<[1], [0], [0], [1], [0, 0, 1, 1], [], []>} : vector<32x1536xbf16>, vector<1536x64xbf16>, vector<32x64xf32> -> vector<32x64xf32>
    %c0_102 = arith.constant 0 : index
    %c0_103 = arith.constant 0 : index
    %107 = vector.load %arg19[%c0_102, %c0_103] : memref<1x64xf32, #tpu.memory_space<vmem>>, vector<1x64xf32>
    %108 = vector.broadcast %107 : vector<1x64xf32> to vector<32x64xf32>
    %109 = arith.addf %106, %108 : vector<32x64xf32>
    %110 = arith.negf %109 : vector<32x64xf32>
    %111 = math.exp %110 : vector<32x64xf32>
    %cst_104 = arith.constant 1.000000e+00 : f32
    %112 = vector.broadcast %cst_104 : f32 to vector<32x64xf32>
    %113 = arith.addf %112, %111 : vector<32x64xf32>
    %114 = arith.divf %112, %113 : vector<32x64xf32>
    %c0_105 = arith.constant 0 : index
    %c32_106 = arith.constant 32 : index
    %c0_107 = arith.constant 0 : index
    %115 = vector.load %arg20[%c0_105, %c32_106, %c0_107] : memref<1x64x64xf32, #tpu.memory_space<vmem>>, vector<1x32x64xf32>
    %116 = vector.shape_cast %115 : vector<1x32x64xf32> to vector<32x64xf32>
    %117 = vector.shape_cast %114 : vector<32x64xf32> to vector<1x32x64xf32>
    tpu.vector_store %arg20[%c0_105, %c32_106, %c0_107], %117 {strides = array<i32>} : memref<1x64x64xf32, #tpu.memory_space<vmem>>, vector<1x32x64xf32>,
    return
  }
  func.func @transform_0(%arg0: i32) -> (i32, i32, i32) {
    %c0_i32 = arith.constant 0 : i32
    %c0_i32_0 = arith.constant 0 : i32
    %c0_i32_1 = arith.constant 0 : i32
    return %arg0, %c0_i32, %c0_i32_0 : i32, i32, i32
  }
  func.func @transform_1(%arg0: i32) -> (i32, i32) {
    %c0_i32 = arith.constant 0 : i32
    %c0_i32_0 = arith.constant 0 : i32
    %c0_i32_1 = arith.constant 0 : i32
    return %c0_i32, %c0_i32_0 : i32, i32
  }
  func.func @transform_2(%arg0: i32) -> (i32, i32) {
    %c0_i32 = arith.constant 0 : i32
    %c0_i32_0 = arith.constant 0 : i32
    %c0_i32_1 = arith.constant 0 : i32
    return %c0_i32, %c0_i32_0 : i32, i32
  }
  func.func @transform_3(%arg0: i32) -> (i32, i32) {
    %c0_i32 = arith.constant 0 : i32
    %c0_i32_0 = arith.constant 0 : i32
    %c0_i32_1 = arith.constant 0 : i32
    return %c0_i32, %c0_i32_0 : i32, i32
  }
  func.func @transform_4(%arg0: i32) -> (i32, i32) {
    %c0_i32 = arith.constant 0 : i32
    %c0_i32_0 = arith.constant 0 : i32
    %c0_i32_1 = arith.constant 0 : i32
    return %c0_i32, %c0_i32_0 : i32, i32
  }
  func.func @transform_5(%arg0: i32) -> (i32, i32) {
    %c0_i32 = arith.constant 0 : i32
    %c0_i32_0 = arith.constant 0 : i32
    %c0_i32_1 = arith.constant 0 : i32
    return %c0_i32, %c0_i32_0 : i32, i32
  }
  func.func @transform_6(%arg0: i32) -> (i32, i32) {
    %c0_i32 = arith.constant 0 : i32
    %c0_i32_0 = arith.constant 0 : i32
    %c0_i32_1 = arith.constant 0 : i32
    return %c0_i32, %c0_i32_0 : i32, i32
  }
  func.func @transform_7(%arg0: i32) -> (i32, i32) {
    %c0_i32 = arith.constant 0 : i32
    %c0_i32_0 = arith.constant 0 : i32
    %c0_i32_1 = arith.constant 0 : i32
    return %c0_i32, %c0_i32_0 : i32, i32
  }
  func.func @transform_8(%arg0: i32) -> (i32, i32) {
    %c0_i32 = arith.constant 0 : i32
    %c0_i32_0 = arith.constant 0 : i32
    %c0_i32_1 = arith.constant 0 : i32
    return %c0_i32, %c0_i32_0 : i32, i32
  }
  func.func @transform_9(%arg0: i32) -> (i32, i32) {
    %c0_i32 = arith.constant 0 : i32
    %c0_i32_0 = arith.constant 0 : i32
    %c0_i32_1 = arith.constant 0 : i32
    return %c0_i32, %c0_i32_0 : i32, i32
  }
  func.func @transform_10(%arg0: i32) -> (i32, i32) {
    %c0_i32 = arith.constant 0 : i32
    %c0_i32_0 = arith.constant 0 : i32
    %c0_i32_1 = arith.constant 0 : i32
    return %c0_i32, %c0_i32_0 : i32, i32
  }
  func.func @transform_11(%arg0: i32) -> (i32, i32) {
    %c0_i32 = arith.constant 0 : i32
    %c0_i32_0 = arith.constant 0 : i32
    %c0_i32_1 = arith.constant 0 : i32
    return %c0_i32, %c0_i32_0 : i32, i32
  }
  func.func @transform_12(%arg0: i32) -> (i32, i32) {
    %c0_i32 = arith.constant 0 : i32
    %c0_i32_0 = arith.constant 0 : i32
    %c0_i32_1 = arith.constant 0 : i32
    return %c0_i32, %c0_i32_0 : i32, i32
  }
  func.func @transform_13(%arg0: i32) -> (i32, i32) {
    %c0_i32 = arith.constant 0 : i32
    %c0_i32_0 = arith.constant 0 : i32
    %c0_i32_1 = arith.constant 0 : i32
    return %c0_i32, %c0_i32_0 : i32, i32
  }
  func.func @transform_14(%arg0: i32) -> (i32, i32) {
    %c0_i32 = arith.constant 0 : i32
    %c0_i32_0 = arith.constant 0 : i32
    %c0_i32_1 = arith.constant 0 : i32
    return %c0_i32, %c0_i32_0 : i32, i32
  }
  func.func @transform_15(%arg0: i32) -> (i32, i32) {
    %c0_i32 = arith.constant 0 : i32
    %c0_i32_0 = arith.constant 0 : i32
    %c0_i32_1 = arith.constant 0 : i32
    return %c0_i32, %c0_i32_0 : i32, i32
  }
  func.func @transform_16(%arg0: i32) -> (i32, i32) {
    %c0_i32 = arith.constant 0 : i32
    %c0_i32_0 = arith.constant 0 : i32
    %c0_i32_1 = arith.constant 0 : i32
    return %c0_i32, %c0_i32_0 : i32, i32
  }
  func.func @transform_17(%arg0: i32) -> (i32, i32) {
    %c0_i32 = arith.constant 0 : i32
    %c0_i32_0 = arith.constant 0 : i32
    %c0_i32_1 = arith.constant 0 : i32
    return %c0_i32, %c0_i32_0 : i32, i32
  }
  func.func @transform_18(%arg0: i32) -> (i32, i32) {
    %c0_i32 = arith.constant 0 : i32
    %c0_i32_0 = arith.constant 0 : i32
    %c0_i32_1 = arith.constant 0 : i32
    return %c0_i32, %c0_i32_0 : i32, i32
  }
  func.func @transform_19(%arg0: i32) -> (i32, i32, i32) {
    %c0_i32 = arith.constant 0 : i32
    %c0_i32_0 = arith.constant 0 : i32
    %c0_i32_1 = arith.constant 0 : i32
    return %arg0, %c0_i32, %c0_i32_0 : i32, i32, i32
  }
}

</mosaic_0001>

<bundles_post_ra>
// kernel: decoder2d_forward.1
= control target key start
LH: loop header
LB: loop body
LE: loop exit
PB: predicated region body
PF: predicated region fallthrough
CT: control target
= control target key end

     0   :  { %s11091_s0 = inlined_call_operand.vmem [shape: bf16[2,6,128], index: 0, kind: input, shape index: {}]   ;;  %s11092_s1 = inlined_call_operand.vmem [shape: bf16[384,64], index: 1, kind: input, shape index: {}]   ;;  %s11093_s2 = inlined_call_operand.hbm [shape: f32[1,64], index: 2, kind: input, shape index: {}]   ;;  %s11094_s3 = inlined_call_operand.vmem [shape: bf16[10,4], index: 3, kind: input, shape index: {}]   ;;  %s11095_s4 = inlined_call_operand.vmem [shape: bf16[64,128], index: 4, kind: input, shape index: {}]   ;;  %s11096_s5 = inlined_call_operand.hbm [shape: bf16[384,128], index: 5, kind: input, shape index: {}]   ;;  %s11097_s6 = inlined_call_operand.hbm [shape: f32[1,128], index: 6, kind: input, shape index: {}]   ;;  %s11098_s7 = inlined_call_operand.vmem [shape: bf16[18,8], index: 7, kind: input, shape index: {}]   ;;  %s11099_s8 = inlined_call_operand.hbm [shape: bf16[128,256], index: 8, kind: input, shape index: {}]   ;;  %s11100_s9 = inlined_call_operand.hbm [shape: bf16[768,128], index: 9, kind: input, shape index: {}]   ;;  %s11101_s10 = inlined_call_operand.hbm [shape: f32[1,128], index: 10, kind: input, shape index: {}]   ;;  %s11102_s11 = inlined_call_operand.vmem [shape: bf16[34,16], index: 11, kind: input, shape index: {}]   ;;  %s11103_s12 = inlined_call_operand.hbm [shape: bf16[128,256], index: 12, kind: input, shape index: {}]   ;;  %s11104_s13 = inlined_call_operand.vmem [shape: bf16[768,256], index: 13, kind: input, shape index: {}]   ;;  %s11105_s14 = inlined_call_operand.vmem [shape: f32[1,256], index: 14, kind: input, shape index: {}]   ;;  %s11106_s15 = inlined_call_operand.vmem [shape: bf16[66,32], index: 15, kind: input, shape index: {}]   ;;  %s11107_s16 = inlined_call_operand.vmem [shape: bf16[256,512], index: 16, kind: input, shape index: {}]   ;;  %s11108_s17 = inlined_call_operand.vmem [shape: bf16[1536,64], index: 17, kind: input, shape index: {}]   ;;  %s11109_s18 = inlined_call_operand.hbm [shape: f32[1,64], index: 18, kind: input, shape index: {}]   ;;  %s11110_s19 = inlined_call_operand.hbm [shape: f32[2,64,64], index: 19, kind: output, shape index: {}]  }
   0x1   :  { %11126 = sst [smem:[#allocation33_spill]] %s11091_s0 }
   0x2   :  { %11127 = sst [smem:[#allocation34_spill]] %s11092_s1 }
   0x3   :  { %11128 = sst [smem:[#allocation35_spill]] %s11093_s2 }
   0x4   :  { %11129 = sst [smem:[#allocation36_spill]] %s11094_s3 }
   0x5   :  { %11130 = sst [smem:[#allocation37_spill]] %s11096_s5 }
   0x6   :  { %11131 = sst [smem:[#allocation38_spill]] %s11110_s19 }
   0x7   :  { %24 = vsyncpa [#allocation7], 0 }
   0x8   :  { %25 = vsyncpa [#allocation10], 0 }
   0x9   :  { %26 = vsyncpa [#allocation13], 0 }
   0xa   :  { %27 = vsyncpa [#allocation16], 0 }
   0xb   :  { %28 = vsyncpa [#allocation19], 0 }
   0xc   :  { %29 = vsyncpa [#allocation8], 0 }
   0xd   :  { %31 = vsyncpa [#allocation8 + $0x1], 0  ;;  %s9336_s0 = smov 0   ;;  %s9338_s30 = smov 0  }
   0xe   :  { %s9340_s20 = smov 0   ;;  %s9342_s21 = smov 0  }
   0xf LB: > { %11132 = sst [smem:[#allocation27_spill]] %s9204_s0  ;;  %s9357_s1 = sadd.s32 4294967295, %s9216_s21   ;;  %s9216_s21 = sphi %s9342_s21, %s11170_s21   ;;  %s9212_s20 = sphi %s9340_s20, %s11172_s20   ;;  %s9208_s30 = sphi %s9338_s30, %s11174_s30   ;;  %s9204_s0 = sphi %s9336_s0, %s11173_s0  }
  0x10   : > { %11133 = sst [smem:[#allocation28_spill]] %s9212_s20  ;;  %s6951_s22 = sadd.s32 4294967294, %s9216_s21  }
  0x11   : > { %11134 = sst [smem:[#allocation29_spill]] %s9216_s21  ;;  %s9361_s2 = sadd.s32 1, %s9216_s21  }
  0x12   : > { %11135 = sst [smem:[#allocation30_spill]] %s9361_s2  ;;  %s448_s23 = sadd.s32 1, %s9212_s20 }
  0x13   : > { %s445_s24 = ssub.s32 %s9216_s21, %s9361_s2  ;;  %p458_p0 = scmp.ne.s32.totalorder %s9212_s20, %s9208_s30 }
  0x14   : > { %p446_p1 = scmp.eq.s32.totalorder %s445_s24, 0  ;;  %p459_p2 = scmp.eq.s32.totalorder %s9357_s1, 1 }
  0x15   : > { %p464_p3 = scmp.ne.s32.totalorder %s9208_s30, %s9204_s0  ;;  %p465_p4 = scmp.eq.s32.totalorder %s6951_s22, 1 }
  0x16   : > { %s9372_s25 = scalar_select %p446_p1, %s9212_s20, %s448_s23  }
  0x17   : > { %p9374_p5 = por %p459_p2, %p458_p0  ;;  %p9378_p6 = por %p465_p4, %p464_p3 }
  0x18   : > { %11136 = sst [smem:[#allocation31_spill]] %s9372_s25  ;;  %p6952_p7 = scmp.ge.s32.totalorder %s9216_s21, 1 }
  0x19   : > { %s11137_s3 = scalar_select %p9374_p5, 1, 0 }
  0x1a   : > { %s11138_s26 = scalar_select %p9378_p6, 1, 0 }
  0x1b   : > { %p472_p8 = scmp.lt.s32.totalorder %s9216_s21, 3  ;;  %p11121_p9 = scmp.eq.s32.totalorder %s9357_s1, 0 }
  0x1c   : > { %11139 = sst [smem:[#allocation32_spill]] %s11138_s26  ;;  %s9218_s28 = smov [#allocation9]  }
  0x1d   : > { %p9385_p10 = pnand %p6952_p7, %p472_p8  ;;  %s504_s29 = sshll.u32 %s9218_s28, 4  ;;  %s505_s29 = int_to_ptr.vmem [resolvable:$true] %s504_s29 }
  0x1e   : > { %s9219_s23 = smov [#allocation12]   ;;  %s8939_s20 = scalar_lea.vmem %s505_s29, 3072 }
  0x1f   : > { %s11140_s27 = scalar_select %p9385_p10, 1, 0 }
  0x20   : > { %p8174_p11 = pneg %p9385_p10  ;;  %s531_s24 = sshll.u32 %s9219_s23, 4  ;;  %s532_s24 = int_to_ptr.vmem [resolvable:$true] %s531_s24 }
  0x21   : > { %p8940_p0 = scmp.ne.s32.totalorder %s505_s29, %s8939_s20  ;;  %p8947_p3 = scmp.lt.s32.totalorder %s505_s29, %s505_s29 }
  0x22   : > { %p9393_p12 = pnand %p11121_p9, %p8174_p11  ;;  %p8948_p4 = scmp.lt.s32.totalorder %s8939_s20, %s8939_s20 }
  0x24   : > { %p9399_p13 = pneg %p9393_p12  ;;  %p8949_p7 = por %p8948_p4, %p8947_p3 }
  0x26   : > { %p8942_p1 = pnand %p8940_p0, %p9399_p13 }
  0x28   : > { %p8943_p2 = pneg %p8942_p1 }
  0x2a   : > { %p8950_p8 = pnand %p8949_p7, %p8943_p2 }
  0x2c   : > { %8953 = shalt.err (!%p8950_p8)
}
  0x2d   : > { %s11118_s28 = smov 64   ;;  %s11119_s23 = smov 4  }
  0x2e   : > { %s11143_s5 = sld [smem:[#allocation37_spill]]  ;;  %s8965_s0 = scalar_lea.vmem %s532_s24, 2048 }
  0x2f   : > { %p8966_p11 = scmp.ne.s32.totalorder %s532_s24, %s8965_s0  ;;  %p8973_p3 = scmp.lt.s32.totalorder %s532_s24, %s532_s24 }
  0x30   : > { %p8974_p2 = scmp.lt.s32.totalorder %s8965_s0, %s8965_s0 }
  0x31   : > { %p8968_p0 = pnand %p8966_p11, %p9399_p13 }
  0x32   : > { %p8975_p4 = por %p8974_p2, %p8973_p3 }
  0x33   : > { %p8969_p1 = pneg %p8968_p0 }
  0x34   : > { %8180 = dma.hbm_to_vmem [thread:$0]  (!%p9393_p12), %s11143_s5, 3072, %s505_s29, [#allocation10], %s11118_s28, %s11118_s28, %s11119_s23  }
  0x35   : > { %p8976_p7 = pnand %p8975_p4, %p8969_p1 }
  0x37   : > { %8979 = shalt.err (!%p8976_p7)
}
  0x38   : > { %s11124_s20 = smov 128   ;;  %s11125_s21 = smov 8  }
  0x39   : > { %8186 = dma.hbm_to_vmem [thread:$0]  (!%p9393_p12), %s11099_s8, 2048, %s532_s24, [#allocation13], %s11124_s20, %s11124_s20, %s11125_s21  }
  0x3a   : > { %s9224_s29 = smov [#allocation15]   ;;  %s9225_s23 = smov [#allocation6]  }
  0x3b   : > { %s558_s28 = sshll.u32 %s9224_s29, 4  ;;  %s488_s5 = sshll.u32 %s9225_s23, 4  ;;  %s559_s28 = int_to_ptr.vmem [resolvable:$true] %s558_s28  ;;  %s489_s5 = int_to_ptr.vmem [resolvable:$true] %s488_s5 }
  0x3c   : > { %s8991_s0 = scalar_lea.vmem %s559_s28, 16  ;;  %s8998_s19 = scalar_lea.vmem %s559_s28, 32 }
  0x3d   : > { %p8992_p8 = scmp.ne.s32.totalorder %s559_s28, %s8991_s0  ;;  %p8999_p1 = scmp.lt.s32.totalorder %s559_s28, %s559_s28 }
  0x3e   : > { %p9000_p3 = scmp.lt.s32.totalorder %s8998_s19, %s8991_s0 }
  0x3f   : > { %p8994_p11 = pnand %p8992_p8, %p9399_p13 }
  0x40   : > { %p9001_p2 = por %p9000_p3, %p8999_p1 }
  0x41   : > { %p8995_p0 = pneg %p8994_p11 }
  0x43   : > { %p9002_p4 = pnand %p9001_p2, %p8995_p0 }
  0x45   : > { %9005 = shalt.err (!%p9002_p4)
}
  0x46   : > { %8192 = dma.hbm_to_vmem [thread:$0]  (!%p9393_p12), %s11101_s10, 16, %s559_s28, [#allocation16]  }
  0x47   : > { %s9017_s23 = scalar_lea.vmem %s489_s5, 16  ;;  %s9024_s26 = scalar_lea.vmem %s489_s5, 32 }
  0x48   : > { %p9018_p7 = scmp.ne.s32.totalorder %s489_s5, %s9017_s23  ;;  %p9025_p8 = scmp.lt.s32.totalorder %s489_s5, %s489_s5 }
  0x49   : > { %p9026_p11 = scmp.lt.s32.totalorder %s9024_s26, %s9017_s23 }
  0x4a   : > { %p9020_p9 = pnand %p9018_p7, %p9399_p13 }
  0x4b   : > { %p9027_p5 = por %p9026_p11, %p9025_p8 }
  0x4c   : > { %p9021_p6 = pneg %p9020_p9 }
  0x4e   : > { %p9028_p10 = pnand %p9027_p5, %p9021_p6 }
  0x50   : > { %9031 = shalt.err (!%p9028_p10)
}
  0x51   : > { %s11144_s0 = sld [smem:[#allocation35_spill]]  ;;  %s9226_s24 = smov [#allocation11]  }
  0x52   : > { %s518_s28 = sshll.u32 %s9226_s24, 4  ;;  %s9227_s2 = smov [#allocation14]   ;;  %s519_s28 = int_to_ptr.vmem [resolvable:$true] %s518_s28 }
  0x53   : > { %s544_s20 = sshll.u32 %s9227_s2, 4  ;;  %s9043_s21 = scalar_lea.vmem %s519_s28, 16  ;;  %s545_s20 = int_to_ptr.vmem [resolvable:$true] %s544_s20 }
  0x54   : > { %p9044_p9 = scmp.ne.s32.totalorder %s519_s28, %s9043_s21  ;;  %s9050_s23 = scalar_lea.vmem %s519_s28, 32 }
  0x55   : > { %p9051_p5 = scmp.lt.s32.totalorder %s519_s28, %s519_s28  ;;  %p9052_p6 = scmp.lt.s32.totalorder %s9050_s23, %s9043_s21 }
  0x56   : > { %p9046_p0 = pnand %p9044_p9, %p9399_p13 }
  0x57   : > { %8177 = dma.hbm_to_vmem [thread:$0]  (!%p9393_p12), %s11144_s0, 16, %s489_s5, [#allocation7]  }
  0x58   : > { %p9047_p1 = pneg %p9046_p0  ;;  %p9053_p10 = por %p9052_p6, %p9051_p5 }
  0x5a   : > { %p9054_p3 = pnand %p9053_p10, %p9047_p1 }
  0x5c   : > { %9057 = shalt.err (!%p9054_p3)
}
  0x5d   : > { %8183 = dma.hbm_to_vmem [thread:$0]  (!%p9393_p12), %s11097_s6, 16, %s519_s28, [#allocation10]  }
  0x5e   : > { %s9069_s19 = scalar_lea.vmem %s545_s20, 6144  ;;  %p9077_p8 = scmp.lt.s32.totalorder %s545_s20, %s545_s20 }
  0x5f   : > { %p9070_p2 = scmp.ne.s32.totalorder %s545_s20, %s9069_s19  ;;  %p9078_p11 = scmp.lt.s32.totalorder %s9069_s19, %s9069_s19 }
  0x61   : > { %p9072_p4 = pnand %p9070_p2, %p9399_p13  ;;  %p9079_p9 = por %p9078_p11, %p9077_p8 }
  0x63   : > { %p9073_p7 = pneg %p9072_p4 }
  0x65   : > { %p9080_p0 = pnand %p9079_p9, %p9073_p7 }
  0x67   : > { %9083 = shalt.err (!%p9080_p0)
}
  0x68   : > { %s11145_s21 = smov 4   ;;  %s11146_s29 = smov 64  }
  0x69   : > { %8189 = dma.hbm_to_vmem [thread:$0]  (!%p9393_p12), %s11100_s9, 6144, %s545_s20, [#allocation13], %s11146_s29, %s11146_s29, %s11145_s21  }
  0x6a   : > { %s9228_s28 = smov [#allocation17]   ;;  %s9229_s23 = smov [#allocation18]  }
  0x6b   : > { %s571_s2 = sshll.u32 %s9228_s28, 4  ;;  %s600_s5 = sshll.u32 %s9229_s23, 4  ;;  %s572_s2 = int_to_ptr.vmem [resolvable:$true] %s571_s2  ;;  %s601_s5 = int_to_ptr.vmem [resolvable:$true] %s600_s5 }
  0x6c   : > { %s9095_s26 = scalar_lea.vmem %s572_s2, 2048  ;;  %p9103_p10 = scmp.lt.s32.totalorder %s572_s2, %s572_s2 }
  0x6d   : > { %p9096_p1 = scmp.ne.s32.totalorder %s572_s2, %s9095_s26  ;;  %p9104_p3 = scmp.lt.s32.totalorder %s9095_s26, %s9095_s26 }
  0x6f   : > { %p9098_p5 = pnand %p9096_p1, %p9399_p13  ;;  %p9105_p2 = por %p9104_p3, %p9103_p10 }
  0x71   : > { %p9099_p6 = pneg %p9098_p5 }
  0x73   : > { %p9106_p4 = pnand %p9105_p2, %p9099_p6 }
  0x75   : > { %9109 = shalt.err (!%p9106_p4)
}
  0x76   : > { %s11147_s19 = smov 8   ;;  %s11148_s20 = smov 128  }
  0x77   : > { %8195 = dma.hbm_to_vmem [thread:$0]  (!%p9393_p12), %s11103_s12, 2048, %s572_s2, [#allocation16], %s11148_s20, %s11148_s20, %s11147_s19  }
  0x78   : > { %s9121_s0 = scalar_lea.vmem %s601_s5, 16  ;;  %s9128_s24 = scalar_lea.vmem %s601_s5, 32 }
  0x79   : > { %p9122_p7 = scmp.ne.s32.totalorder %s601_s5, %s9121_s0  ;;  %p9129_p9 = scmp.lt.s32.totalorder %s601_s5, %s601_s5 }
  0x7a   : > { %p9130_p0 = scmp.lt.s32.totalorder %s9128_s24, %s9121_s0 }
  0x7b   : > { %p9124_p8 = pnand %p9122_p7, %p9399_p13 }
  0x7c   : > { %p9131_p1 = por %p9130_p0, %p9129_p9 }
  0x7d   : > { %p9125_p11 = pneg %p9124_p8 }
  0x7f   : > { %p9132_p5 = pnand %p9131_p1, %p9125_p11 }
  0x81   : > { %9135 = shalt.err (!%p9132_p5)
}
  0x82   : > { %8198 = dma.hbm_to_vmem [thread:$0]  (!%p9393_p12), %s11109_s18, 16, %s601_s5, [#allocation19]  }
  0x83   : > { %p11149_p6 = scmp.ne.s32.totalorder %s11140_s27, 0 }
  0x84   : > { %p11150_p10 = scmp.eq.s32.totalorder (!%p11149_p6), %s9357_s1, 0 }
  0x85   : > { %620 = sbr.rel (%p11149_p6) target bundleno = 3213 (0xc8d), region = 96 }
  0x8a   : > { %9179 = dma.done.wait (%p11150_p10), [#allocation7], 16   ;;  %p11151_p13 = pmov %p11150_p10 }
  0x8b   : > { %p11152_p3 = pmov %p11150_p10 }
  0x8c   : > { %9181 = vsyncadd (%p11151_p13), [#allocation7], 4294967280 }
  0x8d   : > { %9183 = dma.done.wait (%p11152_p3), [#allocation10], 3088   ;;  %p11153_p2 = pmov %p11152_p3 }
  0x8f   : > { %9185 = vsyncadd (%p11153_p2), [#allocation10], 4294964208  ;;  %p11154_p4 = pmov %p11153_p2 }
  0x90   : > { %p11155_p12 = pmov %p11153_p2 }
  0x91   : > { %9187 = dma.done.wait (%p11154_p4), [#allocation13], 8192  }
  0x92   : > { %9189 = vsyncadd (%p11155_p12), [#allocation13], 4294959104  ;;  %p11156_p7 = pmov %p11153_p2 }
  0x93   : > { %p11157_p8 = pmov %p11153_p2 }
  0x94   : > { %9191 = dma.done.wait (%p11156_p7), [#allocation16], 2064  }
  0x95   : > { %9193 = vsyncadd (%p11157_p8), [#allocation16], 4294965232  ;;  %p11158_p11 = pmov %p11153_p2 }
  0x96   : > { %p11159_p9 = pmov %p11153_p2 }
  0x97   : > { %9195 = dma.done.wait (%p11158_p11), [#allocation19], 16  }
  0x98   : > { %9197 = vsyncadd (%p11159_p9), [#allocation19], 4294967280  ;;  %v9230_v0 = vmov 0.0   ;;  %vm9231_vm0 = vmmov 0   ;;  %s11160_s22 = sld [smem:[#allocation34_spill]]  ;;  %p703_p0 = scmp.lt.s32.totalorder %s9357_s1, 1 }
  0x99   : > { %8082 = vmatprep.subr.bf16.mxu1 %v9230_v0  ;;  %8098 = vmatprep.mubr.msk.bf16.mxu1 %vm9231_vm0, %v9230_v0  ;;  %s11161_s26 = sld [smem:[#allocation33_spill]]  ;;  %v8295_v32 = vld [vmem:[%s11095_s4 + $0x18] sm:$0xff]   ;;  %v8296_v34 = vld [vmem:[%s11095_s4 + $0x10] sm:$0xff]   ;;  %v8297_v35 = vld [vmem:[%s11095_s4 + $0x8] sm:$0xff]   ;;  %vm1040_vm1 = vcmask 523264   ;;  %vm1096_vm2 = vcmask 1041408  }
  0x9a   : > { %s704_s2 = scalar_select %p703_p0, %s9357_s1, 1  ;;  %v8298_v36 = vld [vmem:[%s11095_s4] sm:$0xff]   ;;  %v6975_v38 = vld [vmem:[#allocation6] ss:$0 sm:$0xff]  ;;  %v8302_v52 = vld [vmem:[#allocation9 + $0xb0] sm:$0xff]   ;;  %vm1092_vm3 = vcmask 31744  }
  0x9b   : > { %v8300_v51 = vld [vmem:[#allocation9 + $0xb8] sm:$0xff]   ;;  %v8305_v53 = vld [vmem:[#allocation9 + $0xa8] sm:$0xff]   ;;  %v8304_v62 = vld [vmem:[#allocation9 + $0x70] sm:$0xff]   ;;  %vm1610_vm4 = vcmask 1043456   ;;  %vm1603_vm5 = vcmask 64512   ;;  %vm1742_vm6 = vcmask 1046528  }
  0x9c   : > { %s6972_s0 = sshll.u32 %s704_s2, 2  ;;  %v8301_v56 = vld [vmem:[#allocation9 + $0x78] sm:$0xff]   ;;  %vm1710_vm7 = vsmask.f32 7424  ;;  %vm2427_vm8 = vcmask 130048   ;;  %vm3918_vm9 = vcmask 261120  }
  0x9d   : > { %v8303_v61 = vld [vmem:[#allocation9 + $0x38] sm:$0xff]   ;;  %s700_s23 = sand.u32 1, %s9208_s30   ;;  %s7610_s27 = sshll.u32 %s9357_s1, 10 }
  0x9e   : > { %v8269_v1 = vld [vmem:[%s11160_s22 + $0x78] sm:$0xff]   ;;  %v8272_v4 = vld [vmem:[%s11160_s22 + $0x70] sm:$0xff]   ;;  %v8275_v7 = vld [vmem:[%s11160_s22 + $0x68] sm:$0xff]   ;;  %s11163_s20 = sld [smem:[#allocation38_spill]]  ;;  %s11051_s29 = scalar_lea.sflag [#allocation8], %s700_s23 }
  0x9f   : > { %v8270_v2 = vld [vmem:[%s11160_s22 + $0x38] sm:$0xff]   ;;  %7611 = vmatprep.subr.bf16.mxu0 %v8269_v1  ;;  %v8273_v5 = vld [vmem:[%s11160_s22 + $0x30] sm:$0xff]   ;;  %v8276_v8 = vld [vmem:[%s11160_s22 + $0x28] sm:$0xff]   ;;  %s706_s19 = scalar_lea.vmem %s11161_s26, %s6972_s0  ;;  %s11162_s0 = sld [smem:[#allocation36_spill]] }
  0xa0   : > { %v8271_v3 = vld [vmem:[%s11160_s22 + $0xb8] sm:$0xff]   ;;  %7612 = vmatpush3.bf16.msra.mxu0 %v8270_v2  ;;  %v8274_v6 = vld [vmem:[%s11160_s22 + $0xb0] sm:$0xff]   ;;  %v8277_v9 = vld [vmem:[%s11160_s22 + $0xa8] sm:$0xff]   ;;  %p11165_p5 = scmp.ne.s32.totalorder %s11137_s3, 0  ;;  %s9233_s24 = smov [#allocation20]  }
  0xa1   : > { %8083 = vmatpush3.bf16.msra.mxu1 %v8271_v3  ;;  %7613 = vmatprep.subr.bf16.mxu0 %v8272_v4  ;;  %v8278_v10 = vld [vmem:[%s11160_s22 + $0x60] sm:$0xff]   ;;  %v8281_v13 = vld [vmem:[%s11160_s22 + $0x58] sm:$0xff]   ;;  %v8284_v16 = vld [vmem:[%s11160_s22 + $0x50] sm:$0xff]   ;;  %s9140_s28 = sshll.u32 %s9233_s24, 4  ;;  %s9141_s28 = int_to_ptr.vmem [resolvable:$false] %s9140_s28 }
  0xa2   : > { %8084 = vmatprep.subr.bf16.mxu1 %v9230_v0  ;;  %v8279_v11 = vld [vmem:[%s11160_s22 + $0x20] sm:$0xff]   ;;  %v8282_v14 = vld [vmem:[%s11160_s22 + $0x18] sm:$0xff]   ;;  %v8285_v17 = vld [vmem:[%s11160_s22 + $0x10] sm:$0xff]  }
  0xa3   : > { %v8280_v12 = vld [vmem:[%s11160_s22 + $0xa0] sm:$0xff]   ;;  %v8283_v15 = vld [vmem:[%s11160_s22 + $0x98] sm:$0xff]   ;;  %v8286_v18 = vld [vmem:[%s11160_s22 + $0x90] sm:$0xff]  }
  0xa4   : > { %7614 = vmatpush3.bf16.msra.mxu0 %v8273_v5  ;;  %v8287_v19 = vld [vmem:[%s11160_s22 + $0x48] sm:$0xff]   ;;  %v8290_v22 = vld [vmem:[%s11160_s22 + $0x40] sm:$0xff]   ;;  %s11164_s2 = smov %s11163_s20  ;;  %s11043_s21 = scalar_lea.hbm %s11163_s20, %s7610_s27 }
  0xa5   : > { %8085 = vmatpush3.bf16.msra.mxu1 %v8274_v6  ;;  %7615 = vmatprep.subr.bf16.mxu0 %v8275_v7  ;;  %v8288_v20 = vld [vmem:[%s11160_s22 + $0x8] sm:$0xff]   ;;  %v8293_v23 = vld [vmem:[%s706_s19] ss:$0 sps:$4 sm:$0x77]   ;;  %v8311_v6 = vld [vmem:[#allocation9 + $0x98] sm:$0xff]  }
  0xa6   : > { %8086 = vmatprep.subr.bf16.mxu1 %v9230_v0  ;;  %v8289_v21 = vld [vmem:[%s11160_s22 + $0x88] sm:$0xff]   ;;  %v8291_v24 = vld [vmem:[%s11160_s22] sm:$0xff]   ;;  %v715_v26 = vshrl.u32 %v8293_v23, 16  ;;  %v717_v27 = vshll.u32 %v8293_v23, 16 }
  0xa7   : > { %v8292_v25 = vld [vmem:[%s11160_s22 + $0x80] sm:$0xff]   ;;  %v8306_v1 = vld [vmem:[#allocation9 + $0x30] sm:$0xff]  }
  0xa8   : > { %7616 = vmatpush3.bf16.msra.mxu0 %v8276_v8  ;;  %v8294_v28 = vld [vmem:[%s706_s19] ss:$0 sps:$4 sm:$0x66]   ;;  %v719_v29 = vrot.slane %v717_v27, 1  ;;  %v8307_v2 = vld [vmem:[#allocation9 + $0x68] sm:$0xff]   ;;  %v8313_v8 = vld [vmem:[#allocation9 + $0x58] sm:$0xff]  }
  0xa9   : > { %8087 = vmatpush3.bf16.msra.mxu1 %v8277_v9  ;;  %7617 = vmatprep.subr.bf16.mxu0 %v8278_v10  ;;  %v725_v30 = vrot.slane %v8294_v28, 1  ;;  %v708_v31 = vld [vmem:[%s706_s19] sm:$0x3]  ;;  %v8309_v4 = vld [vmem:[#allocation9 + $0x28] sm:$0xff]   ;;  %v8314_v9 = vld [vmem:[#allocation9 + $0x90] sm:$0xff]  }
  0xaa   : > { %8088 = vmatprep.subr.bf16.mxu1 %v9230_v0  ;;  %v720_v33 = vor.u32 %v719_v29, %v715_v26  ;;  %v8299_v59 = vld [vmem:[%s11162_s0] sm:$0x1f]   ;;  %v8315_v10 = vld [vmem:[#allocation9 + $0x18] sm:$0xff]   ;;  %s6971_s0 = sshll.u32 %s700_s23, 6 }
  0xab   : > { %v8308_v3 = vld [vmem:[#allocation9 + $0xa0] sm:$0xff]   ;;  %s11018_s25 = scalar_lea.vmem [#allocation20], %s6971_s0  ;;  %s9142_s0 = scalar_lea.vmem %s9141_s28, 2048 }
  0xac   : > { %7618 = vmatpush3.bf16.msra.mxu0 %v8279_v11  ;;  %958 = vmatprep.mubr.bf16.mxu0 %v720_v33  ;;  %v8310_v5 = vld [vmem:[#allocation9 + $0x60] sm:$0xff]   ;;  %v8316_v11 = vld [vmem:[#allocation9 + $0x50] sm:$0xff]   ;;  %s6810_s5 = sshll.u32 %s11018_s25, 4  ;;  %s11045_s5 = int_to_ptr.vmem [resolvable:$true] %s6810_s5 }
  0xad   : > { %8089 = vmatpush3.bf16.msra.mxu1 %v8280_v12  ;;  %7619 = vmatprep.subr.bf16.mxu0 %v8281_v13  ;;  %v8312_v7 = vld [vmem:[#allocation9 + $0x20] sm:$0xff]   ;;  %v8317_v12 = vld [vmem:[#allocation9 + $0x88] sm:$0xff]   ;;  %v8318_v13 = vld [vmem:[#allocation9 + $0x10] sm:$0xff]   ;;  %s9136_s1 = scalar_lea.vmem %s11045_s5, 1024  ;;  %p9143_p13 = scmp.lt.s32.totalorder %s11045_s5, %s9141_s28 }
  0xae   : > { %8090 = vmatprep.subr.bf16.mxu1 %v9230_v0  ;;  %p9137_p1 = scmp.ne.s32.totalorder %s11045_s5, %s9136_s1  ;;  %p9144_p3 = scmp.lt.s32.totalorder %s9142_s0, %s9136_s1 }
  0xb0   : > { %7620 = vmatpush3.bf16.msra.mxu0 %v8282_v14  ;;  %v8319_v14 = vld [vmem:[#allocation9 + $0x48] sm:$0xff]   ;;  %p9138_p6 = pnand %p9137_p1, %p11165_p5  ;;  %p9145_p2 = por %p9144_p3, %p9143_p13 }
  0xb1   : > { %8091 = vmatpush3.bf16.msra.mxu1 %v8283_v15  ;;  %7621 = vmatprep.subr.bf16.mxu0 %v8284_v16  ;;  %v8320_v15 = vld [vmem:[#allocation9 + $0x80] sm:$0xff]   ;;  %v8321_v16 = vld [vmem:[#allocation9 + $0x8] sm:$0xff]  }
  0xb2   : > { %8092 = vmatprep.subr.bf16.mxu1 %v9230_v0  ;;  %p9139_p10 = pneg %p9138_p6 }
  0xb4   : > { %7622 = vmatpush3.bf16.msra.mxu0 %v8285_v17  ;;  %v8323_v17 = vld [vmem:[#allocation9 + $0x40] sm:$0xff]   ;;  %p9146_p4 = pnand %p9145_p2, %p9139_p10 }
  0xb5   : > { %8093 = vmatpush3.bf16.msra.mxu1 %v8286_v18  ;;  %7623 = vmatprep.subr.bf16.mxu0 %v8287_v19  ;;  %v8324_v18 = vld [vmem:[#allocation9] sm:$0xff]  }
  0xb6   : > { %8094 = vmatprep.subr.bf16.mxu1 %v9230_v0  ;;  %v8328_v19 = vld [vmem:[#allocation12 + $0x74] ss:$8 sps:$4 sm:$0xff]  }
  0xb8   : > { %7624 = vmatpush3.bf16.msra.mxu0 %v8288_v20 }
  0xb9   : > { %8095 = vmatpush3.bf16.msra.mxu1 %v8289_v21  ;;  %7625 = vmatprep.subr.bf16.mxu0 %v8290_v22 }
  0xba   : > { %8096 = vmatprep.subr.bf16.mxu1 %v9230_v0 }
  0xbc   : > { %7626 = vmatpush3.bf16.msra.mxu0 %v8291_v24 }
  0xbd   : > { %8097 = vmatpush3.bf16.msra.mxu1 %v8292_v25  ;;  %8102 = vmatprep.subr.bf16.mxu0 %v9230_v0 }
  0xbe   : > { %8114 = vmatprep.subr.bf16.mxu1 %v9230_v0 }
  0xbf   : > { %959 = vmatmul.mubr.bf16.vlgmr.msra.gmra.mxu0 %v708_v31 }
  0xc0   : > { %8099 = vmatmul.mubr.bf16.vlgmr.msra.gmra.mxu1 %v725_v30  ;;  %8103 = vmatpush3.bf16.msra.mxu0 %v8295_v32 }
  0xc1   : > { %8104 = vmatprep.subr.bf16.mxu0 %v9230_v0  ;;  %8110 = vmatprep.mubr.msk.bf16.mxu0 %vm9231_vm0, %v9230_v0 }
  0xc2   : > { %8116 = vmatprep.mubr.msk.bf16.mxu1 %vm9231_vm0, %v9230_v0 }
  0xc4   : > { %8105 = vmatpush3.bf16.msra.mxu0 %v8296_v34 }
  0xc5   : > { %8106 = vmatprep.subr.bf16.mxu0 %v9230_v0 }
  0xc8   : > { %8107 = vmatpush3.bf16.msra.mxu0 %v8297_v35  ;;  %v8326_v35 = vld [vmem:[#allocation12 + $0x70] ss:$8 sps:$4 sm:$0xff]  }
  0xc9   : > { %8108 = vmatprep.subr.bf16.mxu0 %v9230_v0 }
  0xcc   : > { %8109 = vmatpush3.bf16.msra.mxu0 %v8298_v36  ;;  %v8331_v36 = vld [vmem:[#allocation12 + $0x64] ss:$8 sps:$4 sm:$0xff]  }
  0xcd   : > { %8120 = vmatprep.subr.bf16.mxu0 %v9230_v0 }
 0x17f   : > { %v7627_v37 = vpop.f32.mrf.mxu0 }
 0x180   : > { %v1000_v39 = vpop.f32.mrf.mxu1 }
 0x181   : > { %v7628_v40 = vpop.f32.mrf.mxu0 }
 0x182   : > { %v7629_v41 = vadd.f32 %v7628_v40, %v7627_v37  ;;  %v8100_v42 = vpop.f32.mrf.mxu1  ;;  %v8329_v37 = vld [vmem:[#allocation12 + $0x60] ss:$8 sps:$4 sm:$0xff]   ;;  %v8337_v40 = vld [vmem:[#allocation12 + $0x44] ss:$8 sps:$4 sm:$0xff]  }
 0x183   : > { %v7630_v43 = vpop.f32.mrf.mxu0  ;;  %v8340_v42 = vld [vmem:[#allocation12 + $0x34] ss:$8 sps:$4 sm:$0xff]  }
 0x184   : > { %v961_v44 = vadd.f32 %v7629_v41, %v6975_v38  ;;  %v1003_v45 = vpop.f32.mrf.mxu1  ;;  %v8334_v38 = vld [vmem:[#allocation12 + $0x54] ss:$8 sps:$4 sm:$0xff]   ;;  %v8335_v41 = vld [vmem:[#allocation12 + $0x40] ss:$8 sps:$4 sm:$0xff]   ;;  %v8338_v43 = vld [vmem:[#allocation12 + $0x30] ss:$8 sps:$4 sm:$0xff]  }
 0x185   : > { %v7631_v46 = vpop.f32.mrf.mxu0  ;;  %v8341_v45 = vld [vmem:[#allocation12 + $0x20] ss:$8 sps:$4 sm:$0xff]  }
 0x186   : > { %v1001_v47 = vadd.f32 %v1000_v39, %v961_v44  ;;  %v8101_v48 = vpop.f32.mrf.mxu1  ;;  %v8332_v39 = vld [vmem:[#allocation12 + $0x50] ss:$8 sps:$4 sm:$0xff]   ;;  %v8343_v44 = vld [vmem:[#allocation12 + $0x24] ss:$8 sps:$4 sm:$0xff]   ;;  %v8346_v46 = vld [vmem:[#allocation12 + $0x14] ss:$8 sps:$4 sm:$0xff]  }
 0x187   : > { %v8349_v48 = vld [vmem:[#allocation12 + $0x4] ss:$8 sps:$4 sm:$0xff]  }
 0x188   : > { %v1006_v49 = vmax.f32 %v1001_v47, 0.0  ;;  %v8344_v47 = vld [vmem:[#allocation12 + $0x10] ss:$8 sps:$4 sm:$0xff]  }
 0x18a   : > { %v1007_v50 = vpack.c.bf16 %v1006_v49, %v1006_v49  ;;  %v8347_v49 = vld [vmem:[#allocation12] ss:$8 sps:$4 sm:$0xff]  }
 0x18c   : > { %8111 = vmatmul.mubr.msk.bf16.vlgmr.msra.gmra.mxu0 %vm1040_vm1, %v1007_v50  ;;  %v9232_v50 = vmov 0  }
 0x18d   : > { %8136 = vmatprep.mubr.msk.bf16.mxu0 %vm9231_vm0, %v9230_v0  ;;  %8121 = vmatpush3.bf16.msra.mxu0 %v8300_v51 }
 0x18e   : > { %8122 = vmatprep.subr.bf16.mxu0 %v9230_v0 }
 0x191   : > { %8123 = vmatpush3.bf16.msra.mxu0 %v8302_v52 }
 0x192   : > { %8124 = vmatprep.subr.bf16.mxu0 %v9230_v0 }
 0x195   : > { %8125 = vmatpush3.bf16.msra.mxu0 %v8305_v53 }
 0x196   : > { %8126 = vmatprep.subr.bf16.mxu0 %v9230_v0 }
 0x199   : > { %8127 = vmatpush3.bf16.msra.mxu0 %v8308_v3  ;;  %v8359_v3 = vld [vmem:[#allocation14 + $0xb8] sm:$0xff]  }
 0x19a   : > { %8128 = vmatprep.subr.bf16.mxu0 %v9230_v0 }
 0x19d   : > { %8129 = vmatpush3.bf16.msra.mxu0 %v8311_v6 }
 0x19e   : > { %8130 = vmatprep.subr.bf16.mxu0 %v9230_v0 }
 0x1a1   : > { %8131 = vmatpush3.bf16.msra.mxu0 %v8314_v9 }
 0x1a2   : > { %8132 = vmatprep.subr.bf16.mxu0 %v9230_v0 }
 0x1a5   : > { %8133 = vmatpush3.bf16.msra.mxu0 %v8317_v12 }
 0x1a6   : > { %8134 = vmatprep.subr.bf16.mxu0 %v9230_v0 }
 0x1a9   : > { %8135 = vmatpush3.bf16.msra.mxu0 %v8320_v15  ;;  %v8355_v15 = vld [vmem:[#allocation14 + $0x30] sm:$0xff]  }
 0x24c   : > { %v1078_v54 = vpop.f32.mrf.mxu0 }
 0x24d   : > { %v1084_v55 = vpack.c.bf16 %v1078_v54, %v1078_v54 }
 0x24e   : > { %v8112_v57 = vpop.f32.mrf.mxu0 }
 0x24f   : > { %v1098_v58 = vsel %vm1096_vm2, %v1084_v55, 0 }
 0x250   : > { %v1081_v60 = vpop.f32.mrf.mxu0  ;;  %8115 = vmatpush3.bf16.msra.mxu1 %v1098_v58 }
 0x251   : > { %7649 = vmatprep.subr.bf16.mxu1 %v8301_v56  ;;  %v7011_v56 = vld [vmem:[#allocation11] ss:$0 sm:$0xff] }
 0x252   : > { %v8113_v63 = vpop.f32.mrf.mxu0 }
 0x253   : > { %8117 = vmatmul.mubr.msk.bf16.vlgmr.msra.gmra.mxu1 %vm1092_vm3, %v8299_v59 }
 0x254   : > { %7650 = vmatpush3.bf16.msra.mxu1 %v8303_v61 }
 0x255   : > { %7651 = vmatprep.subr.bf16.mxu1 %v8304_v62 }
 0x258   : > { %7652 = vmatpush3.bf16.msra.mxu1 %v8306_v1 }
 0x259   : > { %7653 = vmatprep.subr.bf16.mxu1 %v8307_v2  ;;  %v8358_v2 = vld [vmem:[#allocation14 + $0xf8] sm:$0xff]  }
 0x25c   : > { %7654 = vmatpush3.bf16.msra.mxu1 %v8309_v4 }
 0x25d   : > { %7655 = vmatprep.subr.bf16.mxu1 %v8310_v5 }
 0x260   : > { %7656 = vmatpush3.bf16.msra.mxu1 %v8312_v7 }
 0x261   : > { %7657 = vmatprep.subr.bf16.mxu1 %v8313_v8  ;;  %v8352_v8 = vld [vmem:[#allocation14 + $0x78] sm:$0xff]  }
 0x264   : > { %7658 = vmatpush3.bf16.msra.mxu1 %v8315_v10 }
 0x265   : > { %7659 = vmatprep.subr.bf16.mxu1 %v8316_v11  ;;  %v8350_v11 = vld [vmem:[%s11098_s7] sm:$0xff]  }
 0x268   : > { %7660 = vmatpush3.bf16.msra.mxu1 %v8318_v13  ;;  %v8353_v13 = vld [vmem:[#allocation14 + $0x38] sm:$0xff]  }
 0x269   : > { %7661 = vmatprep.subr.bf16.mxu1 %v8319_v14  ;;  %v8354_v14 = vld [vmem:[#allocation14 + $0x70] sm:$0xff]  }
 0x26c   : > { %7662 = vmatpush3.bf16.msra.mxu1 %v8321_v16  ;;  %v8356_v16 = vld [vmem:[#allocation14 + $0x68] sm:$0xff]  }
 0x26d   : > { %7663 = vmatprep.subr.bf16.mxu1 %v8323_v17  ;;  %v8351_v17 = vld [vmem:[%s11098_s7 + $0x8] ss:$0 sps:$4 sm:$0x11]  }
 0x270   : > { %7664 = vmatpush3.bf16.msra.mxu1 %v8324_v18  ;;  %v8357_v18 = vld [vmem:[#allocation14 + $0x28] sm:$0xff]  }
 0x271   : > { %1549 = vmatprep.subr.bf16.mxu1 %v8328_v19  ;;  %v8360_v19 = vld [vmem:[#allocation14 + $0x60] sm:$0xff]  }
 0x313   : > { %v1134_v20 = vpop.f32.mrf.mxu1 }
 0x314   : > { %v7582_v21 = vpack.c.bf16 %v1134_v20, %v1134_v20  ;;  %v8361_v20 = vld [vmem:[#allocation14 + $0x20] sm:$0xff]  }
 0x315   : > { %v8118_v22 = vpop.f32.mrf.mxu1 }
 0x316   : > { %1149 = vst [vmem:[#allocation2] sm:$0xf] %v7582_v21  ;;  %v8364_v21 = vld [vmem:[#allocation14 + $0x58] sm:$0xff]  }
 0x317   : > { %v1137_v23 = vpop.f32.mrf.mxu1  ;;  %v8365_v22 = vld [vmem:[#allocation14 + $0x18] sm:$0xff]  }
 0x318   : > { %v7583_v24 = vpack.c.bf16 %v1137_v23, %v1137_v23  ;;  %v8368_v23 = vld [vmem:[#allocation14 + $0x50] sm:$0xff]  }
 0x319   : > { %v8119_v25 = vpop.f32.mrf.mxu1 }
 0x31a   : > { %1150 = vst [vmem:[#allocation2 + $0x4] sm:$0x1] %v7583_v24  ;;  %v8369_v24 = vld [vmem:[#allocation14 + $0x10] sm:$0xff]  }
 0x31b   : > { %v8362_v25 = vld [vmem:[#allocation14 + $0xf0] sm:$0xff]  }
 0x31d   : > { %v1153_v0 = vld [vmem:[#allocation2] sm:$0xe] }
 0x31e   : > { %v1151_v27 = vld [vmem:[#allocation2] sm:$0xf] }
 0x321   : > { %v1152_v26 = vld [vmem:[#allocation2 + $0x4] sm:$0x1] }
 0x322   : > { %v7010_v28 = vcombine.low %v1153_v0, %v1152_v26  ;;  %v7009_v29 = vcombine.low %v1151_v27, %v1152_v26  ;;  %v8363_v26 = vld [vmem:[#allocation14 + $0xb0] sm:$0xff]   ;;  %v8372_v0 = vld [vmem:[#allocation14 + $0x48] sm:$0xff]  }
 0x324   : > { %v1170_v30 = vrot.slane %v7010_v28, 1  ;;  %v1162_v31 = vshll.u32 %v7009_v29, 16  ;;  %v1160_v32 = vshrl.u32 %v7009_v29, 16  ;;  %v8366_v28 = vld [vmem:[#allocation14 + $0xe8] sm:$0xff]  }
 0x325   : > { %v8367_v29 = vld [vmem:[#allocation14 + $0xa8] sm:$0xff]  }
 0x326   : > { %8137 = vmatmul.mubr.bf16.vlgmr.msra.gmra.mxu0 %v1170_v30  ;;  %v1164_v33 = vrot.slane %v1162_v31, 1  ;;  %v8376_v30 = vld [vmem:[#allocation14 + $0x40] sm:$0xff]  }
 0x327   : > { %1649 = vmatprep.mubr.bf16.mxu0 %v9232_v50  ;;  %v8377_v31 = vld [vmem:[#allocation14] sm:$0xff]  }
 0x328   : > { %v1165_v34 = vor.u32 %v1164_v33, %v1160_v32  ;;  %v8370_v32 = vld [vmem:[#allocation14 + $0xe0] sm:$0xff]  }
 0x329   : > { %v8371_v33 = vld [vmem:[#allocation14 + $0xa0] sm:$0xff]  }
 0x32a   : > { %1403 = vmatprep.mubr.bf16.mxu1 %v1165_v34  ;;  %v8380_v34 = vld [vmem:[#allocation14 + $0x178] sm:$0xff]  }
 0x32b   : > { %1404 = vmatmul.mubr.bf16.vlgmr.msra.gmra.mxu1 %v1151_v27  ;;  %v8373_v27 = vld [vmem:[#allocation14 + $0x8] sm:$0xff]  }
 0x32c   : > { %1550 = vmatpush1.bf16.msra.mxu1 %v8326_v35  ;;  %1581 = vmatprep.mubr.bf16.mxu1 %v9232_v50  ;;  %v8374_v35 = vld [vmem:[#allocation14 + $0xd8] sm:$0xff]  }
 0x32d   : > { %1551 = vmatprep.subr.bf16.mxu1 %v8331_v36  ;;  %v8375_v36 = vld [vmem:[#allocation14 + $0x98] sm:$0xff]  }
 0x330   : > { %1552 = vmatpush1.bf16.msra.mxu1 %v8329_v37  ;;  %v8378_v37 = vld [vmem:[#allocation14 + $0xd0] sm:$0xff]  }
 0x331   : > { %1553 = vmatprep.subr.bf16.mxu1 %v8334_v38  ;;  %v8379_v38 = vld [vmem:[#allocation14 + $0x90] sm:$0xff]  }
 0x334   : > { %1554 = vmatpush1.bf16.msra.mxu1 %v8332_v39  ;;  %v8382_v39 = vld [vmem:[#allocation14 + $0xc8] sm:$0xff]  }
 0x335   : > { %1555 = vmatprep.subr.bf16.mxu1 %v8337_v40  ;;  %v8383_v40 = vld [vmem:[#allocation14 + $0x88] sm:$0xff]  }
 0x338   : > { %1556 = vmatpush1.bf16.msra.mxu1 %v8335_v41  ;;  %v8386_v41 = vld [vmem:[#allocation14 + $0xc0] sm:$0xff]  }
 0x339   : > { %1557 = vmatprep.subr.bf16.mxu1 %v8340_v42  ;;  %v8387_v42 = vld [vmem:[#allocation14 + $0x80] sm:$0xff]  }
 0x33c   : > { %1558 = vmatpush1.bf16.msra.mxu1 %v8338_v43 }
 0x33d   : > { %1559 = vmatprep.subr.bf16.mxu1 %v8343_v44 }
 0x340   : > { %1560 = vmatpush1.bf16.msra.mxu1 %v8341_v45 }
 0x341   : > { %1561 = vmatprep.subr.bf16.mxu1 %v8346_v46 }
 0x344   : > { %1562 = vmatpush1.bf16.msra.mxu1 %v8344_v47 }
 0x345   : > { %1563 = vmatprep.subr.bf16.mxu1 %v8349_v48 }
 0x348   : > { %1564 = vmatpush1.bf16.msra.mxu1 %v8347_v49 }
 0x349   : > { %7702 = vmatprep.subr.bf16.mxu1 %v8358_v2  ;;  %v8392_v2 = vld [vmem:[#allocation14 + $0x160] sm:$0xff]  }
 0x3e6   : > { %v1445_v51 = vpop.f32.mrf.mxu0 }
 0x3e8   : > { %v8138_v52 = vpop.f32.mrf.mxu0 }
 0x3ea   : > { %v1448_v53 = vpop.f32.mrf.mxu0 }
 0x3eb   : > { %v7665_v54 = vpop.f32.mrf.mxu1  ;;  %v8381_v53 = vld [vmem:[#allocation14 + $0x138] sm:$0xff]  }
 0x3ec   : > { %v8139_v55 = vpop.f32.mrf.mxu0 }
 0x3ed   : > { %v7666_v57 = vpop.f32.mrf.mxu1  ;;  %v8384_v55 = vld [vmem:[#allocation14 + $0x170] sm:$0xff]  }
 0x3ee   : > { %v7667_v58 = vadd.f32 %v7666_v57, %v7665_v54 }
 0x3ef   : > { %v7668_v59 = vpop.f32.mrf.mxu1 }
 0x3f0   : > { %v1406_v60 = vadd.f32 %v7667_v58, %v7011_v56  ;;  %v8385_v58 = vld [vmem:[#allocation14 + $0x130] sm:$0xff]   ;;  %v8390_v59 = vld [vmem:[#allocation14 + $0x168] sm:$0xff]  }
 0x3f1   : > { %v7669_v61 = vpop.f32.mrf.mxu1 }
 0x3f2   : > { %v1446_v62 = vadd.f32 %v1445_v51, %v1406_v60 }
 0x3f4   : > { %v1451_v63 = vmax.f32 %v1446_v62, 0.0 }
 0x3f6   : > { %v1452_v1 = vpack.c.bf16 %v1451_v63, %v1451_v63  ;;  %v8391_v63 = vld [vmem:[#allocation14 + $0x128] sm:$0xff]  }
 0x3f8   : > { %1582 = vmatmul.mubr.bf16.vlgmr.msra.gmra.mxu1 %v1452_v1 }
 0x3f9   : > { %7703 = vmatpush3.bf16.msra.mxu1 %v8359_v3 }
 0x3fa   : > { %7704 = vmatprep.subr.bf16.mxu1 %v8362_v25 }
 0x3fd   : > { %7705 = vmatpush3.bf16.msra.mxu1 %v8363_v26  ;;  %v8397_v26 = vld [vmem:[#allocation14 + $0x110] sm:$0xff]  }
 0x3fe   : > { %7706 = vmatprep.subr.bf16.mxu1 %v8366_v28  ;;  %v8400_v28 = vld [vmem:[#allocation14 + $0x140] sm:$0xff]  }
 0x401   : > { %7707 = vmatpush3.bf16.msra.mxu1 %v8367_v29  ;;  %v8401_v29 = vld [vmem:[#allocation14 + $0x100] sm:$0xff]  }
 0x402   : > { %7708 = vmatprep.subr.bf16.mxu1 %v8370_v32 }
 0x405   : > { %7709 = vmatpush3.bf16.msra.mxu1 %v8371_v33 }
 0x406   : > { %7710 = vmatprep.subr.bf16.mxu1 %v8374_v35  ;;  %v8402_v35 = vld [vmem:[#allocation17 + $0x70] ss:$8 sps:$4 sm:$0xff]  }
 0x409   : > { %7711 = vmatpush3.bf16.msra.mxu1 %v8375_v36  ;;  %v8407_v36 = vld [vmem:[#allocation17 + $0x64] ss:$8 sps:$4 sm:$0xff]  }
 0x40a   : > { %7712 = vmatprep.subr.bf16.mxu1 %v8378_v37  ;;  %v8405_v37 = vld [vmem:[#allocation17 + $0x60] ss:$8 sps:$4 sm:$0xff]  }
 0x40d   : > { %7713 = vmatpush3.bf16.msra.mxu1 %v8379_v38  ;;  %v8410_v38 = vld [vmem:[#allocation17 + $0x54] ss:$8 sps:$4 sm:$0xff]  }
 0x40e   : > { %7714 = vmatprep.subr.bf16.mxu1 %v8382_v39  ;;  %v8408_v39 = vld [vmem:[#allocation17 + $0x50] ss:$8 sps:$4 sm:$0xff]  }
 0x411   : > { %7715 = vmatpush3.bf16.msra.mxu1 %v8383_v40  ;;  %v8413_v40 = vld [vmem:[#allocation17 + $0x44] ss:$8 sps:$4 sm:$0xff]  }
 0x412   : > { %7716 = vmatprep.subr.bf16.mxu1 %v8386_v41  ;;  %v8411_v41 = vld [vmem:[#allocation17 + $0x40] ss:$8 sps:$4 sm:$0xff]  }
 0x415   : > { %7717 = vmatpush3.bf16.msra.mxu1 %v8387_v42  ;;  %v8416_v42 = vld [vmem:[#allocation17 + $0x34] ss:$8 sps:$4 sm:$0xff]  }
 0x4b8   : > { %v1583_v4 = vpop.f32.mrf.mxu1 }
 0x4b9   : > { %v1590_v5 = vpack.c.bf16 %v1583_v4, %v1583_v4 }
 0x4ba   : > { %v1585_v6 = vpop.f32.mrf.mxu1 }
 0x4bb   : > { %v1591_v7 = vpack.c.bf16 %v1585_v6, %v1585_v6  ;;  %v1612_v10 = vsel %vm1610_vm4, %v1590_v5, 0 }
 0x4bc   : > { %v1587_v9 = vpop.f32.mrf.mxu1 }
 0x4bd   : > { %7054 = vmatprep.subr.msk.bf16.mxu0 %vm1610_vm4, %v1591_v7  ;;  %v8393_v9 = vld [vmem:[#allocation14 + $0x120] sm:$0xff]  }
 0x4be   : > { %v1588_v12 = vpop.f32.mrf.mxu1  ;;  %1632 = vmatpush1.bf16.msra.mxu0 %v1612_v10 }
 0x4bf   : > { %7680 = vmatprep.subr.bf16.mxu0 %v8352_v8  ;;  %v8394_v12 = vld [vmem:[#allocation14 + $0x158] sm:$0xff]  }
 0x4c1   : > { %7055 = vmatmul.mubr.msk.bf16.vlgmr.msra.gmra.mxu0 %vm1603_vm5, %v8350_v11 }
 0x4c2   : > { %1659 = vmatprep.mubr.bf16.mxu0 %v9232_v50  ;;  %7681 = vmatpush3.bf16.msra.mxu0 %v8353_v13 }
 0x4c3   : > { %7682 = vmatprep.subr.bf16.mxu0 %v8354_v14 }
 0x4c6   : > { %7683 = vmatpush3.bf16.msra.mxu0 %v8355_v15 }
 0x4c7   : > { %7684 = vmatprep.subr.bf16.mxu0 %v8356_v16 }
 0x4c9   : > { %7056 = vmatmul.mubr.msk.bf16.gmra.mxu0 %vm1603_vm5, %v8351_v17 }
 0x4ca   : > { %7685 = vmatpush3.bf16.msra.mxu0 %v8357_v18 }
 0x4cb   : > { %7686 = vmatprep.subr.bf16.mxu0 %v8360_v19 }
 0x4ce   : > { %7687 = vmatpush3.bf16.msra.mxu0 %v8361_v20 }
 0x4cf   : > { %7688 = vmatprep.subr.bf16.mxu0 %v8364_v21 }
 0x4d2   : > { %7689 = vmatpush3.bf16.msra.mxu0 %v8365_v22  ;;  %v8395_v22 = vld [vmem:[#allocation14 + $0x118] sm:$0xff]  }
 0x4d3   : > { %7690 = vmatprep.subr.bf16.mxu0 %v8368_v23  ;;  %v8396_v23 = vld [vmem:[#allocation14 + $0x150] sm:$0xff]  }
 0x4d6   : > { %7691 = vmatpush3.bf16.msra.mxu0 %v8369_v24 }
 0x4d7   : > { %7692 = vmatprep.subr.bf16.mxu0 %v8372_v0  ;;  %v8398_v0 = vld [vmem:[#allocation14 + $0x148] sm:$0xff]  }
 0x4da   : > { %7693 = vmatpush3.bf16.msra.mxu0 %v8373_v27  ;;  %v8399_v27 = vld [vmem:[#allocation14 + $0x108] sm:$0xff]  }
 0x4db   : > { %7694 = vmatprep.subr.bf16.mxu0 %v8376_v30 }
 0x4de   : > { %7695 = vmatpush3.bf16.msra.mxu0 %v8377_v31 }
 0x4df   : > { %7724 = vmatprep.subr.bf16.mxu0 %v8380_v34  ;;  %v8404_v34 = vld [vmem:[#allocation17 + $0x74] ss:$8 sps:$4 sm:$0xff]  }
 0x4e0   : > { %2364 = vmatprep.subr.bf16.mxu1 %v8404_v34 }
 0x581   : > { %v1651_v43 = vpop.f32.mrf.mxu0 }
 0x583   : > { %v1653_v44 = vpop.f32.mrf.mxu0 }
 0x584   : > { %v7584_v45 = vpack.c.bf16 %v1653_v44, %v1651_v43 }
 0x585   : > { %v1655_v46 = vpop.f32.mrf.mxu0 }
 0x586   : > { %1688 = vst [vmem:[#allocation3 + $0x10] sm:$0xff] %v7584_v45  ;;  %v8908_v51 = vpack.c.bf16 %v1655_v46, %v1651_v43  ;;  %v8414_v43 = vld [vmem:[#allocation17 + $0x30] ss:$8 sps:$4 sm:$0xff]   ;;  %v8417_v45 = vld [vmem:[#allocation17 + $0x20] ss:$8 sps:$4 sm:$0xff]  }
 0x587   : > { %v1657_v47 = vpop.f32.mrf.mxu0 }
 0x588   : > { %v9624_v48 = vpack.c.bf16 %v1657_v47, %v1655_v46  ;;  %v8909_v52 = vpack.c.bf16 %v1657_v47, %v1653_v44  ;;  %v1714_v1 = vshll.u32 %v8908_v51, 16  ;;  %v1712_v11 = vshrl.u32 %v8908_v51, 16  ;;  %v8419_v44 = vld [vmem:[#allocation17 + $0x24] ss:$8 sps:$4 sm:$0xff]   ;;  %v8422_v46 = vld [vmem:[#allocation17 + $0x14] ss:$8 sps:$4 sm:$0xff]  }
 0x589   : > { %v1661_v49 = vpop.f32.mrf.mxu0  ;;  %v8420_v47 = vld [vmem:[#allocation17 + $0x10] ss:$8 sps:$4 sm:$0xff]  }
 0x58a   : > { %2174 = vmatprep.mubr.bf16.mxu0 %v8909_v52  ;;  %v1726_v61 = vshll.u32 %v8909_v52, 16  ;;  %v1716_v8 = vrot.slane %v1714_v1, 1  ;;  %v1724_v10 = vshrl.u32 %v8909_v52, 16 }
 0x58b   : > { %v1663_v54 = vpop.f32.mrf.mxu0  ;;  %2175 = vmatmul.mubr.bf16.vlgmr.msra.gmra.mxu0 %v8908_v51 }
 0x58c   : > { %v7586_v56 = vpack.c.bf16 %v1663_v54, %v1661_v49  ;;  %7725 = vmatpush3.bf16.msra.mxu0 %v8381_v53  ;;  %v1728_v5 = vrot.slane %v1726_v61, 1  ;;  %v1717_v20 = vor.u32 %v1716_v8, %v1712_v11  ;;  %v8423_v49 = vld [vmem:[#allocation17] ss:$8 sps:$4 sm:$0xff]  }
 0x58d   : > { %v1665_v57 = vpop.f32.mrf.mxu0  ;;  %7726 = vmatprep.subr.bf16.mxu0 %v8384_v55  ;;  %v1694_v62 = vld [vmem:[#allocation3 + $0x10] sm:$0xee] }
 0x58e   : > { %1690 = vst [vmem:[#allocation3 + $0x8] sm:$0x11] %v7586_v56  ;;  %v7065_v3 = vcombine.high %v1694_v62, %v9624_v48  ;;  %v1729_v17 = vor.u32 %v1728_v5, %v1724_v10  ;;  %v7064_v30 = vcombine.low %v1694_v62, %v9624_v48  ;;  %v8425_v48 = vld [vmem:[#allocation17 + $0x4] ss:$8 sps:$4 sm:$0xff]  }
 0x58f   : > { %v1666_v60 = vpop.f32.mrf.mxu0 }
 0x590   : > { %7727 = vmatpush3.bf16.msra.mxu0 %v8385_v58  ;;  %v1746_v13 = vrot.slane %v7065_v3, 1  ;;  %v1743_v32 = vrot.slane %v7064_v30, 1  ;;  %v8483_v30 = vld [vmem:[%s11104_s13 + $0x100] ss:$8 sps:$4 sm:$0xff]  }
 0x591   : > { %7728 = vmatprep.subr.bf16.mxu0 %v8390_v59  ;;  %v7066_v59 = vld [vmem:[#allocation15] ss:$0 sm:$0xff] }
 0x594   : > { %7729 = vmatpush3.bf16.msra.mxu0 %v8391_v63 }
 0x595   : > { %v1693_v4 = vld [vmem:[#allocation3 + $0x8] sm:$0x11]  ;;  %7730 = vmatprep.subr.bf16.mxu0 %v8392_v2 }
 0x596   : > { %v7062_v6 = vcombine.low %v1693_v4, %v1693_v4  ;;  %v7063_v7 = vcombine.high %v1693_v4, %v1693_v4 }
 0x598   : > { %v1747_v14 = vrot.slane %v7063_v7, 1  ;;  %v1731_v15 = vshll.u32 %v7063_v7, 16  ;;  %v1719_v16 = vshll.u32 %v7062_v6, 16  ;;  %7731 = vmatpush3.bf16.msra.mxu0 %v8393_v9  ;;  %v1744_v31 = vrot.slane %v7062_v6, 1 }
 0x599   : > { %7732 = vmatprep.subr.bf16.mxu0 %v8394_v12 }
 0x59a   : > { %v1748_v18 = vsel %vm1742_vm6, %v1746_v13, %v1747_v14  ;;  %v1733_v19 = vrot.slane %v1731_v15, 1  ;;  %v1721_v21 = vrot.slane %v1719_v16, 1  ;;  %v1745_v33 = vsel %vm1742_vm6, %v1743_v32, %v1744_v31  ;;  %v8441_v16 = vld [vmem:[%s11104_s13 + $0x170] ss:$8 sps:$4 sm:$0xff]  }
 0x59b   : > { %2256 = vmatprep.mubr.bf16.mxu0 %v1748_v18  ;;  %v8449_v18 = vld [vmem:[%s11104_s13 + $0x164] ss:$8 sps:$4 sm:$0xff]  }
 0x59c   : > { %v1734_v24 = vsel %vm1710_vm7, %v1729_v17, %v1733_v19  ;;  %v1722_v25 = vsel %vm1710_vm7, %v1717_v20, %v1721_v21  ;;  %7733 = vmatpush3.bf16.msra.mxu0 %v8395_v22  ;;  %v8443_v17 = vld [vmem:[%s11104_s13 + $0x174] ss:$8 sps:$4 sm:$0xff]   ;;  %v8447_v19 = vld [vmem:[%s11104_s13 + $0x160] ss:$8 sps:$4 sm:$0xff]   ;;  %v8453_v21 = vld [vmem:[%s11104_s13 + $0x150] ss:$8 sps:$4 sm:$0xff]  }
 0x59d   : > { %2215 = vmatprep.mubr.bf16.mxu1 %v1734_v24  ;;  %7734 = vmatprep.subr.bf16.mxu0 %v8396_v23  ;;  %v8455_v20 = vld [vmem:[%s11104_s13 + $0x154] ss:$8 sps:$4 sm:$0xff]   ;;  %v8461_v22 = vld [vmem:[%s11104_s13 + $0x144] ss:$8 sps:$4 sm:$0xff]   ;;  %v8459_v23 = vld [vmem:[%s11104_s13 + $0x140] ss:$8 sps:$4 sm:$0xff]  }
 0x59e   : > { %2216 = vmatmul.mubr.bf16.vlgmr.msra.gmra.mxu1 %v1722_v25  ;;  %v8467_v24 = vld [vmem:[%s11104_s13 + $0x134] ss:$8 sps:$4 sm:$0xff]   ;;  %v8465_v25 = vld [vmem:[%s11104_s13 + $0x130] ss:$8 sps:$4 sm:$0xff]  }
 0x59f   : > { %2396 = vmatprep.mubr.bf16.mxu1 %v9232_v50  ;;  %2365 = vmatpush1.bf16.msra.mxu1 %v8402_v35 }
 0x5a0   : > { %7735 = vmatpush3.bf16.msra.mxu0 %v8397_v26  ;;  %2366 = vmatprep.subr.bf16.mxu1 %v8407_v36  ;;  %v8473_v26 = vld [vmem:[%s11104_s13 + $0x124] ss:$8 sps:$4 sm:$0xff]   ;;  %v8431_v36 = vld [vmem:[%s11104_s13 + $0x74] ss:$8 sps:$4 sm:$0xff]  }
 0x5a1   : > { %7736 = vmatprep.subr.bf16.mxu0 %v8398_v0  ;;  %v8471_v0 = vld [vmem:[%s11104_s13 + $0x120] ss:$8 sps:$4 sm:$0xff]  }
 0x5a3   : > { %2367 = vmatpush1.bf16.msra.mxu1 %v8405_v37 }
 0x5a4   : > { %7737 = vmatpush3.bf16.msra.mxu0 %v8399_v27  ;;  %2368 = vmatprep.subr.bf16.mxu1 %v8410_v38  ;;  %v8479_v27 = vld [vmem:[%s11104_s13 + $0x114] ss:$8 sps:$4 sm:$0xff]   ;;  %v8426_v38 = vld [vmem:[%s11102_s11] sm:$0xff]  }
 0x5a5   : > { %7738 = vmatprep.subr.bf16.mxu0 %v8400_v28  ;;  %v8477_v28 = vld [vmem:[%s11104_s13 + $0x110] ss:$8 sps:$4 sm:$0xff]  }
 0x5a7   : > { %2369 = vmatpush1.bf16.msra.mxu1 %v8408_v39  ;;  %v8429_v39 = vld [vmem:[%s11104_s13 + $0x70] ss:$8 sps:$4 sm:$0xff]  }
 0x5a8   : > { %7739 = vmatpush3.bf16.msra.mxu0 %v8401_v29  ;;  %2370 = vmatprep.subr.bf16.mxu1 %v8413_v40  ;;  %v8485_v29 = vld [vmem:[%s11104_s13 + $0x104] ss:$8 sps:$4 sm:$0xff]  }
 0x5a9   : > { %v8434_v40 = vld [vmem:[%s11104_s13 + $0x64] ss:$8 sps:$4 sm:$0xff]  }
 0x5ab   : > { %2257 = vmatmul.mubr.bf16.vlgmr.msra.gmra.mxu0 %v1745_v33  ;;  %2371 = vmatpush1.bf16.msra.mxu1 %v8411_v41  ;;  %v8432_v41 = vld [vmem:[%s11104_s13 + $0x60] ss:$8 sps:$4 sm:$0xff]  }
 0x5ac   : > { %2469 = vmatprep.mubr.bf16.mxu0 %v9232_v50  ;;  %2372 = vmatprep.subr.bf16.mxu1 %v8416_v42  ;;  %v8437_v42 = vld [vmem:[%s11104_s13 + $0x54] ss:$8 sps:$4 sm:$0xff]  }
 0x5af   : > { %2373 = vmatpush1.bf16.msra.mxu1 %v8414_v43  ;;  %v8427_v43 = vld [vmem:[%s11102_s11 + $0x8] sm:$0xff]  }
 0x5b0   : > { %2374 = vmatprep.subr.bf16.mxu1 %v8419_v44  ;;  %v8435_v44 = vld [vmem:[%s11104_s13 + $0x50] ss:$8 sps:$4 sm:$0xff]  }
 0x5b3   : > { %2375 = vmatpush1.bf16.msra.mxu1 %v8417_v45  ;;  %v8440_v45 = vld [vmem:[%s11104_s13 + $0x44] ss:$8 sps:$4 sm:$0xff]  }
 0x5b4   : > { %2376 = vmatprep.subr.bf16.mxu1 %v8422_v46  ;;  %v8438_v46 = vld [vmem:[%s11104_s13 + $0x40] ss:$8 sps:$4 sm:$0xff]  }
 0x5b7   : > { %2377 = vmatpush1.bf16.msra.mxu1 %v8420_v47  ;;  %v8446_v47 = vld [vmem:[%s11104_s13 + $0x34] ss:$8 sps:$4 sm:$0xff]  }
 0x5b8   : > { %2378 = vmatprep.subr.bf16.mxu1 %v8425_v48  ;;  %v8428_v48 = vld [vmem:[%s11102_s11 + $0x10] ss:$0 sps:$4 sm:$0x11]  }
 0x5bb   : > { %2379 = vmatpush1.bf16.msra.mxu1 %v8423_v49  ;;  %v8444_v49 = vld [vmem:[%s11104_s13 + $0x30] ss:$8 sps:$4 sm:$0xff]  }
 0x5bc   : > { %3270 = vmatprep.subr.bf16.mxu1 %v8443_v17  ;;  %v8510_v17 = vld [vmem:[%s11104_s13 + $0x80] ss:$8 sps:$4 sm:$0xff]  }
 0x64b   : > { %v7696_v51 = vpop.f32.mrf.mxu0 }
 0x64d   : > { %v7697_v53 = vpop.f32.mrf.mxu0 }
 0x64e   : > { %v7698_v58 = vadd.f32 %v7697_v53, %v7696_v51  ;;  %v8452_v51 = vld [vmem:[%s11104_s13 + $0x24] ss:$8 sps:$4 sm:$0xff]   ;;  %v8458_v53 = vld [vmem:[%s11104_s13 + $0x14] ss:$8 sps:$4 sm:$0xff]  }
 0x64f   : > { %v7699_v55 = vpop.f32.mrf.mxu0 }
 0x650   : > { %v2177_v2 = vadd.f32 %v7698_v58, %v7066_v59  ;;  %v8468_v58 = vld [vmem:[%s11104_s13 + $0xf0] ss:$8 sps:$4 sm:$0xff]  }
 0x651   : > { %v7700_v57 = vpop.f32.mrf.mxu0 }
 0x652   : > { %v7701_v62 = vadd.f32 %v7700_v57, %v7699_v55  ;;  %v8464_v55 = vld [vmem:[%s11104_s13 + $0x4] ss:$8 sps:$4 sm:$0xff]   ;;  %v8470_v57 = vld [vmem:[%s11104_s13 + $0xf4] ss:$8 sps:$4 sm:$0xff]  }
 0x654   : > { %v2180_v6 = vadd.f32 %v7701_v62, %v7066_v59  ;;  %v8476_v59 = vld [vmem:[%s11104_s13 + $0xe4] ss:$8 sps:$4 sm:$0xff]   ;;  %v8480_v62 = vld [vmem:[%s11104_s13 + $0xd0] ss:$8 sps:$4 sm:$0xff]  }
 0x65e   : > { %v7718_v52 = vpop.f32.mrf.mxu1 }
 0x660   : > { %v7719_v54 = vpop.f32.mrf.mxu1 }
 0x661   : > { %v7720_v63 = vadd.f32 %v7719_v54, %v7718_v52  ;;  %v8450_v52 = vld [vmem:[%s11104_s13 + $0x20] ss:$8 sps:$4 sm:$0xff]   ;;  %v8456_v54 = vld [vmem:[%s11104_s13 + $0x10] ss:$8 sps:$4 sm:$0xff]  }
 0x662   : > { %v7721_v56 = vpop.f32.mrf.mxu1 }
 0x663   : > { %v2218_v7 = vadd.f32 %v7720_v63, %v2177_v2  ;;  %v8488_v63 = vld [vmem:[%s11104_s13 + $0xc4] ss:$8 sps:$4 sm:$0xff]   ;;  %v8491_v2 = vld [vmem:[%s11104_s13 + $0x1f4] ss:$8 sps:$4 sm:$0xff]  }
 0x664   : > { %v7722_v60 = vpop.f32.mrf.mxu1 }
 0x665   : > { %v7723_v3 = vadd.f32 %v7722_v60, %v7721_v56  ;;  %v8462_v56 = vld [vmem:[%s11104_s13] ss:$8 sps:$4 sm:$0xff]  }
 0x666   : > { %v8474_v60 = vld [vmem:[%s11104_s13 + $0xe0] ss:$8 sps:$4 sm:$0xff]  }
 0x667   : > { %v2221_v9 = vadd.f32 %v7723_v3, %v2180_v6  ;;  %v8489_v3 = vld [vmem:[%s11104_s13 + $0x1f0] ss:$8 sps:$4 sm:$0xff]   ;;  %v8497_v6 = vld [vmem:[%s11104_s13 + $0x1e4] ss:$8 sps:$4 sm:$0xff]  }
 0x66b   : > { %v7740_v61 = vpop.f32.mrf.mxu0 }
 0x66d   : > { %v7741_v1 = vpop.f32.mrf.mxu0 }
 0x66e   : > { %v7742_v4 = vadd.f32 %v7741_v1, %v7740_v61  ;;  %v8482_v61 = vld [vmem:[%s11104_s13 + $0xd4] ss:$8 sps:$4 sm:$0xff]   ;;  %v8486_v1 = vld [vmem:[%s11104_s13 + $0xc0] ss:$8 sps:$4 sm:$0xff]  }
 0x66f   : > { %v7743_v5 = vpop.f32.mrf.mxu0 }
 0x670   : > { %v2259_v10 = vadd.f32 %v7742_v4, %v2218_v7  ;;  %v8494_v4 = vld [vmem:[%s11104_s13 + $0xb4] ss:$8 sps:$4 sm:$0xff]   ;;  %v8495_v7 = vld [vmem:[%s11104_s13 + $0x1e0] ss:$8 sps:$4 sm:$0xff]  }
 0x671   : > { %v7744_v8 = vpop.f32.mrf.mxu0 }
 0x672   : > { %v7745_v11 = vadd.f32 %v7744_v8, %v7743_v5  ;;  %v2265_v13 = vmax.f32 %v2259_v10, 0.0  ;;  %v8492_v5 = vld [vmem:[%s11104_s13 + $0xb0] ss:$8 sps:$4 sm:$0xff]   ;;  %v8500_v8 = vld [vmem:[%s11104_s13 + $0xa4] ss:$8 sps:$4 sm:$0xff]  }
 0x673   : > { %v8503_v10 = vld [vmem:[%s11104_s13 + $0x1d4] ss:$8 sps:$4 sm:$0xff]  }
 0x674   : > { %v2262_v12 = vadd.f32 %v7745_v11, %v2221_v9  ;;  %v8498_v9 = vld [vmem:[%s11104_s13 + $0xa0] ss:$8 sps:$4 sm:$0xff]   ;;  %v8501_v11 = vld [vmem:[%s11104_s13 + $0x1d0] ss:$8 sps:$4 sm:$0xff]  }
 0x676   : > { %v2266_v14 = vmax.f32 %v2262_v12, 0.0  ;;  %v8506_v12 = vld [vmem:[%s11104_s13 + $0x94] ss:$8 sps:$4 sm:$0xff]  }
 0x678   : > { %v2267_v15 = vpack.c.bf16 %v2266_v14, %v2265_v13  ;;  %v8504_v13 = vld [vmem:[%s11104_s13 + $0x90] ss:$8 sps:$4 sm:$0xff]   ;;  %v8509_v14 = vld [vmem:[%s11104_s13 + $0x1c4] ss:$8 sps:$4 sm:$0xff]  }
 0x67a   : > { %2397 = vmatmul.mubr.bf16.vlgmr.msra.gmra.mxu1 %v2267_v15  ;;  %v8507_v15 = vld [vmem:[%s11104_s13 + $0x1c0] ss:$8 sps:$4 sm:$0xff]  }
 0x67b   : > { %3271 = vmatpush1.bf16.msra.mxu1 %v8441_v16  ;;  %v8512_v16 = vld [vmem:[%s11104_s13 + $0x84] ss:$8 sps:$4 sm:$0xff]  }
 0x67c   : > { %3272 = vmatprep.subr.bf16.mxu1 %v8449_v18  ;;  %v8515_v18 = vld [vmem:[%s11104_s13 + $0x1b4] ss:$8 sps:$4 sm:$0xff]  }
 0x67f   : > { %3273 = vmatpush1.bf16.msra.mxu1 %v8447_v19  ;;  %v8513_v19 = vld [vmem:[%s11104_s13 + $0x1b0] ss:$8 sps:$4 sm:$0xff]  }
 0x680   : > { %3274 = vmatprep.subr.bf16.mxu1 %v8455_v20  ;;  %v8518_v20 = vld [vmem:[%s11104_s13 + $0x274] ss:$8 sps:$4 sm:$0xff]  }
 0x683   : > { %3275 = vmatpush1.bf16.msra.mxu1 %v8453_v21  ;;  %v8521_v21 = vld [vmem:[%s11104_s13 + $0x1a4] ss:$8 sps:$4 sm:$0xff]  }
 0x684   : > { %3276 = vmatprep.subr.bf16.mxu1 %v8461_v22  ;;  %v8519_v22 = vld [vmem:[%s11104_s13 + $0x1a0] ss:$8 sps:$4 sm:$0xff]  }
 0x687   : > { %3277 = vmatpush1.bf16.msra.mxu1 %v8459_v23  ;;  %v8527_v23 = vld [vmem:[%s11104_s13 + $0x194] ss:$8 sps:$4 sm:$0xff]  }
 0x688   : > { %3278 = vmatprep.subr.bf16.mxu1 %v8467_v24  ;;  %v8525_v24 = vld [vmem:[%s11104_s13 + $0x190] ss:$8 sps:$4 sm:$0xff]  }
 0x68b   : > { %3279 = vmatpush1.bf16.msra.mxu1 %v8465_v25  ;;  %v8533_v25 = vld [vmem:[%s11104_s13 + $0x184] ss:$8 sps:$4 sm:$0xff]  }
 0x68c   : > { %3280 = vmatprep.subr.bf16.mxu1 %v8473_v26  ;;  %v8531_v26 = vld [vmem:[%s11104_s13 + $0x180] ss:$8 sps:$4 sm:$0xff]  }
 0x68f   : > { %3281 = vmatpush1.bf16.msra.mxu1 %v8471_v0 }
 0x690   : > { %3282 = vmatprep.subr.bf16.mxu1 %v8479_v27 }
 0x693   : > { %3283 = vmatpush1.bf16.msra.mxu1 %v8477_v28 }
 0x694   : > { %3284 = vmatprep.subr.bf16.mxu1 %v8485_v29 }
 0x697   : > { %3285 = vmatpush1.bf16.msra.mxu1 %v8483_v30 }
 0x698   : > { %3286 = vmatprep.subr.bf16.mxu1 %v8491_v2  ;;  %v8534_v2 = vld [vmem:[%s11104_s13 + $0x240] ss:$8 sps:$4 sm:$0xff]  }
 0x69b   : > { %3287 = vmatpush2.bf16.msra.mxu1 %v8489_v3 }
 0x69c   : > { %3288 = vmatprep.subr.bf16.mxu1 %v8497_v6  ;;  %v8539_v6 = vld [vmem:[%s11104_s13 + $0x234] ss:$8 sps:$4 sm:$0xff]  }
 0x69f   : > { %3289 = vmatpush2.bf16.msra.mxu1 %v8495_v7 }
 0x6a0   : > { %3290 = vmatprep.subr.bf16.mxu1 %v8503_v10  ;;  %v8537_v10 = vld [vmem:[%s11104_s13 + $0x230] ss:$8 sps:$4 sm:$0xff]  }
 0x6a3   : > { %3291 = vmatpush2.bf16.msra.mxu1 %v8501_v11  ;;  %v8542_v11 = vld [vmem:[%s11104_s13 + $0x224] ss:$8 sps:$4 sm:$0xff]  }
 0x6a4   : > { %3292 = vmatprep.subr.bf16.mxu1 %v8509_v14 }
 0x6a7   : > { %3293 = vmatpush2.bf16.msra.mxu1 %v8507_v15  ;;  %v8540_v15 = vld [vmem:[%s11104_s13 + $0x220] ss:$8 sps:$4 sm:$0xff]  }
 0x6a8   : > { %3294 = vmatprep.subr.bf16.mxu1 %v8515_v18  ;;  %v8545_v18 = vld [vmem:[%s11104_s13 + $0x214] ss:$8 sps:$4 sm:$0xff]  }
 0x6ab   : > { %3295 = vmatpush2.bf16.msra.mxu1 %v8513_v19 }
 0x6ac   : > { %3296 = vmatprep.subr.bf16.mxu1 %v8521_v21 }
 0x6af   : > { %3297 = vmatpush2.bf16.msra.mxu1 %v8519_v22 }
 0x6b0   : > { %3298 = vmatprep.subr.bf16.mxu1 %v8527_v23  ;;  %v8543_v23 = vld [vmem:[%s11104_s13 + $0x210] ss:$8 sps:$4 sm:$0xff]  }
 0x6b3   : > { %3299 = vmatpush2.bf16.msra.mxu1 %v8525_v24 }
 0x6b4   : > { %3300 = vmatprep.subr.bf16.mxu1 %v8533_v25 }
 0x6b7   : > { %3301 = vmatpush2.bf16.msra.mxu1 %v8531_v26  ;;  %v8548_v26 = vld [vmem:[%s11104_s13 + $0x204] ss:$8 sps:$4 sm:$0xff]  }
 0x73a   : > { %v2398_v31 = vpop.f32.mrf.mxu1 }
 0x73c   : > { %v2400_v32 = vpop.f32.mrf.mxu1 }
 0x73e   : > { %v2402_v33 = vpop.f32.mrf.mxu1 }
 0x73f   : > { %v2407_v37 = vpack.c.bf16 %v2402_v33, %v2398_v31 }
 0x740   : > { %v2404_v34 = vpop.f32.mrf.mxu1 }
 0x741   : > { %v2408_v35 = vpack.c.bf16 %v2404_v34, %v2400_v32 }
 0x743   : > { %2451 = vmatprep.subr.bf16.mxu0 %v2408_v35  ;;  %v8516_v35 = vld [vmem:[%s11104_s13 + $0x270] ss:$8 sps:$4 sm:$0xff]  }
 0x744   : > { %2452 = vmatpush1.bf16.msra.mxu0 %v2407_v37  ;;  %v8524_v37 = vld [vmem:[%s11104_s13 + $0x264] ss:$8 sps:$4 sm:$0xff]  }
 0x745   : > { %3217 = vmatprep.subr.bf16.mxu0 %v8431_v36 }
 0x747   : > { %7134 = vmatmul.mubr.msk.bf16.vlgmr.msra.gmra.mxu0 %vm2427_vm8, %v8426_v38 }
 0x748   : > { %2479 = vmatprep.mubr.bf16.mxu0 %v9232_v50  ;;  %3218 = vmatpush1.bf16.msra.mxu0 %v8429_v39 }
 0x749   : > { %3219 = vmatprep.subr.bf16.mxu0 %v8434_v40 }
 0x74c   : > { %3220 = vmatpush1.bf16.msra.mxu0 %v8432_v41  ;;  %v8522_v41 = vld [vmem:[%s11104_s13 + $0x260] ss:$8 sps:$4 sm:$0xff]  }
 0x74d   : > { %3221 = vmatprep.subr.bf16.mxu0 %v8437_v42 }
 0x74f   : > { %7135 = vmatmul.mubr.msk.bf16.gmra.mxu0 %vm2427_vm8, %v8427_v43 }
 0x750   : > { %2489 = vmatprep.mubr.bf16.mxu0 %v9232_v50  ;;  %3222 = vmatpush1.bf16.msra.mxu0 %v8435_v44  ;;  %v8530_v44 = vld [vmem:[%s11104_s13 + $0x254] ss:$8 sps:$4 sm:$0xff]  }
 0x751   : > { %3223 = vmatprep.subr.bf16.mxu0 %v8440_v45 }
 0x754   : > { %3224 = vmatpush1.bf16.msra.mxu0 %v8438_v46 }
 0x755   : > { %3225 = vmatprep.subr.bf16.mxu0 %v8446_v47 }
 0x757   : > { %7136 = vmatmul.mubr.msk.bf16.gmra.mxu0 %vm2427_vm8, %v8428_v48  ;;  %v8528_v48 = vld [vmem:[%s11104_s13 + $0x250] ss:$8 sps:$4 sm:$0xff]  }
 0x758   : > { %3226 = vmatpush1.bf16.msra.mxu0 %v8444_v49 }
 0x759   : > { %3227 = vmatprep.subr.bf16.mxu0 %v8452_v51 }
 0x75c   : > { %3228 = vmatpush1.bf16.msra.mxu0 %v8450_v52 }
 0x75d   : > { %3229 = vmatprep.subr.bf16.mxu0 %v8458_v53 }
 0x760   : > { %3230 = vmatpush1.bf16.msra.mxu0 %v8456_v54  ;;  %v8536_v54 = vld [vmem:[%s11104_s13 + $0x244] ss:$8 sps:$4 sm:$0xff]  }
 0x761   : > { %3231 = vmatprep.subr.bf16.mxu0 %v8464_v55 }
 0x764   : > { %3232 = vmatpush1.bf16.msra.mxu0 %v8462_v56 }
 0x765   : > { %3233 = vmatprep.subr.bf16.mxu0 %v8470_v57 }
 0x768   : > { %3234 = vmatpush2.bf16.msra.mxu0 %v8468_v58 }
 0x769   : > { %3235 = vmatprep.subr.bf16.mxu0 %v8476_v59 }
 0x76c   : > { %3236 = vmatpush2.bf16.msra.mxu0 %v8474_v60 }
 0x76d   : > { %3237 = vmatprep.subr.bf16.mxu0 %v8482_v61 }
 0x770   : > { %3238 = vmatpush2.bf16.msra.mxu0 %v8480_v62 }
 0x771   : > { %3239 = vmatprep.subr.bf16.mxu0 %v8488_v63 }
 0x774   : > { %3240 = vmatpush2.bf16.msra.mxu0 %v8486_v1 }
 0x775   : > { %3241 = vmatprep.subr.bf16.mxu0 %v8494_v4 }
 0x778   : > { %3242 = vmatpush2.bf16.msra.mxu0 %v8492_v5 }
 0x779   : > { %3243 = vmatprep.subr.bf16.mxu0 %v8500_v8 }
 0x77c   : > { %3244 = vmatpush2.bf16.msra.mxu0 %v8498_v9 }
 0x77d   : > { %3245 = vmatprep.subr.bf16.mxu0 %v8506_v12 }
 0x780   : > { %3246 = vmatpush2.bf16.msra.mxu0 %v8504_v13 }
 0x781   : > { %3247 = vmatprep.subr.bf16.mxu0 %v8512_v16 }
 0x784   : > { %3248 = vmatpush2.bf16.msra.mxu0 %v8510_v17 }
 0x785   : > { %3323 = vmatprep.subr.bf16.mxu0 %v8518_v20 }
 0x807   : > { %v2471_v0 = vpop.f32.mrf.mxu0 }
 0x809   : > { %v2473_v27 = vpop.f32.mrf.mxu0 }
 0x80a   : > { %v7587_v28 = vpack.c.bf16 %v2473_v27, %v2471_v0 }
 0x80b   : > { %v2475_v29 = vpop.f32.mrf.mxu0 }
 0x80c   : > { %2530 = vst [vmem:[#allocation4 + $0x8] sm:$0xff] %v7587_v28  ;;  %v8910_v33 = vpack.c.bf16 %v2475_v29, %v2471_v0  ;;  %v8546_v28 = vld [vmem:[%s11104_s13 + $0x200] ss:$8 sps:$4 sm:$0xff]  }
 0x80d   : > { %v2477_v30 = vpop.f32.mrf.mxu0 }
 0x80e   : > { %v9843_v31 = vpack.c.bf16 %v2477_v30, %v2475_v29  ;;  %v8911_v34 = vpack.c.bf16 %v2477_v30, %v2473_v27  ;;  %v2569_v42 = vshll.u32 %v8910_v33, 16  ;;  %v2567_v56 = vshrl.u32 %v8910_v33, 16  ;;  %v8551_v29 = vld [vmem:[%s11104_s13 + $0x2f4] ss:$8 sps:$4 sm:$0xff]   ;;  %v8549_v30 = vld [vmem:[%s11104_s13 + $0x2f0] ss:$8 sps:$4 sm:$0xff]  }
 0x80f   : > { %v2481_v32 = vpop.f32.mrf.mxu0 }
 0x810   : > { %3249 = vmatprep.mubr.bf16.mxu0 %v8911_v34  ;;  %v2581_v39 = vshll.u32 %v8911_v34, 16  ;;  %v2571_v52 = vrot.slane %v2569_v42, 1  ;;  %v2579_v55 = vshrl.u32 %v8911_v34, 16  ;;  %v8557_v34 = vld [vmem:[%s11104_s13 + $0x2d4] ss:$8 sps:$4 sm:$0xff]  }
 0x811   : > { %v2483_v36 = vpop.f32.mrf.mxu0  ;;  %3250 = vmatmul.mubr.bf16.vlgmr.msra.gmra.mxu0 %v8910_v33  ;;  %v8552_v33 = vld [vmem:[%s11104_s13 + $0x2e0] ss:$8 sps:$4 sm:$0xff]  }
 0x812   : > { %3324 = vmatpush1.bf16.msra.mxu0 %v8516_v35  ;;  %v2583_v46 = vrot.slane %v2581_v39, 1  ;;  %v2572_v4 = vor.u32 %v2571_v52, %v2567_v56  ;;  %v8555_v35 = vld [vmem:[%s11104_s13 + $0x2d0] ss:$8 sps:$4 sm:$0xff]   ;;  %v8566_v42 = vld [vmem:[%s11104_s13 + $0x2a0] ss:$8 sps:$4 sm:$0xff]  }
 0x813   : > { %v2485_v38 = vpop.f32.mrf.mxu0  ;;  %v9851_v40 = vld [vmem:[#allocation4 + $0x8] sm:$0xee]  ;;  %3325 = vmatprep.subr.bf16.mxu0 %v8524_v37  ;;  %v8563_v39 = vld [vmem:[%s11104_s13 + $0x2b0] ss:$8 sps:$4 sm:$0xff]  }
 0x814   : > { %v7149_v45 = vcombine.high %v9851_v40, %v9843_v31  ;;  %v9866_v51 = vpack.c.bf16 %v2485_v38, %v2481_v32  ;;  %v2584_v62 = vor.u32 %v2583_v46, %v2579_v55  ;;  %v8554_v32 = vld [vmem:[%s11104_s13 + $0x2e4] ss:$8 sps:$4 sm:$0xff]   ;;  %v8559_v37 = vld [vmem:[%s11104_s13 + $0x2c0] ss:$8 sps:$4 sm:$0xff]   ;;  %v8565_v38 = vld [vmem:[%s11104_s13 + $0x2b4] ss:$8 sps:$4 sm:$0xff]   ;;  %v7148_v46 = vcombine.low %v9851_v40, %v9843_v31 }
 0x815   : > { %v2487_v43 = vpop.f32.mrf.mxu0  ;;  %v8580_v56 = vld [vmem:[%s11107_s16 + $0xec] ss:$16 sps:$4 sm:$0xff]  }
 0x816   : > { %3326 = vmatpush1.bf16.msra.mxu0 %v8522_v41  ;;  %v9864_v49 = vpack.c.bf16 %v2487_v43, %v2483_v36  ;;  %v2618_v53 = vrot.slane %v7149_v45, 1  ;;  %v2574_v60 = vshll.u32 %v9866_v51, 16  ;;  %v2590_v13 = vshrl.u32 %v9866_v51, 16  ;;  %v8561_v36 = vld [vmem:[%s11104_s13 + $0x2c4] ss:$8 sps:$4 sm:$0xff]  }
 0x817   : > { %v2491_v47 = vpop.f32.mrf.mxu0  ;;  %3327 = vmatprep.subr.bf16.mxu0 %v8530_v44  ;;  %v8568_v41 = vld [vmem:[%s11104_s13 + $0x2a4] ss:$8 sps:$4 sm:$0xff]   ;;  %v8571_v43 = vld [vmem:[%s11104_s13 + $0x294] ss:$8 sps:$4 sm:$0xff]   ;;  %v8569_v44 = vld [vmem:[%s11104_s13 + $0x290] ss:$8 sps:$4 sm:$0xff]  }
 0x818   : > { %3259 = vmatprep.mubr.bf16.mxu0 %v9864_v49  ;;  %v2619_v58 = vrot.slane %v9864_v49, 1  ;;  %v2586_v59 = vshll.u32 %v9864_v49, 16  ;;  %v2576_v5 = vrot.slane %v2574_v60, 1  ;;  %v2598_v12 = vshrl.u32 %v9864_v49, 16  ;;  %v8574_v45 = vld [vmem:[%s11104_s13 + $0x284] ss:$8 sps:$4 sm:$0xff]  }
 0x819   : > { %v2493_v57 = vpop.f32.mrf.mxu0  ;;  %3260 = vmatmul.mubr.bf16.gmra.mxu0 %v9866_v51  ;;  %v8575_v49 = vld [vmem:[%s11107_s16 + $0xe0] ss:$16 sps:$4 sm:$0xff]  }
 0x81a   : > { %v7591_v61 = vpack.c.bf16 %v2493_v57, %v2491_v47  ;;  %3328 = vmatpush1.bf16.msra.mxu0 %v8528_v48  ;;  %v2620_v1 = vsel %vm1742_vm6, %v2618_v53, %v2619_v58  ;;  %v2588_v3 = vrot.slane %v2586_v59, 1  ;;  %v2577_v9 = vsel %vm1710_vm7, %v2572_v4, %v2576_v5  ;;  %v8572_v47 = vld [vmem:[%s11104_s13 + $0x280] ss:$8 sps:$4 sm:$0xff]   ;;  %v8586_v59 = vld [vmem:[%s11107_s16 + $0xcc] ss:$16 sps:$4 sm:$0xff]  }
 0x81b   : > { %v2495_v63 = vpop.f32.mrf.mxu0  ;;  %3355 = vmatprep.mubr.bf16.mxu0 %v2620_v1  ;;  %3329 = vmatprep.subr.bf16.mxu0 %v8536_v54  ;;  %v2592_v21 = vor.u32 %v2590_v13, %v2576_v5  ;;  %v2616_v48 = vrot.slane %v9866_v51, 1  ;;  %v2615_v53 = vrot.slane %v7148_v46, 1  ;;  %v8577_v51 = vld [vmem:[%s11107_s16 + $0xe4] ss:$16 sps:$4 sm:$0xff]   ;;  %v8578_v57 = vld [vmem:[%s11107_s16 + $0xe8] ss:$16 sps:$4 sm:$0xff]  }
 0x81c   : > { %2534 = vst [vmem:[#allocation4 + $0x18] sm:$0x11] %v7591_v61  ;;  %v2589_v8 = vsel %vm1710_vm7, %v2584_v62, %v2588_v3  ;;  %v2600_v19 = vor.u32 %v2598_v12, %v2588_v3  ;;  %3772 = vmatprep.subr.bf16.mxu1 %v8577_v51  ;;  %v8581_v60 = vld [vmem:[%s11107_s16 + $0xc0] ss:$16 sps:$4 sm:$0xff]   ;;  %v8584_v61 = vld [vmem:[%s11107_s16 + $0xc8] ss:$16 sps:$4 sm:$0xff]  }
 0x81d   : > { %v2496_v7 = vpop.f32.mrf.mxu0  ;;  %3302 = vmatprep.mubr.bf16.mxu1 %v2589_v8  ;;  %v2617_v54 = vsel %vm1742_vm6, %v2615_v53, %v2616_v48  ;;  %v8587_v62 = vld [vmem:[%s11107_s16 + $0xa0] ss:$16 sps:$4 sm:$0xff]   ;;  %v8589_v63 = vld [vmem:[%s11107_s16 + $0xa4] ss:$16 sps:$4 sm:$0xff]   ;;  %v8590_v1 = vld [vmem:[%s11107_s16 + $0xa8] ss:$16 sps:$4 sm:$0xff]  }
 0x81e   : > { %3330 = vmatpush1.bf16.msra.mxu0 %v8534_v2  ;;  %3303 = vmatmul.mubr.bf16.vlgmr.msra.gmra.mxu1 %v2577_v9  ;;  %v8592_v2 = vld [vmem:[%s11107_s16 + $0xac] ss:$16 sps:$4 sm:$0xff]   ;;  %v8595_v3 = vld [vmem:[%s11107_s16 + $0x84] ss:$16 sps:$4 sm:$0xff]   ;;  %v8593_v5 = vld [vmem:[%s11107_s16 + $0x80] ss:$16 sps:$4 sm:$0xff]  }
 0x81f   : > { %3331 = vmatprep.subr.bf16.mxu0 %v8539_v6  ;;  %3773 = vmatpush1.bf16.msra.mxu1 %v8575_v49  ;;  %v8598_v4 = vld [vmem:[%s11107_s16 + $0x8c] ss:$16 sps:$4 sm:$0xff]   ;;  %v8596_v6 = vld [vmem:[%s11107_s16 + $0x88] ss:$16 sps:$4 sm:$0xff]   ;;  %v8601_v7 = vld [vmem:[%s11107_s16 + $0x64] ss:$16 sps:$4 sm:$0xff]  }
 0x820   : > { %v8604_v8 = vld [vmem:[%s11107_s16 + $0x6c] ss:$16 sps:$4 sm:$0xff]   ;;  %v8599_v9 = vld [vmem:[%s11107_s16 + $0x60] ss:$16 sps:$4 sm:$0xff]   ;;  %v8668_v51 = vld [vmem:[%s11107_s16 + $0x108] ss:$16 sps:$4 sm:$0xff]  }
 0x821   : > { %v8610_v12 = vld [vmem:[%s11107_s16 + $0x4c] ss:$16 sps:$4 sm:$0xff]   ;;  %v8605_v13 = vld [vmem:[%s11107_s16 + $0x40] ss:$16 sps:$4 sm:$0xff]  }
 0x822   : > { %3332 = vmatpush1.bf16.msra.mxu0 %v8537_v10  ;;  %v8602_v10 = vld [vmem:[%s11107_s16 + $0x68] ss:$16 sps:$4 sm:$0xff]   ;;  %v8653_v46 = vld [vmem:[%s11107_s16 + $0x140] ss:$16 sps:$4 sm:$0xff]  }
 0x823   : > { %v2539_v14 = vld [vmem:[#allocation4 + $0x18] sm:$0x11]  ;;  %3333 = vmatprep.subr.bf16.mxu0 %v8542_v11  ;;  %v8607_v11 = vld [vmem:[%s11107_s16 + $0x44] ss:$16 sps:$4 sm:$0xff]   ;;  %v8659_v53 = vld [vmem:[%s11107_s16 + $0x120] ss:$16 sps:$4 sm:$0xff]  }
 0x824   : > { %v7147_v16 = vcombine.high %v2539_v14, %v2539_v14  ;;  %v9898_v17 = vcombine.low %v2539_v14, %v2539_v14  ;;  %v8608_v14 = vld [vmem:[%s11107_s16 + $0x48] ss:$16 sps:$4 sm:$0xff]  }
 0x826   : > { %v2602_v20 = vshll.u32 %v7147_v16, 16  ;;  %v2594_v22 = vshll.u32 %v9898_v17, 16  ;;  %3334 = vmatpush1.bf16.msra.mxu0 %v8540_v15  ;;  %v2623_v52 = vrot.slane %v7147_v16, 1  ;;  %v2621_v31 = vrot.slane %v9898_v17, 1  ;;  %v8613_v15 = vld [vmem:[%s11107_s16 + $0x24] ss:$16 sps:$4 sm:$0xff]  }
 0x827   : > { %3335 = vmatprep.subr.bf16.mxu0 %v8545_v18  ;;  %v8616_v16 = vld [vmem:[%s11107_s16 + $0x2c] ss:$16 sps:$4 sm:$0xff]   ;;  %v8611_v17 = vld [vmem:[%s11107_s16 + $0x20] ss:$16 sps:$4 sm:$0xff]   ;;  %v8614_v18 = vld [vmem:[%s11107_s16 + $0x28] ss:$16 sps:$4 sm:$0xff]  }
 0x828   : > { %v2604_v24 = vrot.slane %v2602_v20, 1  ;;  %v2596_v25 = vrot.slane %v2594_v22, 1  ;;  %v2624_v55 = vsel %vm1742_vm6, %v2619_v58, %v2623_v52  ;;  %v2622_v40 = vsel %vm1742_vm6, %v2616_v48, %v2621_v31  ;;  %v8583_v58 = vld [vmem:[%s11107_s16 + $0xc4] ss:$16 sps:$4 sm:$0xff]   ;;  %v8622_v20 = vld [vmem:[%s11107_s16 + $0xc] ss:$16 sps:$4 sm:$0xff]  }
 0x829   : > { %3774 = vmatprep.subr.bf16.mxu1 %v8583_v58  ;;  %v8620_v22 = vld [vmem:[%s11107_s16 + $0x8] ss:$16 sps:$4 sm:$0xff]   ;;  %v8661_v48 = vld [vmem:[%s11107_s16 + $0x124] ss:$16 sps:$4 sm:$0xff]   ;;  %v8664_v52 = vld [vmem:[%s11107_s16 + $0x12c] ss:$16 sps:$4 sm:$0xff]  }
 0x82a   : > { %v2605_v0 = vsel %vm1710_vm7, %v2600_v19, %v2604_v24  ;;  %v2597_v27 = vsel %vm1710_vm7, %v2592_v21, %v2596_v25  ;;  %3336 = vmatpush1.bf16.msra.mxu0 %v8543_v23  ;;  %3775 = vmatpush1.bf16.msra.mxu1 %v8581_v60  ;;  %v8619_v19 = vld [vmem:[%s11107_s16 + $0x4] ss:$16 sps:$4 sm:$0xff]   ;;  %v8617_v21 = vld [vmem:[%s11107_s16] ss:$16 sps:$4 sm:$0xff]   ;;  %v8628_v24 = vld [vmem:[%s11107_s16 + $0x1ec] ss:$16 sps:$4 sm:$0xff]   ;;  %v2727_v60 = vlaneseq }
 0x82b   : > { %3312 = vmatprep.mubr.bf16.mxu1 %v2605_v0  ;;  %3337 = vmatprep.subr.bf16.mxu0 %v8548_v26  ;;  %v8625_v23 = vld [vmem:[%s11107_s16 + $0x1e4] ss:$16 sps:$4 sm:$0xff]   ;;  %v8623_v25 = vld [vmem:[%s11107_s16 + $0x1e0] ss:$16 sps:$4 sm:$0xff]   ;;  %v8626_v26 = vld [vmem:[%s11107_s16 + $0x1e8] ss:$16 sps:$4 sm:$0xff]  }
 0x82c   : > { %3313 = vmatmul.mubr.bf16.gmra.mxu1 %v2597_v27  ;;  %3776 = vmatprep.subr.bf16.mxu1 %v8589_v63  ;;  %v8631_v0 = vld [vmem:[%s11107_s16 + $0x1c4] ss:$16 sps:$4 sm:$0xff]   ;;  %v8634_v27 = vld [vmem:[%s11107_s16 + $0x1cc] ss:$16 sps:$4 sm:$0xff]   ;;  %v2728_v63 = vshrl.u32 %v2727_v60, 7 }
 0x82d   : > { %v8670_v31 = vld [vmem:[%s11107_s16 + $0x10c] ss:$16 sps:$4 sm:$0xff]  }
 0x82e   : > { %3338 = vmatpush1.bf16.msra.mxu0 %v8546_v28  ;;  %3777 = vmatpush1.bf16.msra.mxu1 %v8587_v62  ;;  %v8629_v28 = vld [vmem:[%s11107_s16 + $0x1c0] ss:$16 sps:$4 sm:$0xff]   ;;  %v8677_v60 = vld [vmem:[%s11108_s17 + $0x38] sm:$0xff]  }
 0x82f   : > { %3339 = vmatprep.subr.bf16.mxu0 %v8551_v29  ;;  %3778 = vmatprep.subr.bf16.mxu1 %v8595_v3  ;;  %v8632_v29 = vld [vmem:[%s11107_s16 + $0x1c8] ss:$16 sps:$4 sm:$0xff]   ;;  %v2733_v3 = vsub.s32 1, %v2728_v63 }
 0x832   : > { %3340 = vmatpush2.bf16.msra.mxu0 %v8549_v30  ;;  %3779 = vmatpush1.bf16.msra.mxu1 %v8593_v5  ;;  %v8637_v30 = vld [vmem:[%s11107_s16 + $0x1a4] ss:$16 sps:$4 sm:$0xff]  }
 0x833   : > { %3341 = vmatprep.subr.bf16.mxu0 %v8554_v32  ;;  %3780 = vmatprep.subr.bf16.mxu1 %v8601_v7  ;;  %v8640_v32 = vld [vmem:[%s11107_s16 + $0x1ac] ss:$16 sps:$4 sm:$0xff]  }
 0x836   : > { %3342 = vmatpush2.bf16.msra.mxu0 %v8552_v33  ;;  %3781 = vmatpush1.bf16.msra.mxu1 %v8599_v9  ;;  %v8635_v33 = vld [vmem:[%s11107_s16 + $0x1a0] ss:$16 sps:$4 sm:$0xff]  }
 0x837   : > { %3343 = vmatprep.subr.bf16.mxu0 %v8557_v34  ;;  %3782 = vmatprep.subr.bf16.mxu1 %v8607_v11  ;;  %v8638_v34 = vld [vmem:[%s11107_s16 + $0x1a8] ss:$16 sps:$4 sm:$0xff]  }
 0x83a   : > { %3344 = vmatpush2.bf16.msra.mxu0 %v8555_v35  ;;  %3783 = vmatpush1.bf16.msra.mxu1 %v8605_v13  ;;  %v8643_v35 = vld [vmem:[%s11107_s16 + $0x184] ss:$16 sps:$4 sm:$0xff]  }
 0x83b   : > { %3345 = vmatprep.subr.bf16.mxu0 %v8561_v36  ;;  %3784 = vmatprep.subr.bf16.mxu1 %v8613_v15  ;;  %v8646_v36 = vld [vmem:[%s11107_s16 + $0x18c] ss:$16 sps:$4 sm:$0xff]  }
 0x83e   : > { %3346 = vmatpush2.bf16.msra.mxu0 %v8559_v37  ;;  %3785 = vmatpush1.bf16.msra.mxu1 %v8611_v17  ;;  %v8641_v37 = vld [vmem:[%s11107_s16 + $0x180] ss:$16 sps:$4 sm:$0xff]  }
 0x83f   : > { %3347 = vmatprep.subr.bf16.mxu0 %v8565_v38  ;;  %3786 = vmatprep.subr.bf16.mxu1 %v8619_v19  ;;  %v8644_v38 = vld [vmem:[%s11107_s16 + $0x188] ss:$16 sps:$4 sm:$0xff]  }
 0x842   : > { %3348 = vmatpush2.bf16.msra.mxu0 %v8563_v39  ;;  %3787 = vmatpush1.bf16.msra.mxu1 %v8617_v21  ;;  %v8649_v39 = vld [vmem:[%s11107_s16 + $0x164] ss:$16 sps:$4 sm:$0xff]  }
 0x843   : > { %3349 = vmatprep.subr.bf16.mxu0 %v8568_v41  ;;  %3788 = vmatprep.subr.bf16.mxu1 %v8625_v23  ;;  %v8652_v41 = vld [vmem:[%s11107_s16 + $0x16c] ss:$16 sps:$4 sm:$0xff]  }
 0x846   : > { %3350 = vmatpush2.bf16.msra.mxu0 %v8566_v42  ;;  %3789 = vmatpush2.bf16.msra.mxu1 %v8623_v25  ;;  %v8647_v42 = vld [vmem:[%s11107_s16 + $0x160] ss:$16 sps:$4 sm:$0xff]  }
 0x847   : > { %3351 = vmatprep.subr.bf16.mxu0 %v8571_v43  ;;  %3790 = vmatprep.subr.bf16.mxu1 %v8631_v0  ;;  %v8650_v43 = vld [vmem:[%s11107_s16 + $0x168] ss:$16 sps:$4 sm:$0xff]  }
 0x84a   : > { %3352 = vmatpush2.bf16.msra.mxu0 %v8569_v44  ;;  %3791 = vmatpush2.bf16.msra.mxu1 %v8629_v28  ;;  %v8655_v44 = vld [vmem:[%s11107_s16 + $0x144] ss:$16 sps:$4 sm:$0xff]  }
 0x84b   : > { %3353 = vmatprep.subr.bf16.mxu0 %v8574_v45  ;;  %3792 = vmatprep.subr.bf16.mxu1 %v8637_v30  ;;  %v8658_v45 = vld [vmem:[%s11107_s16 + $0x14c] ss:$16 sps:$4 sm:$0xff]  }
 0x84e   : > { %3354 = vmatpush2.bf16.msra.mxu0 %v8572_v47  ;;  %3793 = vmatpush2.bf16.msra.mxu1 %v8635_v33  ;;  %v8656_v47 = vld [vmem:[%s11107_s16 + $0x148] ss:$16 sps:$4 sm:$0xff]  }
 0x84f   : > { %3825 = vmatprep.subr.bf16.mxu0 %v8580_v56  ;;  %3794 = vmatprep.subr.bf16.mxu1 %v8643_v35 }
 0x851   : > { %3356 = vmatmul.mubr.bf16.vlgmr.msra.gmra.mxu0 %v2617_v54  ;;  %v8662_v54 = vld [vmem:[%s11107_s16 + $0x128] ss:$16 sps:$4 sm:$0xff]  }
 0x852   : > { %3365 = vmatprep.mubr.bf16.mxu0 %v2624_v55  ;;  %3826 = vmatpush1.bf16.msra.mxu0 %v8578_v57  ;;  %v8667_v55 = vld [vmem:[%s11107_s16 + $0x104] ss:$16 sps:$4 sm:$0xff]  }
 0x853   : > { %3827 = vmatprep.subr.bf16.mxu0 %v8586_v59  ;;  %3795 = vmatpush2.bf16.msra.mxu1 %v8641_v37 }
 0x854   : > { %3796 = vmatprep.subr.bf16.mxu1 %v8649_v39 }
 0x856   : > { %3828 = vmatpush1.bf16.msra.mxu0 %v8584_v61 }
 0x857   : > { %3829 = vmatprep.subr.bf16.mxu0 %v8592_v2  ;;  %3797 = vmatpush2.bf16.msra.mxu1 %v8647_v42 }
 0x858   : > { %3798 = vmatprep.subr.bf16.mxu1 %v8655_v44 }
 0x859   : > { %3366 = vmatmul.mubr.bf16.gmra.mxu0 %v2622_v40  ;;  %v8665_v40 = vld [vmem:[%s11107_s16 + $0x100] ss:$16 sps:$4 sm:$0xff]  }
 0x85a   : > { %3830 = vmatpush1.bf16.msra.mxu0 %v8590_v1 }
 0x85b   : > { %3831 = vmatprep.subr.bf16.mxu0 %v8598_v4  ;;  %3799 = vmatpush2.bf16.msra.mxu1 %v8653_v46  ;;  %v2729_v4 = vsub.s32 0, %v2728_v63  ;;  %v8680_v63 = vld [vmem:[%s11108_s17 + $0x68] sm:$0xff]  }
 0x85c   : > { %3800 = vmatprep.subr.bf16.mxu1 %v8661_v48 }
 0x85e   : > { %3832 = vmatpush1.bf16.msra.mxu0 %v8596_v6  ;;  %v2725_v6 = vld [vmem:[%s11105_s14] sm:$0x3] }
 0x85f   : > { %3833 = vmatprep.subr.bf16.mxu0 %v8604_v8  ;;  %3801 = vmatpush2.bf16.msra.mxu1 %v8659_v53  ;;  %v2734_v8 = vrot.slane %v2725_v6, %v2733_v3  ;;  %v2730_v9 = vrot.slane %v2725_v6, %v2729_v4 }
 0x860   : > { %3802 = vmatprep.subr.bf16.mxu1 %v8667_v55 }
 0x862   : > { %3834 = vmatpush1.bf16.msra.mxu0 %v8602_v10 }
 0x863   : > { %3835 = vmatprep.subr.bf16.mxu0 %v8610_v12  ;;  %3803 = vmatpush2.bf16.msra.mxu1 %v8665_v40 }
 0x866   : > { %3836 = vmatpush1.bf16.msra.mxu0 %v8608_v14 }
 0x867   : > { %3837 = vmatprep.subr.bf16.mxu0 %v8616_v16 }
 0x86a   : > { %3838 = vmatpush1.bf16.msra.mxu0 %v8614_v18 }
 0x86b   : > { %3839 = vmatprep.subr.bf16.mxu0 %v8622_v20 }
 0x86e   : > { %3840 = vmatpush1.bf16.msra.mxu0 %v8620_v22 }
 0x86f   : > { %3841 = vmatprep.subr.bf16.mxu0 %v8628_v24 }
 0x872   : > { %3842 = vmatpush2.bf16.msra.mxu0 %v8626_v26 }
 0x873   : > { %3843 = vmatprep.subr.bf16.mxu0 %v8634_v27 }
 0x876   : > { %3844 = vmatpush2.bf16.msra.mxu0 %v8632_v29 }
 0x877   : > { %3845 = vmatprep.subr.bf16.mxu0 %v8640_v32 }
 0x87a   : > { %3846 = vmatpush2.bf16.msra.mxu0 %v8638_v34 }
 0x87b   : > { %3847 = vmatprep.subr.bf16.mxu0 %v8646_v36 }
 0x87e   : > { %3848 = vmatpush2.bf16.msra.mxu0 %v8644_v38 }
 0x87f   : > { %3849 = vmatprep.subr.bf16.mxu0 %v8652_v41 }
 0x882   : > { %3850 = vmatpush2.bf16.msra.mxu0 %v8650_v43 }
 0x883   : > { %3851 = vmatprep.subr.bf16.mxu0 %v8658_v45 }
 0x886   : > { %3852 = vmatpush2.bf16.msra.mxu0 %v8656_v47 }
 0x887   : > { %3853 = vmatprep.subr.bf16.mxu0 %v8664_v52 }
 0x88a   : > { %3854 = vmatpush2.bf16.msra.mxu0 %v8662_v54 }
 0x88b   : > { %3855 = vmatprep.subr.bf16.mxu0 %v8670_v31 }
 0x88e   : > { %3856 = vmatpush2.bf16.msra.mxu0 %v8668_v51 }
 0x8d1   : > { %v3251_v56 = vpop.f32.mrf.mxu0 }
 0x8d2   : > { %v3252_v15 = vadd.f32 %v3251_v56, %v2730_v9 }
 0x8d3   : > { %v3253_v49 = vpop.f32.mrf.mxu0 }
 0x8d4   : > { %v3254_v13 = vadd.f32 %v3253_v49, %v2734_v8 }
 0x8d5   : > { %v3255_v57 = vpop.f32.mrf.mxu0 }
 0x8d6   : > { %v3256_v14 = vadd.f32 %v3255_v57, %v2730_v9 }
 0x8d7   : > { %v3257_v58 = vpop.f32.mrf.mxu0 }
 0x8d8   : > { %v3258_v18 = vadd.f32 %v3257_v58, %v2734_v8 }
 0x8d9   : > { %v3261_v61 = vpop.f32.mrf.mxu0 }
 0x8da   : > { %v3262_v32 = vadd.f32 %v3261_v61, %v2730_v9  ;;  %v8678_v61 = vld [vmem:[%s11108_s17 + $0x70] sm:$0xff]  }
 0x8db   : > { %v3263_v1 = vpop.f32.mrf.mxu0 }
 0x8dc   : > { %v3264_v28 = vadd.f32 %v3263_v1, %v2734_v8  ;;  %v8681_v1 = vld [vmem:[%s11108_s17 + $0x28] sm:$0xff]  }
 0x8dd   : > { %v3265_v5 = vpop.f32.mrf.mxu0 }
 0x8de   : > { %v3304_v59 = vpop.f32.mrf.mxu1  ;;  %v3266_v29 = vadd.f32 %v3265_v5, %v2730_v9 }
 0x8df   : > { %v3267_v11 = vpop.f32.mrf.mxu0  ;;  %v3305_v21 = vadd.f32 %v3304_v59, %v3252_v15  ;;  %v8676_v59 = vld [vmem:[%s11108_s17 + $0x78] sm:$0xff]  }
 0x8e0   : > { %v3306_v62 = vpop.f32.mrf.mxu1  ;;  %v3268_v35 = vadd.f32 %v3267_v11, %v2734_v8  ;;  %7746 = vmatprep.subr.bf16.mxu0 %v8676_v59 }
 0x8e1   : > { %v3307_v19 = vadd.f32 %v3306_v62, %v3254_v13  ;;  %v8679_v62 = vld [vmem:[%s11108_s17 + $0x30] sm:$0xff]  }
 0x8e2   : > { %v3308_v2 = vpop.f32.mrf.mxu1 }
 0x8e3   : > { %v3309_v20 = vadd.f32 %v3308_v2, %v3256_v14  ;;  %v8682_v2 = vld [vmem:[%s11108_s17 + $0x60] sm:$0xff]  }
 0x8e4   : > { %v3310_v7 = vpop.f32.mrf.mxu1 }
 0x8e5   : > { %v3311_v23 = vadd.f32 %v3310_v7, %v3258_v18 }
 0x8ec   : > { %v3314_v10 = vpop.f32.mrf.mxu1 }
 0x8ed   : > { %v3315_v45 = vadd.f32 %v3314_v10, %v3262_v32  ;;  %v8683_v32 = vld [vmem:[%s11108_s17 + $0x20] sm:$0xff]  }
 0x8ee   : > { %v3316_v16 = vpop.f32.mrf.mxu1 }
 0x8ef   : > { %v3317_v42 = vadd.f32 %v3316_v16, %v3264_v28  ;;  %v8673_v28 = vld [vmem:[%s11106_s15 + $0x10] sm:$0xff]  }
 0x8f0   : > { %v3318_v26 = vpop.f32.mrf.mxu1 }
 0x8f1   : > { %v3319_v43 = vadd.f32 %v3318_v26, %v3266_v29  ;;  %v8674_v29 = vld [vmem:[%s11106_s15 + $0x18] sm:$0xff]  }
 0x8f2   : > { %v3320_v38 = vpop.f32.mrf.mxu1 }
 0x8f3   : > { %v3321_v48 = vadd.f32 %v3320_v38, %v3268_v35  ;;  %v8686_v35 = vld [vmem:[%s11108_s17 + $0x50] sm:$0xff]   ;;  %v8689_v38 = vld [vmem:[%s11108_s17 + $0x8] sm:$0xff]  }
 0x911   : > { %v3357_v12 = vpop.f32.mrf.mxu0 }
 0x912   : > { %v3358_v0 = vadd.f32 %v3357_v12, %v3305_v21 }
 0x913   : > { %v3359_v17 = vpop.f32.mrf.mxu0 }
 0x914   : > { %v3360_v24 = vadd.f32 %v3359_v17, %v3307_v19  ;;  %v3376_v39 = vmax.f32 %v3358_v0, 0.0 }
 0x915   : > { %v3361_v22 = vpop.f32.mrf.mxu0 }
 0x916   : > { %v3362_v25 = vadd.f32 %v3361_v22, %v3309_v20  ;;  %v3377_v36 = vmax.f32 %v3360_v24, 0.0  ;;  %v8671_v24 = vld [vmem:[%s11106_s15] sm:$0xff]  }
 0x917   : > { %v3363_v27 = vpop.f32.mrf.mxu0 }
 0x918   : > { %v3364_v30 = vadd.f32 %v3363_v27, %v3311_v23  ;;  %v3378_v33 = vmax.f32 %v3362_v25, 0.0  ;;  %v8672_v27 = vld [vmem:[%s11106_s15 + $0x8] sm:$0xff]  }
 0x919   : > { %v3367_v34 = vpop.f32.mrf.mxu0 }
 0x91a   : > { %v3379_v37 = vmax.f32 %v3364_v30, 0.0  ;;  %v3384_v46 = vpack.c.bf16 %v3378_v33, %v3376_v39  ;;  %v3368_v54 = vadd.f32 %v3367_v34, %v3315_v45  ;;  %v8675_v30 = vld [vmem:[%s11106_s15 + $0x20] ss:$0 sps:$4 sm:$0x11]   ;;  %v8684_v33 = vld [vmem:[%s11108_s17 + $0x58] sm:$0xff]   ;;  %v8702_v45 = vld [vmem:[%s11108_s17 + $0xb0] sm:$0xff]  }
 0x91b   : > { %v3369_v41 = vpop.f32.mrf.mxu0  ;;  %v8685_v34 = vld [vmem:[%s11108_s17 + $0x18] sm:$0xff]   ;;  %v8690_v39 = vld [vmem:[%s11108_s17 + $0x40] sm:$0xff]  }
 0x91c   : > { %v3385_v44 = vpack.c.bf16 %v3379_v37, %v3377_v36  ;;  %v3370_v52 = vadd.f32 %v3369_v41, %v3317_v42  ;;  %v3380_v49 = vmax.f32 %v3368_v54, 0.0  ;;  %v8687_v36 = vld [vmem:[%s11108_s17 + $0x10] sm:$0xff]   ;;  %v8688_v37 = vld [vmem:[%s11108_s17 + $0x48] sm:$0xff]   ;;  %v8691_v41 = vld [vmem:[%s11108_s17] sm:$0xff]  }
 0x91d   : > { %v3371_v47 = vpop.f32.mrf.mxu0  ;;  %v8696_v42 = vld [vmem:[%s11108_s17 + $0xf8] sm:$0xff]  }
 0x91e   : > { %v3372_v53 = vadd.f32 %v3371_v47, %v3319_v43  ;;  %3804 = vmatprep.mubr.bf16.mxu1 %v3385_v44  ;;  %3857 = vmatprep.mubr.bf16.mxu0 %v3385_v44  ;;  %v3381_v51 = vmax.f32 %v3370_v52, 0.0  ;;  %v8698_v43 = vld [vmem:[%s11108_s17 + $0xb8] sm:$0xff]   ;;  %v8700_v44 = vld [vmem:[%s11108_s17 + $0xf0] sm:$0xff]   ;;  %v8706_v47 = vld [vmem:[%s11108_s17 + $0xa8] sm:$0xff]  }
 0x91f   : > { %v3373_v55 = vpop.f32.mrf.mxu0  ;;  %3805 = vmatmul.mubr.bf16.vlgmr.msra.gmra.mxu1 %v3384_v46  ;;  %3858 = vmatmul.mubr.bf16.vlgmr.msra.gmra.mxu0 %v3384_v46  ;;  %v8704_v46 = vld [vmem:[%s11108_s17 + $0xe8] sm:$0xff]   ;;  %v8710_v52 = vld [vmem:[%s11108_s17 + $0xa0] sm:$0xff]   ;;  %v8714_v54 = vld [vmem:[%s11108_s17 + $0x98] sm:$0xff]  }
 0x920   : > { %v3374_v31 = vadd.f32 %v3373_v55, %v3321_v48  ;;  %v3382_v40 = vmax.f32 %v3372_v53, 0.0  ;;  %7747 = vmatpush3.bf16.msra.mxu0 %v8677_v60  ;;  %v8708_v48 = vld [vmem:[%s11108_s17 + $0xe0] sm:$0xff]   ;;  %v8712_v53 = vld [vmem:[%s11108_s17 + $0xd8] sm:$0xff]   ;;  %v8716_v55 = vld [vmem:[%s11108_s17 + $0xd0] sm:$0xff]  }
 0x921   : > { %7748 = vmatprep.subr.bf16.mxu0 %v8678_v61 }
 0x922   : > { %v3383_v56 = vmax.f32 %v3374_v31, 0.0  ;;  %v3386_v58 = vpack.c.bf16 %v3382_v40, %v3380_v49  ;;  %v8718_v31 = vld [vmem:[%s11108_s17 + $0x90] sm:$0xff]   ;;  %v8720_v40 = vld [vmem:[%s11108_s17 + $0xc8] sm:$0xff]   ;;  %v8727_v49 = vld [vmem:[%s11108_s17 + $0x80] sm:$0xff]  }
 0x924   : > { %v3387_v57 = vpack.c.bf16 %v3383_v56, %v3381_v51  ;;  %7749 = vmatpush3.bf16.msra.mxu0 %v8679_v62  ;;  %v8722_v51 = vld [vmem:[%s11108_s17 + $0x88] sm:$0xff]   ;;  %v8725_v56 = vld [vmem:[%s11108_s17 + $0xc0] sm:$0xff]  }
 0x925   : > { %7750 = vmatprep.subr.bf16.mxu0 %v8680_v63 }
 0x926   : > { %3814 = vmatprep.mubr.bf16.mxu1 %v3387_v57  ;;  %3867 = vmatprep.mubr.bf16.mxu0 %v3387_v57  ;;  %v8730_v57 = vld [vmem:[%s11108_s17 + $0x1f8] sm:$0xff]  }
 0x927   : > { %3815 = vmatmul.mubr.bf16.gmra.mxu1 %v3386_v58  ;;  %3868 = vmatmul.mubr.bf16.gmra.mxu0 %v3386_v58 }
 0x928   : > { %3966 = vmatprep.mubr.bf16.mxu1 %v9232_v50  ;;  %7751 = vmatpush3.bf16.msra.mxu0 %v8681_v1 }
 0x929   : > { %7752 = vmatprep.subr.bf16.mxu0 %v8682_v2 }
 0x92c   : > { %7753 = vmatpush3.bf16.msra.mxu0 %v8683_v32 }
 0x92d   : > { %7754 = vmatprep.subr.bf16.mxu0 %v8684_v33 }
 0x930   : > { %7755 = vmatpush3.bf16.msra.mxu0 %v8685_v34  ;;  %v8709_v34 = vld [vmem:[%s11108_s17 + $0x150] sm:$0xff]  }
 0x931   : > { %7756 = vmatprep.subr.bf16.mxu0 %v8686_v35 }
 0x934   : > { %7757 = vmatpush3.bf16.msra.mxu0 %v8687_v36 }
 0x935   : > { %7758 = vmatprep.subr.bf16.mxu0 %v8688_v37 }
 0x938   : > { %7759 = vmatpush3.bf16.msra.mxu0 %v8689_v38  ;;  %v8711_v38 = vld [vmem:[%s11108_s17 + $0x110] sm:$0xff]  }
 0x939   : > { %7760 = vmatprep.subr.bf16.mxu0 %v8690_v39 }
 0x93c   : > { %7761 = vmatpush3.bf16.msra.mxu0 %v8691_v41 }
 0x9df   : > { %v3806_v3 = vpop.f32.mrf.mxu1  ;;  %v3859_v4 = vpop.f32.mrf.mxu0 }
 0x9e1   : > { %v3808_v5 = vpop.f32.mrf.mxu1  ;;  %v3861_v6 = vpop.f32.mrf.mxu0 }
 0x9e3   : > { %v3810_v7 = vpop.f32.mrf.mxu1  ;;  %v3863_v8 = vpop.f32.mrf.mxu0 }
 0x9e4   : > { %v3878_v22 = vpack.c.bf16 %v3810_v7, %v3806_v3  ;;  %v3880_v0 = vpack.c.bf16 %v3863_v8, %v3859_v4  ;;  %v8693_v4 = vld [vmem:[%s11108_s17 + $0x138] sm:$0xff]  }
 0x9e5   : > { %v3812_v9 = vpop.f32.mrf.mxu1  ;;  %v3865_v10 = vpop.f32.mrf.mxu0 }
 0x9e6   : > { %v3879_v20 = vpack.c.bf16 %v3812_v9, %v3808_v5  ;;  %v3881_v26 = vpack.c.bf16 %v3865_v10, %v3861_v6  ;;  %v8694_v6 = vld [vmem:[%s11108_s17 + $0x170] sm:$0xff]  }
 0x9e7   : > { %v3816_v11 = vpop.f32.mrf.mxu1  ;;  %v3869_v12 = vpop.f32.mrf.mxu0  ;;  %v8695_v9 = vld [vmem:[%s11108_s17 + $0x130] sm:$0xff]  }
 0x9e9   : > { %v3818_v13 = vpop.f32.mrf.mxu1  ;;  %v3871_v14 = vpop.f32.mrf.mxu0 }
 0x9eb   : > { %v3820_v15 = vpop.f32.mrf.mxu1  ;;  %v3873_v16 = vpop.f32.mrf.mxu0 }
 0x9ec   : > { %v3882_v19 = vpack.c.bf16 %v3820_v15, %v3816_v11  ;;  %v3884_v25 = vpack.c.bf16 %v3873_v16, %v3869_v12  ;;  %v8697_v11 = vld [vmem:[%s11108_s17 + $0x168] sm:$0xff]  }
 0x9ed   : > { %v3822_v17 = vpop.f32.mrf.mxu1  ;;  %v3875_v21 = vpop.f32.mrf.mxu0  ;;  %v8699_v15 = vld [vmem:[%s11108_s17 + $0x128] sm:$0xff]  }
 0x9ee   : > { %v3883_v18 = vpack.c.bf16 %v3822_v17, %v3818_v13  ;;  %v3885_v23 = vpack.c.bf16 %v3875_v21, %v3871_v14 }
 0x9f0   : > { %3946 = vmatprep.subr.bf16.mxu1 %v3883_v18  ;;  %v8701_v18 = vld [vmem:[%s11108_s17 + $0x160] sm:$0xff]  }
 0x9f1   : > { %3947 = vmatpush1.bf16.msra.mxu1 %v3882_v19 }
 0x9f2   : > { %3948 = vmatprep.subr.bf16.mxu1 %v3879_v20 }
 0x9f5   : > { %3949 = vmatpush1.bf16.msra.mxu1 %v3878_v22 }
 0x9f6   : > { %4092 = vmatprep.subr.bf16.mxu1 %v3885_v23  ;;  %v8703_v23 = vld [vmem:[%s11108_s17 + $0x120] sm:$0xff]  }
 0x9f8   : > { %7315 = vmatmul.mubr.msk.bf16.vlgmr.msra.gmra.mxu1 %vm3918_vm9, %v8671_v24 }
 0x9f9   : > { %4093 = vmatpush1.bf16.msra.mxu1 %v3884_v25  ;;  %3976 = vmatprep.mubr.bf16.mxu1 %v9232_v50 }
 0x9fa   : > { %4094 = vmatprep.subr.bf16.mxu1 %v3881_v26 }
 0x9fd   : > { %4095 = vmatpush1.bf16.msra.mxu1 %v3880_v0  ;;  %v8705_v0 = vld [vmem:[%s11108_s17 + $0x158] sm:$0xff]  }
 0x9fe   : > { %7774 = vmatprep.subr.bf16.mxu1 %v8696_v42  ;;  %v8713_v42 = vld [vmem:[%s11108_s17 + $0x148] sm:$0xff]  }
 0xa00   : > { %7316 = vmatmul.mubr.msk.bf16.gmra.mxu1 %vm3918_vm9, %v8672_v27 }
 0xa01   : > { %3986 = vmatprep.mubr.bf16.mxu1 %v9232_v50 }
 0xa08   : > { %7317 = vmatmul.mubr.msk.bf16.gmra.mxu1 %vm3918_vm9, %v8673_v28 }
 0xa09   : > { %3996 = vmatprep.mubr.bf16.mxu1 %v9232_v50 }
 0xa10   : > { %7318 = vmatmul.mubr.msk.bf16.gmra.mxu1 %vm3918_vm9, %v8674_v29 }
 0xa11   : > { %4006 = vmatprep.mubr.bf16.mxu1 %v9232_v50 }
 0xa18   : > { %7319 = vmatmul.mubr.msk.bf16.gmra.mxu1 %vm3918_vm9, %v8675_v30 }
 0xa19   : > { %4112 = vmatprep.mubr.bf16.mxu1 %v9232_v50 }
 0xa20   : > { %7329 = vmatmul.mubr.msk.bf16.vlgmr.msra.gmra.mxu1 %vm3918_vm9, %v8671_v24 }
 0xa21   : > { %4122 = vmatprep.mubr.bf16.mxu1 %v9232_v50  ;;  %7775 = vmatpush3.bf16.msra.mxu1 %v8698_v43 }
 0xa22   : > { %7776 = vmatprep.subr.bf16.mxu1 %v8700_v44 }
 0xa25   : > { %7777 = vmatpush3.bf16.msra.mxu1 %v8702_v45 }
 0xa26   : > { %7778 = vmatprep.subr.bf16.mxu1 %v8704_v46 }
 0xa28   : > { %7330 = vmatmul.mubr.msk.bf16.gmra.mxu1 %vm3918_vm9, %v8672_v27 }
 0xa29   : > { %4132 = vmatprep.mubr.bf16.mxu1 %v9232_v50  ;;  %7779 = vmatpush3.bf16.msra.mxu1 %v8706_v47 }
 0xa2a   : > { %7780 = vmatprep.subr.bf16.mxu1 %v8708_v48  ;;  %v8715_v48 = vld [vmem:[%s11108_s17 + $0x108] sm:$0xff]  }
 0xa2d   : > { %7781 = vmatpush3.bf16.msra.mxu1 %v8710_v52 }
 0xa2e   : > { %7782 = vmatprep.subr.bf16.mxu1 %v8712_v53 }
 0xa30   : > { %7331 = vmatmul.mubr.msk.bf16.gmra.mxu1 %vm3918_vm9, %v8673_v28 }
 0xa31   : > { %4142 = vmatprep.mubr.bf16.mxu1 %v9232_v50  ;;  %7783 = vmatpush3.bf16.msra.mxu1 %v8714_v54 }
 0xa32   : > { %7784 = vmatprep.subr.bf16.mxu1 %v8716_v55 }
 0xa35   : > { %7785 = vmatpush3.bf16.msra.mxu1 %v8718_v31  ;;  %v8717_v31 = vld [vmem:[%s11108_s17 + $0x140] sm:$0xff]  }
 0xa36   : > { %7786 = vmatprep.subr.bf16.mxu1 %v8720_v40 }
 0xa38   : > { %7332 = vmatmul.mubr.msk.bf16.gmra.mxu1 %vm3918_vm9, %v8674_v29 }
 0xa39   : > { %4152 = vmatprep.mubr.bf16.mxu1 %v9232_v50  ;;  %v8692_v50 = vld [vmem:[%s11108_s17 + $0x178] sm:$0xff]   ;;  %7787 = vmatpush3.bf16.msra.mxu1 %v8722_v51 }
 0xa3a   : > { %7802 = vmatprep.subr.bf16.mxu0 %v8692_v50  ;;  %7788 = vmatprep.subr.bf16.mxu1 %v8725_v56 }
 0xa3d   : > { %7789 = vmatpush3.bf16.msra.mxu1 %v8727_v49 }
 0xa3e   : > { %7830 = vmatprep.subr.bf16.mxu1 %v8730_v57 }
 0xa40   : > { %7333 = vmatmul.mubr.msk.bf16.gmra.mxu1 %vm3918_vm9, %v8675_v30  ;;  %v8707_v30 = vld [vmem:[%s11108_s17 + $0x118] sm:$0xff]  }
 0xab8   : > { %v3968_v58 = vpop.f32.mrf.mxu1 }
 0xaba   : > { %v3970_v59 = vpop.f32.mrf.mxu1 }
 0xabb   : > { %v7592_v60 = vpack.c.bf16 %v3970_v59, %v3968_v58 }
 0xabc   : > { %v3972_v61 = vpop.f32.mrf.mxu1 }
 0xabd   : > { %4071 = vst [vmem:[#allocation5 + $0x80] sm:$0xff] %v7592_v60  ;;  %v10306_v2 = vpack.c.bf16 %v3972_v61, %v3968_v58 }
 0xabe   : > { %v3974_v62 = vpop.f32.mrf.mxu1 }
 0xabf   : > { %v10304_v63 = vpack.c.bf16 %v3974_v62, %v3972_v61  ;;  %v8915_v3 = vpack.c.bf16 %v3974_v62, %v3970_v59  ;;  %v4291_v36 = vshll.u32 %v10306_v2, 16  ;;  %v4289_v54 = vshrl.u32 %v10306_v2, 16  ;;  %v8719_v61 = vld [vmem:[%s11108_s17 + $0x100] sm:$0xff]  }
 0xac0   : > { %v3978_v1 = vpop.f32.mrf.mxu1 }
 0xac1   : > { %5221 = vmatprep.mubr.bf16.mxu0 %v8915_v3  ;;  %v4303_v8 = vshll.u32 %v8915_v3, 16  ;;  %v4301_v20 = vshrl.u32 %v8915_v3, 16  ;;  %v4293_v44 = vrot.slane %v4291_v36, 1 }
 0xac2   : > { %v3980_v5 = vpop.f32.mrf.mxu1  ;;  %5222 = vmatmul.mubr.bf16.vlgmr.msra.gmra.mxu0 %v10306_v2 }
 0xac3   : > { %7803 = vmatpush3.bf16.msra.mxu0 %v8693_v4  ;;  %v4305_v16 = vrot.slane %v4303_v8, 1  ;;  %v4294_v57 = vor.u32 %v4293_v44, %v4289_v54 }
 0xac4   : > { %v3982_v7 = vpop.f32.mrf.mxu1  ;;  %7804 = vmatprep.subr.bf16.mxu0 %v8694_v6  ;;  %v8721_v6 = vld [vmem:[%s11108_s17 + $0x278] sm:$0xff]  }
 0xac5   : > { %v10323_v14 = vpack.c.bf16 %v3982_v7, %v3978_v1  ;;  %v4306_v24 = vor.u32 %v4305_v16, %v4301_v20 }
 0xac6   : > { %v3984_v10 = vpop.f32.mrf.mxu1 }
 0xac7   : > { %7805 = vmatpush3.bf16.msra.mxu0 %v8695_v9  ;;  %v10321_v13 = vpack.c.bf16 %v3984_v10, %v3980_v5  ;;  %v4296_v40 = vshll.u32 %v10323_v14, 16 }
 0xac8   : > { %v3988_v12 = vpop.f32.mrf.mxu1  ;;  %7806 = vmatprep.subr.bf16.mxu0 %v8697_v11 }
 0xac9   : > { %5229 = vmatprep.mubr.bf16.mxu0 %v10321_v13  ;;  %v4308_v21 = vshll.u32 %v10321_v13, 16  ;;  %v4298_v5 = vrot.slane %v4296_v40, 1  ;;  %v4344_v7 = vshrl.u32 %v10321_v13, 16  ;;  %v8733_v40 = vld [vmem:[%s11108_s17 + $0x228] sm:$0xff]  }
 0xaca   : > { %v3990_v17 = vpop.f32.mrf.mxu1  ;;  %5230 = vmatmul.mubr.bf16.gmra.mxu0 %v10323_v14 }
 0xacb   : > { %v7596_v19 = vpack.c.bf16 %v3990_v17, %v3988_v12  ;;  %7807 = vmatpush3.bf16.msra.mxu0 %v8699_v15  ;;  %v10337_v25 = vrot.slane %v4308_v21, 1  ;;  %v8724_v21 = vld [vmem:[%s11108_s17 + $0x238] sm:$0xff]  }
 0xacc   : > { %v3992_v22 = vpop.f32.mrf.mxu1  ;;  %7808 = vmatprep.subr.bf16.mxu0 %v8701_v18 }
 0xacd   : > { %4075 = vst [vmem:[#allocation5 + $0x48] sm:$0xff] %v7596_v19  ;;  %v4311_v28 = vsel %vm1710_vm7, %v4306_v24, %v10337_v25  ;;  %v10347_v32 = vpack.c.bf16 %v3992_v22, %v3988_v12 }
 0xace   : > { %v3994_v26 = vpop.f32.mrf.mxu1  ;;  %5319 = vmatprep.mubr.bf16.mxu0 %v4311_v28  ;;  %v4346_v28 = vor.u32 %v4344_v7, %v10337_v25  ;;  %v8739_v7 = vld [vmem:[%s11108_s17 + $0x258] sm:$0xff]  }
 0xacf   : > { %v7597_v27 = vpack.c.bf16 %v3994_v26, %v3992_v22  ;;  %7809 = vmatpush3.bf16.msra.mxu0 %v8703_v23  ;;  %v10356_v41 = vpack.c.bf16 %v3994_v26, %v3990_v17  ;;  %v5576_v52 = vshll.u32 %v10347_v32, 16  ;;  %v5574_v8 = vshrl.u32 %v10347_v32, 16 }
 0xad0   : > { %v3998_v29 = vpop.f32.mrf.mxu1  ;;  %7810 = vmatprep.subr.bf16.mxu0 %v8705_v0 }
 0xad1   : > { %v5588_v53 = vshll.u32 %v10356_v41, 16  ;;  %v5578_v62 = vrot.slane %v5576_v52, 1  ;;  %v5586_v9 = vshrl.u32 %v10356_v41, 16 }
 0xad2   : > { %v4000_v33 = vpop.f32.mrf.mxu1 }
 0xad3   : > { %v7598_v35 = vpack.c.bf16 %v4000_v33, %v3998_v29  ;;  %7811 = vmatpush3.bf16.msra.mxu0 %v8707_v30  ;;  %v5590_v3 = vrot.slane %v5588_v53, 1  ;;  %v5579_v24 = vor.u32 %v5578_v62, %v5574_v8  ;;  %v8726_v29 = vld [vmem:[%s11108_s17 + $0x270] sm:$0xff]  }
 0xad4   : > { %v4002_v37 = vpop.f32.mrf.mxu1  ;;  %v4234_v39 = vld [vmem:[#allocation5 + $0x48] sm:$0x11]  ;;  %7812 = vmatprep.subr.bf16.mxu0 %v8709_v34  ;;  %v5521_v47 = vld [vmem:[#allocation5 + $0x48] sm:$0xee] }
 0xad5   : > { %4077 = vst [vmem:[#allocation5 + $0x50] sm:$0xff] %v7598_v35  ;;  %v10361_v46 = vcombine.high %v4234_v39, %v4234_v39  ;;  %v7472_v56 = vcombine.low %v5521_v47, %v7597_v27  ;;  %v7473_v60 = vcombine.high %v5521_v47, %v7597_v27  ;;  %v10387_v10 = vcombine.low %v4234_v39, %v4234_v39  ;;  %v10425_v39 = vld [vmem:[#allocation5 + $0x80] sm:$0xee] }
 0xad6   : > { %v4004_v50 = vpop.f32.mrf.mxu1  ;;  %v5591_v22 = vor.u32 %v5590_v3, %v5586_v9  ;;  %v4299_v27 = vsel %vm1710_vm7, %v4294_v57, %v4298_v5  ;;  %v8736_v3 = vld [vmem:[%s11108_s17 + $0x1b0] sm:$0xff]  }
 0xad7   : > { %v7599_v43 = vpack.c.bf16 %v4004_v50, %v4002_v37  ;;  %7813 = vmatpush3.bf16.msra.mxu0 %v8711_v38  ;;  %v4348_v58 = vshll.u32 %v10361_v46, 16  ;;  %v5671_v15 = vrot.slane %v7472_v56, 1  ;;  %v5674_v18 = vrot.slane %v7473_v60, 1  ;;  %v8728_v50 = vld [vmem:[%s11108_s17 + $0x230] sm:$0xff]  }
 0xad8   : > { %v4008_v45 = vpop.f32.mrf.mxu1  ;;  %7814 = vmatprep.subr.bf16.mxu0 %v8713_v42  ;;  %v4340_v35 = vshll.u32 %v10387_v10, 16 }
 0xad9   : > { %v4350_v17 = vrot.slane %v4348_v58, 1 }
 0xada   : > { %v4010_v55 = vpop.f32.mrf.mxu1  ;;  %v4342_v47 = vrot.slane %v4340_v35, 1  ;;  %v8745_v35 = vld [vmem:[%s11108_s17 + $0x210] sm:$0xff]  }
 0xadb   : > { %v7600_v51 = vpack.c.bf16 %v4010_v55, %v4008_v45  ;;  %7815 = vmatpush3.bf16.msra.mxu0 %v8715_v48  ;;  %v4351_v38 = vsel %vm1710_vm7, %v4346_v28, %v4350_v17  ;;  %v4336_v45 = vshrl.u32 %v10323_v14, 16  ;;  %v7356_v48 = vcombine.high %v10425_v39, %v10304_v63  ;;  %v8742_v17 = vld [vmem:[%s11108_s17 + $0x1e0] sm:$0xff]  }
 0xadc   : > { %v4012_v49 = vpop.f32.mrf.mxu1  ;;  %v5515_v59 = vld [vmem:[#allocation5 + $0x50] sm:$0xff]  ;;  %7816 = vmatprep.subr.bf16.mxu0 %v8717_v31  ;;  %v8744_v28 = vld [vmem:[%s11108_s17 + $0x1a0] sm:$0xff]  }
 0xadd   : > { %4079 = vst [vmem:[#allocation5 + $0x30] sm:$0x11] %v7600_v51  ;;  %v10377_v1 = vcombine.high %v5515_v59, %v7599_v43  ;;  %v10379_v2 = vcombine.low %v5515_v59, %v7599_v43  ;;  %v8731_v43 = vld [vmem:[%s11108_s17 + $0x268] sm:$0xff]   ;;  %v4338_v55 = vor.u32 %v4336_v45, %v4298_v5  ;;  %v8732_v31 = vld [vmem:[%s11108_s17 + $0x1b8] sm:$0xff]   ;;  %v4390_v51 = vrot.slane %v10321_v13, 1  ;;  %v8734_v49 = vld [vmem:[%s11108_s17 + $0x1f0] sm:$0xff]  }
 0xade   : > { %v4013_v4 = vpop.f32.mrf.mxu1  ;;  %v4389_v58 = vrot.slane %v7356_v48, 1  ;;  %v8735_v59 = vld [vmem:[%s11108_s17 + $0x260] sm:$0xff]   ;;  %v8749_v48 = vld [vmem:[%s11108_s17 + $0x208] sm:$0xff]  }
 0xadf   : > { %v5593_v11 = vshll.u32 %v10377_v1, 16  ;;  %v5581_v12 = vshll.u32 %v10379_v2, 16  ;;  %v5675_v19 = vrot.slane %v10377_v1, 1  ;;  %v5672_v20 = vrot.slane %v10379_v2, 1  ;;  %7817 = vmatpush3.bf16.msra.mxu0 %v8719_v61  ;;  %v8737_v4 = vld [vmem:[%s11108_s17 + $0x220] sm:$0xff]  }
 0xae0   : > { %v4114_v16 = vpop.f32.mrf.mxu1  ;;  %7858 = vmatprep.subr.bf16.mxu0 %v8721_v6  ;;  %v4343_v57 = vsel %vm1710_vm7, %v4338_v55, %v4342_v47  ;;  %v4391_v62 = vsel %vm1742_vm6, %v4389_v58, %v4390_v51  ;;  %v8738_v6 = vld [vmem:[%s11108_s17 + $0x1e8] sm:$0xff]   ;;  %v8748_v47 = vld [vmem:[%s11108_s17 + $0x198] sm:$0xff]   ;;  %v8751_v55 = vld [vmem:[%s11108_s17 + $0x240] sm:$0xff]  }
 0xae1   : > { %v10396_v23 = vrot.slane %v5593_v11, 1  ;;  %v10398_v26 = vrot.slane %v5581_v12, 1  ;;  %v10408_v30 = vsel %vm1742_vm6, %v5674_v18, %v5675_v19  ;;  %v10413_v33 = vsel %vm1742_vm6, %v5671_v15, %v5672_v20  ;;  %v8740_v12 = vld [vmem:[%s11108_s17 + $0x1a8] sm:$0xff]   ;;  %v8741_v15 = vld [vmem:[%s11108_s17 + $0x218] sm:$0xff]   ;;  %v8743_v18 = vld [vmem:[%s11108_s17 + $0x250] sm:$0xff]  }
 0xae2   : > { %v4116_v0 = vpop.f32.mrf.mxu1  ;;  %5320 = vmatmul.mubr.bf16.vlgmr.msra.gmra.mxu0 %v4299_v27  ;;  %v8752_v58 = vld [vmem:[%s11108_s17 + $0x190] sm:$0xff]  }
 0xae3   : > { %v7601_v34 = vpack.c.bf16 %v4116_v0, %v4114_v16  ;;  %v10418_v25 = vsel %vm1710_vm7, %v5591_v22, %v10396_v23  ;;  %v10422_v36 = vsel %vm1710_vm7, %v5579_v24, %v10398_v26  ;;  %5327 = vmatprep.mubr.bf16.mxu0 %v4351_v38  ;;  %7859 = vmatpush3.bf16.msra.mxu0 %v8724_v21  ;;  %v8747_v38 = vld [vmem:[%s11108_s17 + $0x248] sm:$0xff]  }
 0xae4   : > { %v4118_v37 = vpop.f32.mrf.mxu1  ;;  %7860 = vmatprep.subr.bf16.mxu0 %v8726_v29 }
 0xae5   : > { %4217 = vst [vmem:[#allocation5 + $0x60] sm:$0xff] %v7601_v34  ;;  %v10438_v53 = vpack.c.bf16 %v4118_v37, %v4114_v16 }
 0xae6   : > { %v4120_v42 = vpop.f32.mrf.mxu1 }
 0xae7   : > { %v10433_v44 = vpack.c.bf16 %v4120_v42, %v4118_v37  ;;  %7861 = vmatpush3.bf16.msra.mxu0 %v8728_v50  ;;  %v8921_v54 = vpack.c.bf16 %v4120_v42, %v4116_v0  ;;  %v8746_v37 = vld [vmem:[%s11108_s17 + $0x1d8] sm:$0xff]  }
 0xae8   : > { %v4124_v52 = vpop.f32.mrf.mxu1  ;;  %7862 = vmatprep.subr.bf16.mxu0 %v8731_v43 }
 0xae9   : > { %5270 = vmatprep.mubr.bf16.mxu1 %v8921_v54  ;;  %v4327_v61 = vshll.u32 %v8921_v54, 16  ;;  %v4325_v22 = vshrl.u32 %v8921_v54, 16  ;;  %v8750_v54 = vld [vmem:[%s11108_s17 + $0x1d0] sm:$0xff]  }
 0xaea   : > { %v4126_v56 = vpop.f32.mrf.mxu1  ;;  %5328 = vmatmul.mubr.bf16.gmra.mxu0 %v4343_v57  ;;  %5271 = vmatmul.mubr.bf16.vlgmr.msra.gmra.mxu1 %v10438_v53 }
 0xaeb   : > { %7831 = vmatpush3.bf16.msra.mxu1 %v8732_v31  ;;  %7863 = vmatpush3.bf16.msra.mxu0 %v8733_v40  ;;  %v4329_v16 = vrot.slane %v4327_v61, 1  ;;  %v7355_v40 = vcombine.low %v10425_v39, %v10304_v63  ;;  %v8754_v63 = vld [vmem:[%s11108_s17 + $0x1c8] sm:$0xff]   ;;  %v4387_v39 = vrot.slane %v10323_v14, 1  ;;  %v8755_v61 = vld [vmem:[%s11108_s17 + $0x78] sm:$0xff]   ;;  %v8769_v14 = vld [vmem:[%s11108_s17 + $0x2b0] sm:$0xff]  }
 0xaec   : > { %v4128_v60 = vpop.f32.mrf.mxu1  ;;  %5417 = vmatprep.mubr.bf16.mxu0 %v4391_v62  ;;  %7832 = vmatprep.subr.bf16.mxu1 %v8734_v49 }
 0xaed   : > { %7864 = vmatprep.subr.bf16.mxu0 %v8735_v59  ;;  %v10472_v11 = vpack.c.bf16 %v4128_v60, %v4124_v52  ;;  %v4330_v29 = vor.u32 %v4329_v16, %v4325_v22  ;;  %v8753_v59 = vld [vmem:[%s11108_s17 + $0x200] sm:$0xff]   ;;  %v4315_v16 = vshll.u32 %v10438_v53, 16  ;;  %v8757_v22 = vld [vmem:[%s11108_s17 + $0x38] sm:$0xff]  }
 0xaee   : > { %v4130_v5 = vpop.f32.mrf.mxu1 }
 0xaef   : > { %7833 = vmatpush3.bf16.msra.mxu1 %v8736_v3  ;;  %7865 = vmatpush3.bf16.msra.mxu0 %v8737_v4  ;;  %v10470_v9 = vpack.c.bf16 %v4130_v5, %v4126_v56  ;;  %v4400_v4 = vrot.slane %v10361_v46, 1  ;;  %v4317_v13 = vrot.slane %v4315_v16, 1  ;;  %v8767_v16 = vld [vmem:[%s11108_s17 + $0x2f0] sm:$0xff]  }
 0xaf0   : > { %v4134_v8 = vpop.f32.mrf.mxu1  ;;  %7834 = vmatprep.subr.bf16.mxu1 %v8738_v6  ;;  %7866 = vmatprep.subr.bf16.mxu0 %v8739_v7  ;;  %v4386_v6 = vrot.slane %v7355_v40, 1  ;;  %v4398_v40 = vrot.slane %v10387_v10, 1  ;;  %v8763_v10 = vld [vmem:[%s11108_s17 + $0x68] sm:$0xff]  }
 0xaf1   : > { %5278 = vmatprep.mubr.bf16.mxu1 %v10470_v9  ;;  %v4332_v24 = vshll.u32 %v10470_v9, 16 }
 0xaf2   : > { %v10486_v21 = vpop.f32.mrf.mxu1  ;;  %5279 = vmatmul.mubr.bf16.gmra.mxu1 %v10472_v11  ;;  %v4388_v46 = vsel %vm1742_vm6, %v4386_v6, %v4387_v39  ;;  %v8765_v6 = vld [vmem:[%s11108_s17 + $0x2b8] sm:$0xff]  }
 0xaf3   : > { %v7605_v0 = vpack.c.bf16 %v10486_v21, %v4134_v8  ;;  %7835 = vmatpush3.bf16.msra.mxu1 %v8740_v12  ;;  %7867 = vmatpush3.bf16.msra.mxu0 %v8741_v15  ;;  %v10495_v34 = vrot.slane %v4332_v24, 1  ;;  %v8758_v24 = vld [vmem:[%s11108_s17 + $0x1c0] sm:$0xff]  }
 0xaf4   : > { %v4138_v27 = vpop.f32.mrf.mxu1  ;;  %7836 = vmatprep.subr.bf16.mxu1 %v8742_v17  ;;  %7868 = vmatprep.subr.bf16.mxu0 %v8743_v18  ;;  %v8756_v17 = vld [vmem:[%s11108_s17 + $0x188] sm:$0xff]  }
 0xaf5   : > { %4221 = vst [vmem:[#allocation5 + $0x18] sm:$0xff] %v7605_v0  ;;  %v4335_v42 = vsel %vm1710_vm7, %v4330_v29, %v10495_v34  ;;  %v10517_v52 = vpack.c.bf16 %v4138_v27, %v4134_v8  ;;  %v4401_v29 = vsel %vm1742_vm6, %v4390_v51, %v4400_v4  ;;  %v8760_v51 = vld [vmem:[%s11108_s17 + $0x180] sm:$0xff]  }
 0xaf6   : > { %v10506_v50 = vpop.f32.mrf.mxu1  ;;  %5368 = vmatprep.mubr.bf16.mxu1 %v4335_v42 }
 0xaf7   : > { %v7606_v43 = vpack.c.bf16 %v10506_v50, %v4138_v27  ;;  %7837 = vmatpush3.bf16.msra.mxu1 %v8744_v28  ;;  %7869 = vmatpush3.bf16.msra.mxu0 %v8745_v35  ;;  %v5600_v49 = vshll.u32 %v10517_v52, 16  ;;  %v5598_v8 = vshrl.u32 %v10517_v52, 16  ;;  %v8759_v35 = vld [vmem:[%s11108_s17 + $0x70] sm:$0xff]  }
 0xaf8   : > { %v4144_v45 = vpop.f32.mrf.mxu1  ;;  %7838 = vmatprep.subr.bf16.mxu1 %v8746_v37  ;;  %7870 = vmatprep.subr.bf16.mxu0 %v8747_v38  ;;  %v4320_v37 = vshll.u32 %v10472_v11, 16 }
 0xaf9   : > { %v5602_v12 = vrot.slane %v5600_v49, 1  ;;  %v4360_v49 = vshrl.u32 %v10470_v9, 16 }
 0xafa   : > { %v4146_v31 = vpop.f32.mrf.mxu1 }
 0xafb   : > { %7839 = vmatpush3.bf16.msra.mxu1 %v8748_v47  ;;  %7871 = vmatpush3.bf16.msra.mxu0 %v8749_v48  ;;  %v5603_v47 = vor.u32 %v5602_v12, %v5598_v8  ;;  %v8766_v8 = vld [vmem:[%s11108_s17 + $0x28] sm:$0xff]  }
 0xafc   : > { %v4148_v56 = vpop.f32.mrf.mxu1  ;;  %v5522_v57 = vld [vmem:[#allocation5 + $0x18] sm:$0xee]  ;;  %v4235_v60 = vld [vmem:[#allocation5 + $0x18] sm:$0x11]  ;;  %7840 = vmatprep.subr.bf16.mxu1 %v8750_v54  ;;  %7872 = vmatprep.subr.bf16.mxu0 %v8751_v55 }
 0xafd   : > { %v7475_v3 = vcombine.high %v5522_v57, %v7606_v43  ;;  %v7474_v5 = vcombine.low %v5522_v57, %v7606_v43  ;;  %v10542_v7 = vcombine.high %v4235_v60, %v4235_v60  ;;  %v10560_v0 = vpack.c.bf16 %v4148_v56, %v4144_v45  ;;  %v8762_v56 = vld [vmem:[%s11108_s17 + $0x2f8] sm:$0xff]  }
 0xafe   : > { %v4150_v62 = vpop.f32.mrf.mxu1 }
 0xaff   : > { %7841 = vmatpush3.bf16.msra.mxu1 %v8752_v58  ;;  %7873 = vmatpush3.bf16.msra.mxu0 %v8753_v59  ;;  %v10549_v18 = vpack.c.bf16 %v4150_v62, %v4146_v31  ;;  %v5680_v28 = vrot.slane %v7475_v3, 1  ;;  %v5677_v42 = vrot.slane %v7474_v5, 1  ;;  %v4364_v43 = vshll.u32 %v10542_v7, 16  ;;  %v8761_v31 = vld [vmem:[%s11108_s17 + $0x30] sm:$0xff]  }
 0xb00   : > { %v4154_v15 = vpop.f32.mrf.mxu1  ;;  %7842 = vmatprep.subr.bf16.mxu1 %v8754_v63  ;;  %7914 = vmatprep.subr.bf16.mxu0 %v8755_v61  ;;  %v5605_v45 = vshll.u32 %v10560_v0, 16  ;;  %v5678_v55 = vrot.slane %v10560_v0, 1  ;;  %v4313_v63 = vshrl.u32 %v10438_v53, 16  ;;  %v4322_v61 = vrot.slane %v4320_v37, 1 }
 0xb01   : > { %v5681_v48 = vrot.slane %v10549_v18, 1  ;;  %v10595_v62 = vcombine.low %v4235_v60, %v4235_v60  ;;  %v4366_v4 = vrot.slane %v4364_v43, 1  ;;  %v4362_v60 = vor.u32 %v4360_v49, %v10495_v34  ;;  %v8775_v43 = vld [vmem:[%s11108_s17 + $0x18] sm:$0xff]  }
 0xb02   : > { %v4156_v27 = vpop.f32.mrf.mxu1  ;;  %5418 = vmatmul.mubr.bf16.vlgmr.msra.gmra.mxu0 %v4388_v46  ;;  %v10584_v57 = vrot.slane %v5605_v45, 1  ;;  %v10600_v3 = vsel %vm1742_vm6, %v5677_v42, %v5678_v55  ;;  %v4318_v53 = vor.u32 %v4317_v13, %v4313_v63  ;;  %v10624_v46 = vld [vmem:[#allocation5 + $0x60] sm:$0xee]  ;;  %v8782_v49 = vld [vmem:[%s11108_s17 + $0x298] sm:$0xff]   ;;  %v8784_v63 = vld [vmem:[%s11108_s17 + $0x2d0] sm:$0xff]  }
 0xb03   : > { %v7609_v38 = vpack.c.bf16 %v4156_v27, %v4154_v15  ;;  %7843 = vmatpush3.bf16.msra.mxu1 %v8756_v17  ;;  %5425 = vmatprep.mubr.bf16.mxu0 %v4401_v29  ;;  %v10589_v58 = vsel %vm1742_vm6, %v5680_v28, %v5681_v48  ;;  %v4399_v15 = vsel %vm1742_vm6, %v4387_v39, %v4398_v40  ;;  %v8768_v17 = vld [vmem:[%s11108_s17 + $0x60] sm:$0xff]   ;;  %v4356_v34 = vshll.u32 %v10595_v62, 16  ;;  %v8772_v27 = vld [vmem:[%s11108_s17 + $0x2e8] sm:$0xff]   ;;  %v8780_v40 = vld [vmem:[%s11108_s17 + $0x2d8] sm:$0xff]  }
 0xb04   : > { %v4158_v54 = vpop.f32.mrf.mxu1  ;;  %7915 = vmatpush3.bf16.msra.mxu0 %v8757_v22  ;;  %7844 = vmatprep.subr.bf16.mxu1 %v8758_v24  ;;  %v10604_v5 = vsel %vm1710_vm7, %v5603_v47, %v10584_v57  ;;  %v4323_v12 = vsel %vm1710_vm7, %v4318_v53, %v4322_v61  ;;  %v4367_v22 = vsel %vm1710_vm7, %v4362_v60, %v4366_v4  ;;  %v4352_v39 = vshrl.u32 %v10472_v11, 16  ;;  %v8770_v24 = vld [vmem:[%s11108_s17 + $0x20] sm:$0xff]   ;;  %v8788_v53 = vld [vmem:[%s11108_s17 + $0x2c8] sm:$0xff]  }
 0xb05   : > { %4225 = vst [vmem:[#allocation5 + $0x78] sm:$0x11] %v7609_v38  ;;  %7916 = vmatprep.subr.bf16.mxu0 %v8759_v35  ;;  %v7358_v28 = vcombine.high %v10624_v46, %v10433_v44  ;;  %v4358_v29 = vrot.slane %v4356_v34, 1  ;;  %v8773_v35 = vld [vmem:[%s11108_s17 + $0x58] sm:$0xff]   ;;  %v8774_v38 = vld [vmem:[%s11108_s17 + $0x2a8] sm:$0xff]   ;;  %v8776_v47 = vld [vmem:[%s11108_s17 + $0x2e0] sm:$0xff]  }
 0xb06   : > { %v4159_v59 = vpop.f32.mrf.mxu1  ;;  %v4354_v37 = vor.u32 %v4352_v39, %v4322_v61  ;;  %v8777_v54 = vld [vmem:[%s11108_s17 + $0x50] sm:$0xff]   ;;  %v8785_v61 = vld [vmem:[%s11108_s17 + $0x40] sm:$0xff]   ;;  %v8790_v60 = vld [vmem:[%s11108_s17 + $0x288] sm:$0xff]  }
 0xb07   : > { %7845 = vmatpush3.bf16.msra.mxu1 %v8760_v51  ;;  %v4395_v42 = vrot.slane %v7358_v28, 1  ;;  %v8778_v51 = vld [vmem:[%s11108_s17 + $0x2a0] sm:$0xff]   ;;  %v8783_v59 = vld [vmem:[%s11108_s17 + $0x8] sm:$0xff]   ;;  %v8795_v34 = vld [vmem:[%s11108_s17 + $0x130] sm:$0xff]  }
 0xb08   : > { %7917 = vmatpush3.bf16.msra.mxu0 %v8761_v31  ;;  %7886 = vmatprep.subr.bf16.mxu1 %v8762_v56  ;;  %v4359_v45 = vsel %vm1710_vm7, %v4354_v37, %v4358_v29  ;;  %v8779_v31 = vld [vmem:[%s11108_s17 + $0x10] sm:$0xff]   ;;  %v8781_v56 = vld [vmem:[%s11108_s17 + $0x48] sm:$0xff]   ;;  %v8787_v4 = vld [vmem:[%s11108_s17] sm:$0xff]  }
 0xb09   : > { %7918 = vmatprep.subr.bf16.mxu0 %v8763_v10  ;;  %v8786_v10 = vld [vmem:[%s11108_s17 + $0x290] sm:$0xff]   ;;  %v8798_v39 = vld [vmem:[%s11108_s17 + $0xb8] sm:$0xff]   ;;  %v8801_v28 = vld [vmem:[%s11108_s17 + $0x160] sm:$0xff]  }
 0xb0a   : > { %5369 = vmatmul.mubr.bf16.vlgmr.msra.gmra.mxu1 %v4323_v12  ;;  %5426 = vmatmul.mubr.bf16.gmra.mxu0 %v4399_v15  ;;  %v8792_v12 = vld [vmem:[%s11108_s17 + $0x2c0] sm:$0xff]   ;;  %v8793_v15 = vld [vmem:[%s11108_s17 + $0x170] sm:$0xff]   ;;  %v8805_v37 = vld [vmem:[%s11108_s17 + $0x158] sm:$0xff]  }
 0xb0b   : > { %5376 = vmatprep.mubr.bf16.mxu1 %v4367_v22  ;;  %7887 = vmatpush3.bf16.msra.mxu1 %v8765_v6  ;;  %v8789_v6 = vld [vmem:[%s11108_s17 + $0x178] sm:$0xff]   ;;  %v8802_v29 = vld [vmem:[%s11108_s17 + $0xb0] sm:$0xff]  }
 0xb0c   : > { %7919 = vmatpush3.bf16.msra.mxu0 %v8766_v8  ;;  %6506 = vmatprep.mubr.bf16.mxu0 %v10356_v41  ;;  %v4396_v41 = vrot.slane %v10470_v9, 1  ;;  %v8791_v8 = vld [vmem:[%s11108_s17 + $0x138] sm:$0xff]   ;;  %v4402_v9 = vrot.slane %v10595_v62, 1 }
 0xb0d   : > { %7888 = vmatprep.subr.bf16.mxu1 %v8767_v16  ;;  %7920 = vmatprep.subr.bf16.mxu0 %v8768_v17  ;;  %v7357_v16 = vcombine.low %v10624_v46, %v10433_v44  ;;  %v8794_v17 = vld [vmem:[%s11108_s17 + $0x280] sm:$0xff]   ;;  %v8796_v22 = vld [vmem:[%s11108_s17 + $0xf8] sm:$0xff]   ;;  %v8797_v44 = vld [vmem:[%s11108_s17 + $0x168] sm:$0xff]   ;;  %v4404_v46 = vrot.slane %v10542_v7, 1 }
 0xb0e   : > { %v4397_v13 = vsel %vm1742_vm6, %v4395_v42, %v4396_v41  ;;  %v10766_v42 = vpack.c.bf16 %v10506_v50, %v10486_v21  ;;  %v8811_v21 = vld [vmem:[%s11108_s17 + $0x110] sm:$0xff]   ;;  %v5519_v50 = vld [vmem:[#allocation5 + $0x30] sm:$0x11] }
 0xb0f   : > { %7889 = vmatpush3.bf16.msra.mxu1 %v8769_v14  ;;  %v4392_v14 = vrot.slane %v7357_v16, 1  ;;  %v4405_v7 = vsel %vm1742_vm6, %v4396_v41, %v4404_v46  ;;  %v8804_v41 = vld [vmem:[%s11108_s17 + $0xe8] sm:$0xff]   ;;  %v8825_v16 = vld [vmem:[%s11108_s17 + $0xc0] sm:$0xff]  }
 0xb10   : > { %7921 = vmatpush3.bf16.msra.mxu0 %v8770_v24  ;;  %7890 = vmatprep.subr.bf16.mxu1 %v8772_v27  ;;  %v8799_v24 = vld [vmem:[%s11108_s17 + $0x128] sm:$0xff]   ;;  %v8800_v27 = vld [vmem:[%s11108_s17 + $0xf0] sm:$0xff]  }
 0xb11   : > { %7922 = vmatprep.subr.bf16.mxu0 %v8773_v35  ;;  %v8803_v35 = vld [vmem:[%s11108_s17 + $0x120] sm:$0xff]  }
 0xb12   : > { %5377 = vmatmul.mubr.bf16.gmra.mxu1 %v4359_v45  ;;  %v8810_v45 = vld [vmem:[%s11108_s17 + $0xa0] sm:$0xff]  }
 0xb13   : > { %7891 = vmatpush3.bf16.msra.mxu1 %v8774_v38  ;;  %5466 = vmatprep.mubr.bf16.mxu1 %v4397_v13  ;;  %v8806_v38 = vld [vmem:[%s11108_s17 + $0xa8] sm:$0xff]  }
 0xb14   : > { %7923 = vmatpush3.bf16.msra.mxu0 %v8775_v43  ;;  %7892 = vmatprep.subr.bf16.mxu1 %v8776_v47  ;;  %v8808_v43 = vld [vmem:[%s11108_s17 + $0xe0] sm:$0xff]   ;;  %v8809_v47 = vld [vmem:[%s11108_s17 + $0x150] sm:$0xff]   ;;  %v8813_v13 = vld [vmem:[%s11108_s17 + $0x148] sm:$0xff]  }
 0xb15   : > { %7924 = vmatprep.subr.bf16.mxu0 %v8777_v54  ;;  %v8812_v54 = vld [vmem:[%s11108_s17 + $0xd8] sm:$0xff]  }
 0xb17   : > { %7893 = vmatpush3.bf16.msra.mxu1 %v8778_v51  ;;  %v10787_v51 = vcombine.high %v5519_v50, %v5519_v50 }
 0xb18   : > { %7925 = vmatpush3.bf16.msra.mxu0 %v8779_v31  ;;  %7894 = vmatprep.subr.bf16.mxu1 %v8780_v40  ;;  %v8814_v31 = vld [vmem:[%s11108_s17 + $0x98] sm:$0xff]   ;;  %v8815_v40 = vld [vmem:[%s11108_s17 + $0x108] sm:$0xff]  }
 0xb19   : > { %7926 = vmatprep.subr.bf16.mxu0 %v8781_v56  ;;  %v8816_v56 = vld [vmem:[%s11108_s17 + $0xd0] sm:$0xff]  }
 0xb1b   : > { %7895 = vmatpush3.bf16.msra.mxu1 %v8782_v49  ;;  %v8817_v49 = vld [vmem:[%s11108_s17 + $0x140] sm:$0xff]  }
 0xb1c   : > { %7927 = vmatpush3.bf16.msra.mxu0 %v8783_v59  ;;  %7896 = vmatprep.subr.bf16.mxu1 %v8784_v63  ;;  %v5633_v59 = vshll.u32 %v10787_v51, 16  ;;  %v8818_v63 = vld [vmem:[%s11108_s17 + $0x90] sm:$0xff]  }
 0xb1d   : > { %7928 = vmatprep.subr.bf16.mxu0 %v8785_v61  ;;  %v8819_v61 = vld [vmem:[%s11108_s17 + $0x100] sm:$0xff]  }
 0xb1f   : > { %7897 = vmatpush3.bf16.msra.mxu1 %v8786_v10  ;;  %v8820_v10 = vld [vmem:[%s11108_s17 + $0xc8] sm:$0xff]  }
 0xb20   : > { %7929 = vmatpush3.bf16.msra.mxu0 %v8787_v4  ;;  %7898 = vmatprep.subr.bf16.mxu1 %v8788_v53  ;;  %v8821_v4 = vld [vmem:[%s11108_s17 + $0x278] sm:$0xff]   ;;  %v10814_v53 = vcombine.low %v5519_v50, %v5519_v50  ;;  %v8845_v50 = vld [vmem:[%s11108_s17 + $0x210] sm:$0xff]  }
 0xb21   : > { %7970 = vmatprep.subr.bf16.mxu0 %v8789_v6  ;;  %v5629_v6 = vshrl.u32 %v10377_v1, 16 }
 0xb23   : > { %6507 = vmatmul.mubr.bf16.vlgmr.msra.gmra.mxu0 %v10347_v32  ;;  %7899 = vmatpush3.bf16.msra.mxu1 %v8790_v60  ;;  %v4393_v32 = vrot.slane %v10472_v11, 1  ;;  %v5635_v60 = vrot.slane %v5633_v59, 1  ;;  %v8852_v59 = vld [vmem:[%s11108_s17 + $0x190] sm:$0xff]  }
 0xb24   : > { %6514 = vmatprep.mubr.bf16.mxu0 %v10377_v1  ;;  %7971 = vmatpush3.bf16.msra.mxu0 %v8791_v8  ;;  %v8822_v8 = vld [vmem:[%s11108_s17 + $0x88] sm:$0xff]   ;;  %v8860_v1 = vld [vmem:[%s11108_s17 + $0x2b8] sm:$0xff]  }
 0xb25   : > { %7900 = vmatprep.subr.bf16.mxu1 %v8792_v12  ;;  %7972 = vmatprep.subr.bf16.mxu0 %v8793_v15  ;;  %v4394_v11 = vsel %vm1742_vm6, %v4392_v14, %v4393_v32  ;;  %v4403_v62 = vsel %vm1742_vm6, %v4393_v32, %v4402_v9  ;;  %v5631_v12 = vor.u32 %v5629_v6, %v10396_v23  ;;  %v8824_v15 = vld [vmem:[%s11108_s17 + $0x238] sm:$0xff]   ;;  %v8827_v23 = vld [vmem:[%s11108_s17 + $0x80] sm:$0xff]   ;;  %v8828_v32 = vld [vmem:[%s11108_s17 + $0x230] sm:$0xff]   ;;  %v5617_v9 = vshll.u32 %v10549_v18, 16 }
 0xb26   : > { %v8831_v14 = vld [vmem:[%s11108_s17 + $0x268] sm:$0xff]  }
 0xb27   : > { %7901 = vmatpush3.bf16.msra.mxu1 %v8794_v17  ;;  %v8826_v17 = vld [vmem:[%s11108_s17 + $0x270] sm:$0xff]   ;;  %v8855_v6 = vld [vmem:[%s11108_s17 + $0x188] sm:$0xff]  }
 0xb28   : > { %7973 = vmatpush3.bf16.msra.mxu0 %v8795_v34  ;;  %7942 = vmatprep.subr.bf16.mxu1 %v8796_v22  ;;  %v5625_v34 = vshll.u32 %v10814_v53, 16  ;;  %v5636_v22 = vsel %vm1710_vm7, %v5631_v12, %v5635_v60  ;;  %v5685_v60 = vrot.slane %v10787_v51, 1  ;;  %v5645_v12 = vshrl.u32 %v10549_v18, 16  ;;  %v8857_v51 = vld [vmem:[%s11108_s17 + $0x180] sm:$0xff]  }
 0xb29   : > { %7974 = vmatprep.subr.bf16.mxu0 %v8797_v44  ;;  %v8830_v44 = vld [vmem:[%s11108_s17 + $0x1f8] sm:$0xff]  }
 0xb2a   : > { %5467 = vmatmul.mubr.bf16.vlgmr.msra.gmra.mxu1 %v4394_v11  ;;  %v5627_v46 = vrot.slane %v5625_v34, 1  ;;  %v8832_v11 = vld [vmem:[%s11108_s17 + $0x1b8] sm:$0xff]  }
 0xb2b   : > { %6515 = vmatmul.mubr.bf16.gmra.mxu0 %v10379_v2  ;;  %5474 = vmatprep.mubr.bf16.mxu1 %v4405_v7  ;;  %v8834_v7 = vld [vmem:[%s11108_s17 + $0x1f0] sm:$0xff]  }
 0xb2c   : > { %7943 = vmatpush3.bf16.msra.mxu1 %v8798_v39  ;;  %7975 = vmatpush3.bf16.msra.mxu0 %v8799_v24  ;;  %v5612_v39 = vshll.u32 %v10766_v42, 16 }
 0xb2d   : > { %6604 = vmatprep.mubr.bf16.mxu0 %v10418_v25  ;;  %7944 = vmatprep.subr.bf16.mxu1 %v8800_v27  ;;  %v8807_v25 = vld [vmem:[%s11108_s17 + $0x118] sm:$0xff]   ;;  %v8833_v27 = vld [vmem:[%s11108_s17 + $0x228] sm:$0xff]  }
 0xb2e   : > { %7976 = vmatprep.subr.bf16.mxu0 %v8801_v28 }
 0xb30   : > { %7945 = vmatpush3.bf16.msra.mxu1 %v8802_v29  ;;  %7977 = vmatpush3.bf16.msra.mxu0 %v8803_v35  ;;  %v5610_v29 = vshrl.u32 %v10766_v42, 16  ;;  %v5614_v35 = vrot.slane %v5612_v39, 1 }
 0xb31   : > { %7946 = vmatprep.subr.bf16.mxu1 %v8804_v41  ;;  %7978 = vmatprep.subr.bf16.mxu0 %v8805_v37  ;;  %v8836_v41 = vld [vmem:[%s11108_s17 + $0x1b0] sm:$0xff]   ;;  %v8837_v37 = vld [vmem:[%s11108_s17 + $0x220] sm:$0xff]  }
 0xb32   : > { %5475 = vmatmul.mubr.bf16.gmra.mxu1 %v4403_v62  ;;  %v8840_v62 = vld [vmem:[%s11108_s17 + $0x1a8] sm:$0xff]  }
 0xb33   : > { %6555 = vmatprep.mubr.bf16.mxu1 %v10766_v42  ;;  %v8841_v42 = vld [vmem:[%s11108_s17 + $0x218] sm:$0xff]  }
 0xb34   : > { %7947 = vmatpush3.bf16.msra.mxu1 %v8806_v38  ;;  %7979 = vmatpush3.bf16.msra.mxu0 %v8807_v25  ;;  %v5615_v38 = vor.u32 %v5614_v35, %v5610_v29  ;;  %v5619_v25 = vrot.slane %v5617_v9, 1  ;;  %v8874_v29 = vld [vmem:[%s11108_s17 + $0x2c0] sm:$0xff]  }
 0xb35   : > { %7948 = vmatprep.subr.bf16.mxu1 %v8808_v43  ;;  %7980 = vmatprep.subr.bf16.mxu0 %v8809_v47  ;;  %v8842_v43 = vld [vmem:[%s11108_s17 + $0x1e0] sm:$0xff]   ;;  %v8843_v47 = vld [vmem:[%s11108_s17 + $0x250] sm:$0xff]  }
 0xb36   : > { %v8875_v35 = vld [vmem:[%s11108_s17 + $0x280] sm:$0xff]  }
 0xb38   : > { %7949 = vmatpush3.bf16.msra.mxu1 %v8810_v45  ;;  %7981 = vmatpush3.bf16.msra.mxu0 %v8811_v21  ;;  %v5620_v45 = vsel %vm1710_vm7, %v5615_v38, %v5619_v25  ;;  %v8844_v21 = vld [vmem:[%s11108_s17 + $0x1a0] sm:$0xff]  }
 0xb39   : > { %7950 = vmatprep.subr.bf16.mxu1 %v8812_v54  ;;  %7982 = vmatprep.subr.bf16.mxu0 %v8813_v13  ;;  %v8846_v54 = vld [vmem:[%s11108_s17 + $0x1d8] sm:$0xff]   ;;  %v8847_v13 = vld [vmem:[%s11108_s17 + $0x248] sm:$0xff]  }
 0xb3c   : > { %7951 = vmatpush3.bf16.msra.mxu1 %v8814_v31  ;;  %7983 = vmatpush3.bf16.msra.mxu0 %v8815_v40  ;;  %v8848_v31 = vld [vmem:[%s11108_s17 + $0x198] sm:$0xff]   ;;  %v8849_v40 = vld [vmem:[%s11108_s17 + $0x208] sm:$0xff]  }
 0xb3d   : > { %7952 = vmatprep.subr.bf16.mxu1 %v8816_v56  ;;  %7984 = vmatprep.subr.bf16.mxu0 %v8817_v49  ;;  %v8850_v56 = vld [vmem:[%s11108_s17 + $0x1d0] sm:$0xff]   ;;  %v8851_v49 = vld [vmem:[%s11108_s17 + $0x240] sm:$0xff]  }
 0xb40   : > { %7953 = vmatpush3.bf16.msra.mxu1 %v8818_v63  ;;  %7985 = vmatpush3.bf16.msra.mxu0 %v8819_v61  ;;  %v5520_v63 = vld [vmem:[#allocation5 + $0x78] sm:$0x11] }
 0xb41   : > { %7954 = vmatprep.subr.bf16.mxu1 %v8820_v10  ;;  %8026 = vmatprep.subr.bf16.mxu0 %v8821_v4  ;;  %v8853_v61 = vld [vmem:[%s11108_s17 + $0x200] sm:$0xff]   ;;  %v8854_v10 = vld [vmem:[%s11108_s17 + $0x1c8] sm:$0xff]   ;;  %v10925_v4 = vcombine.high %v5520_v63, %v5520_v63  ;;  %v7470_v34 = vcombine.low %v5520_v63, %v5520_v63 }
 0xb43   : > { %6605 = vmatmul.mubr.bf16.vlgmr.msra.gmra.mxu0 %v10422_v36  ;;  %v5621_v36 = vshrl.u32 %v10379_v2, 16  ;;  %v8865_v2 = vld [vmem:[%s11108_s17 + $0x2a8] sm:$0xff]   ;;  %v5689_v9 = vrot.slane %v10925_v4, 1 }
 0xb44   : > { %7955 = vmatpush3.bf16.msra.mxu1 %v8822_v8  ;;  %6612 = vmatprep.mubr.bf16.mxu0 %v5636_v22  ;;  %v8856_v8 = vld [vmem:[%s11108_s17 + $0x1c0] sm:$0xff]   ;;  %v5683_v22 = vrot.slane %v10814_v53, 1 }
 0xb45   : > { %8027 = vmatpush3.bf16.msra.mxu0 %v8824_v15  ;;  %7956 = vmatprep.subr.bf16.mxu1 %v8825_v16  ;;  %v5623_v24 = vor.u32 %v5621_v36, %v10398_v26  ;;  %v8835_v26 = vld [vmem:[%s11108_s17 + $0x260] sm:$0xff]   ;;  %v5649_v15 = vshll.u32 %v10925_v4, 16  ;;  %v5686_v16 = vsel %vm1742_vm6, %v5675_v19, %v5685_v60  ;;  %v8861_v19 = vld [vmem:[%s11108_s17 + $0x2f0] sm:$0xff]  }
 0xb46   : > { %8028 = vmatprep.subr.bf16.mxu0 %v8826_v17  ;;  %v8858_v17 = vld [vmem:[%s11108_s17 + $0x2f8] sm:$0xff]   ;;  %v5684_v53 = vsel %vm1742_vm6, %v5672_v20, %v5683_v22 }
 0xb47   : > { %v5628_v28 = vsel %vm1710_vm7, %v5623_v24, %v5627_v46  ;;  %v8862_v46 = vld [vmem:[%s11108_s17 + $0x2b0] sm:$0xff]   ;;  %v8866_v24 = vld [vmem:[%s11108_s17 + $0x2e0] sm:$0xff]  }
 0xb48   : > { %7957 = vmatpush3.bf16.msra.mxu1 %v8827_v23  ;;  %v5647_v23 = vor.u32 %v5645_v12, %v5619_v25 }
 0xb49   : > { %8029 = vmatpush3.bf16.msra.mxu0 %v8828_v32  ;;  %7998 = vmatprep.subr.bf16.mxu1 %v8830_v44  ;;  %v5637_v32 = vshrl.u32 %v10560_v0, 16  ;;  %v5641_v44 = vshll.u32 %v7470_v34, 16 }
 0xb4a   : > { %8030 = vmatprep.subr.bf16.mxu0 %v8831_v14 }
 0xb4b   : > { %6556 = vmatmul.mubr.bf16.vlgmr.msra.gmra.mxu1 %v10517_v52  ;;  %6613 = vmatmul.mubr.bf16.gmra.mxu0 %v5628_v28  ;;  %v8838_v52 = vld [vmem:[%s11108_s17 + $0x1e8] sm:$0xff]   ;;  %v5639_v14 = vor.u32 %v5637_v32, %v10584_v57  ;;  %v5643_v39 = vrot.slane %v5641_v44, 1  ;;  %v8867_v57 = vld [vmem:[%s11108_s17 + $0x2a0] sm:$0xff]  }
 0xb4c   : > { %7999 = vmatpush3.bf16.msra.mxu1 %v8832_v11  ;;  %6702 = vmatprep.mubr.bf16.mxu0 %v10408_v30  ;;  %v8839_v30 = vld [vmem:[%s11108_s17 + $0x258] sm:$0xff]   ;;  %v8872_v28 = vld [vmem:[%s11108_s17 + $0x2c8] sm:$0xff]  }
 0xb4d   : > { %8031 = vmatpush3.bf16.msra.mxu0 %v8833_v27  ;;  %8000 = vmatprep.subr.bf16.mxu1 %v8834_v7  ;;  %v5644_v20 = vsel %vm1710_vm7, %v5639_v14, %v5643_v39  ;;  %v8868_v11 = vld [vmem:[%s11108_s17 + $0x2d8] sm:$0xff]   ;;  %v8871_v7 = vld [vmem:[%s11108_s17 + $0x290] sm:$0xff]  }
 0xb4e   : > { %8032 = vmatprep.subr.bf16.mxu0 %v8835_v26  ;;  %6563 = vmatprep.mubr.bf16.mxu1 %v10549_v18  ;;  %v8869_v27 = vld [vmem:[%s11108_s17 + $0x298] sm:$0xff]   ;;  %v8873_v26 = vld [vmem:[%s11108_s17 + $0x288] sm:$0xff]  }
 0xb50   : > { %8001 = vmatpush3.bf16.msra.mxu1 %v8836_v41  ;;  %v5690_v41 = vsel %vm1742_vm6, %v5681_v48, %v5689_v9 }
 0xb51   : > { %8033 = vmatpush3.bf16.msra.mxu0 %v8837_v37  ;;  %8002 = vmatprep.subr.bf16.mxu1 %v8838_v52  ;;  %v5687_v37 = vrot.slane %v7470_v34, 1 }
 0xb52   : > { %8034 = vmatprep.subr.bf16.mxu0 %v8839_v30 }
 0xb53   : > { %6564 = vmatmul.mubr.bf16.gmra.mxu1 %v10560_v0  ;;  %v5688_v52 = vsel %vm1742_vm6, %v5678_v55, %v5687_v37 }
 0xb54   : > { %8003 = vmatpush3.bf16.msra.mxu1 %v8840_v62  ;;  %6653 = vmatprep.mubr.bf16.mxu1 %v5620_v45 }
 0xb55   : > { %8035 = vmatpush3.bf16.msra.mxu0 %v8841_v42  ;;  %8004 = vmatprep.subr.bf16.mxu1 %v8842_v43 }
 0xb56   : > { %8036 = vmatprep.subr.bf16.mxu0 %v8843_v47 }
 0xb58   : > { %8005 = vmatpush3.bf16.msra.mxu1 %v8844_v21 }
 0xb59   : > { %8037 = vmatpush3.bf16.msra.mxu0 %v8845_v50  ;;  %8006 = vmatprep.subr.bf16.mxu1 %v8846_v54 }
 0xb5a   : > { %8038 = vmatprep.subr.bf16.mxu0 %v8847_v13 }
 0xb5c   : > { %8007 = vmatpush3.bf16.msra.mxu1 %v8848_v31 }
 0xb5d   : > { %8039 = vmatpush3.bf16.msra.mxu0 %v8849_v40  ;;  %8008 = vmatprep.subr.bf16.mxu1 %v8850_v56 }
 0xb5e   : > { %8040 = vmatprep.subr.bf16.mxu0 %v8851_v49 }
 0xb60   : > { %8009 = vmatpush3.bf16.msra.mxu1 %v8852_v59 }
 0xb61   : > { %8041 = vmatpush3.bf16.msra.mxu0 %v8853_v61  ;;  %8010 = vmatprep.subr.bf16.mxu1 %v8854_v10 }
 0xb64   : > { %6703 = vmatmul.mubr.bf16.vlgmr.msra.gmra.mxu0 %v10413_v33  ;;  %8011 = vmatpush3.bf16.msra.mxu1 %v8855_v6  ;;  %v5651_v33 = vrot.slane %v5649_v15, 1 }
 0xb65   : > { %6710 = vmatprep.mubr.bf16.mxu0 %v5686_v16  ;;  %8012 = vmatprep.subr.bf16.mxu1 %v8856_v8 }
 0xb66   : > { %v5652_v36 = vsel %vm1710_vm7, %v5647_v23, %v5651_v33 }
 0xb68   : > { %8013 = vmatpush3.bf16.msra.mxu1 %v8857_v51  ;;  %v11009_v51 = vld [vmem:[#allocation18] ss:$0 sm:$0xff] }
 0xb69   : > { %8054 = vmatprep.subr.bf16.mxu1 %v8858_v17 }
 0xb6b   : > { %6654 = vmatmul.mubr.bf16.vlgmr.msra.gmra.mxu1 %v10604_v5  ;;  %v8864_v5 = vld [vmem:[%s11108_s17 + $0x2e8] sm:$0xff]  }
 0xb6c   : > { %6711 = vmatmul.mubr.bf16.gmra.mxu0 %v5684_v53  ;;  %6661 = vmatprep.mubr.bf16.mxu1 %v5652_v36 }
 0xb6d   : > { %8055 = vmatpush3.bf16.msra.mxu1 %v8860_v1 }
 0xb6e   : > { %8056 = vmatprep.subr.bf16.mxu1 %v8861_v19 }
 0xb71   : > { %8057 = vmatpush3.bf16.msra.mxu1 %v8862_v46 }
 0xb72   : > { %8058 = vmatprep.subr.bf16.mxu1 %v8864_v5 }
 0xb73   : > { %6662 = vmatmul.mubr.bf16.gmra.mxu1 %v5644_v20 }
 0xb74   : > { %6751 = vmatprep.mubr.bf16.mxu1 %v10589_v58  ;;  %v8870_v58 = vld [vmem:[%s11108_s17 + $0x2d0] sm:$0xff]  }
 0xb75   : > { %8059 = vmatpush3.bf16.msra.mxu1 %v8865_v2 }
 0xb76   : > { %8060 = vmatprep.subr.bf16.mxu1 %v8866_v24 }
 0xb79   : > { %8061 = vmatpush3.bf16.msra.mxu1 %v8867_v57 }
 0xb7a   : > { %8062 = vmatprep.subr.bf16.mxu1 %v8868_v11 }
 0xb7d   : > { %8063 = vmatpush3.bf16.msra.mxu1 %v8869_v27 }
 0xb7e   : > { %8064 = vmatprep.subr.bf16.mxu1 %v8870_v58 }
 0xb81   : > { %8065 = vmatpush3.bf16.msra.mxu1 %v8871_v7 }
 0xb82   : > { %8066 = vmatprep.subr.bf16.mxu1 %v8872_v28  ;;  %v7762_v30 = vpop.f32.mrf.mxu0 }
 0xb84   : > { %v7763_v38 = vpop.f32.mrf.mxu0 }
 0xb85   : > { %8067 = vmatpush3.bf16.msra.mxu1 %v8873_v26  ;;  %v7764_v16 = vadd.f32 %v7763_v38, %v7762_v30 }
 0xb86   : > { %8068 = vmatprep.subr.bf16.mxu1 %v8874_v29  ;;  %v7765_v25 = vpop.f32.mrf.mxu0 }
 0xb87   : > { %v5224_v33 = vadd.f32 %v7764_v16, %v11009_v51 }
 0xb88   : > { %v7766_v62 = vpop.f32.mrf.mxu0 }
 0xb89   : > { %8069 = vmatpush3.bf16.msra.mxu1 %v8875_v35  ;;  %v7767_v34 = vadd.f32 %v7766_v62, %v7765_v25 }
 0xb8a   : > { %v7768_v42 = vpop.f32.mrf.mxu0 }
 0xb8b   : > { %v5227_v32 = vadd.f32 %v7767_v34, %v11009_v51 }
 0xb8c   : > { %6752 = vmatmul.mubr.bf16.vlgmr.msra.gmra.mxu1 %v10600_v3  ;;  %v7769_v47 = vpop.f32.mrf.mxu0 }
 0xb8d   : > { %6759 = vmatprep.mubr.bf16.mxu1 %v5690_v41  ;;  %v7770_v36 = vadd.f32 %v7769_v47, %v7768_v42 }
 0xb8e   : > { %v7771_v3 = vpop.f32.mrf.mxu0 }
 0xb8f   : > { %v5232_v58 = vadd.f32 %v7770_v36, %v11009_v51 }
 0xb90   : > { %v7772_v18 = vpop.f32.mrf.mxu0 }
 0xb91   : > { %v7773_v20 = vadd.f32 %v7772_v18, %v7771_v3 }
 0xb93   : > { %v5235_v41 = vadd.f32 %v7773_v20, %v11009_v51 }
 0xb94   : > { %6760 = vmatmul.mubr.bf16.gmra.mxu1 %v5688_v52 }
 0xba2   : > { %v7818_v50 = vpop.f32.mrf.mxu0 }
 0xba4   : > { %v7819_v54 = vpop.f32.mrf.mxu0 }
 0xba5   : > { %v7820_v46 = vadd.f32 %v7819_v54, %v7818_v50 }
 0xba6   : > { %v7821_v31 = vpop.f32.mrf.mxu0 }
 0xba8   : > { %v7822_v40 = vpop.f32.mrf.mxu0 }
 0xba9   : > { %v7823_v24 = vadd.f32 %v7822_v40, %v7821_v31 }
 0xbaa   : > { %v7790_v43 = vpop.f32.mrf.mxu1  ;;  %v7824_v56 = vpop.f32.mrf.mxu0 }
 0xbac   : > { %v7791_v45 = vpop.f32.mrf.mxu1  ;;  %v7825_v63 = vpop.f32.mrf.mxu0 }
 0xbad   : > { %v7792_v17 = vadd.f32 %v7791_v45, %v7790_v43  ;;  %v7826_v38 = vadd.f32 %v7825_v63, %v7824_v56 }
 0xbae   : > { %v7793_v21 = vpop.f32.mrf.mxu1  ;;  %v7827_v10 = vpop.f32.mrf.mxu0 }
 0xbaf   : > { %v5273_v19 = vadd.f32 %v7792_v17, %v5224_v33 }
 0xbb0   : > { %v7794_v48 = vpop.f32.mrf.mxu1  ;;  %v7828_v6 = vpop.f32.mrf.mxu0 }
 0xbb1   : > { %v7795_v1 = vadd.f32 %v7794_v48, %v7793_v21  ;;  %v5322_v2 = vadd.f32 %v7820_v46, %v5273_v19  ;;  %v7829_v18 = vadd.f32 %v7828_v6, %v7827_v10 }
 0xbb2   : > { %v7796_v13 = vpop.f32.mrf.mxu1 }
 0xbb3   : > { %v5276_v39 = vadd.f32 %v7795_v1, %v5227_v32 }
 0xbb4   : > { %v7797_v0 = vpop.f32.mrf.mxu1 }
 0xbb5   : > { %v7798_v5 = vadd.f32 %v7797_v0, %v7796_v13  ;;  %v5325_v28 = vadd.f32 %v7823_v24, %v5276_v39 }
 0xbb6   : > { %v7799_v55 = vpop.f32.mrf.mxu1 }
 0xbb7   : > { %v5281_v29 = vadd.f32 %v7798_v5, %v5232_v58 }
 0xbb8   : > { %v7800_v49 = vpop.f32.mrf.mxu1 }
 0xbb9   : > { %v7801_v35 = vadd.f32 %v7800_v49, %v7799_v55  ;;  %v5330_v3 = vadd.f32 %v7826_v38, %v5281_v29 }
 0xbbb   : > { %v5284_v45 = vadd.f32 %v7801_v35, %v5235_v41 }
 0xbc2   : > { %v7874_v60 = vpop.f32.mrf.mxu0 }
 0xbc4   : > { %v7875_v12 = vpop.f32.mrf.mxu0 }
 0xbc5   : > { %v7876_v9 = vadd.f32 %v7875_v12, %v7874_v60 }
 0xbc6   : > { %v7877_v22 = vpop.f32.mrf.mxu0 }
 0xbc8   : > { %v7878_v44 = vpop.f32.mrf.mxu0 }
 0xbc9   : > { %v7879_v43 = vadd.f32 %v7878_v44, %v7877_v22 }
 0xbca   : > { %v7846_v59 = vpop.f32.mrf.mxu1  ;;  %v7880_v57 = vpop.f32.mrf.mxu0 }
 0xbcc   : > { %v7847_v61 = vpop.f32.mrf.mxu1  ;;  %v7881_v37 = vpop.f32.mrf.mxu0 }
 0xbcd   : > { %v7848_v14 = vadd.f32 %v7847_v61, %v7846_v59  ;;  %v7882_v49 = vadd.f32 %v7881_v37, %v7880_v57  ;;  %v5333_v59 = vadd.f32 %v7829_v18, %v5284_v45 }
 0xbce   : > { %v7849_v4 = vpop.f32.mrf.mxu1  ;;  %v7883_v50 = vpop.f32.mrf.mxu0 }
 0xbcf   : > { %v5371_v7 = vadd.f32 %v7848_v14, %v5322_v2 }
 0xbd0   : > { %v7850_v8 = vpop.f32.mrf.mxu1  ;;  %v7884_v63 = vpop.f32.mrf.mxu0 }
 0xbd1   : > { %v7851_v11 = vadd.f32 %v7850_v8, %v7849_v4  ;;  %v5420_v62 = vadd.f32 %v7876_v9, %v5371_v7  ;;  %v7885_v10 = vadd.f32 %v7884_v63, %v7883_v50 }
 0xbd2   : > { %v7852_v15 = vpop.f32.mrf.mxu1 }
 0xbd3   : > { %v5374_v52 = vadd.f32 %v7851_v11, %v5325_v28 }
 0xbd4   : > { %v7853_v23 = vpop.f32.mrf.mxu1 }
 0xbd5   : > { %v7854_v25 = vadd.f32 %v7853_v23, %v7852_v15  ;;  %v5423_v48 = vadd.f32 %v7879_v43, %v5374_v52 }
 0xbd6   : > { %v7855_v53 = vpop.f32.mrf.mxu1 }
 0xbd7   : > { %v5379_v13 = vadd.f32 %v7854_v25, %v5330_v3 }
 0xbd8   : > { %v7856_v27 = vpop.f32.mrf.mxu1 }
 0xbd9   : > { %v7857_v31 = vadd.f32 %v7856_v27, %v7855_v53  ;;  %v5428_v8 = vadd.f32 %v7882_v49, %v5379_v13 }
 0xbdb   : > { %v5382_v4 = vadd.f32 %v7857_v31, %v5333_v59 }
 0xbdd   : > { %v5431_v34 = vadd.f32 %v7885_v10, %v5382_v4 }
 0xbe3   : > { %v7930_v1 = vpop.f32.mrf.mxu0 }
 0xbe5   : > { %v7931_v44 = vpop.f32.mrf.mxu0 }
 0xbe7   : > { %v7933_v46 = vpop.f32.mrf.mxu0 }
 0xbe9   : > { %v7934_v5 = vpop.f32.mrf.mxu0 }
 0xbea   : > { %v7902_v26 = vpop.f32.mrf.mxu1  ;;  %v7935_v49 = vadd.f32 %v7934_v5, %v7933_v46 }
 0xbeb   : > { %v7936_v24 = vpop.f32.mrf.mxu0 }
 0xbec   : > { %v7903_v30 = vpop.f32.mrf.mxu1 }
 0xbed   : > { %v7904_v42 = vadd.f32 %v7903_v30, %v7902_v26  ;;  %v7937_v27 = vpop.f32.mrf.mxu0 }
 0xbee   : > { %v7905_v47 = vpop.f32.mrf.mxu1 }
 0xbef   : > { %v5469_v21 = vadd.f32 %v7904_v42, %v5420_v62  ;;  %v7939_v28 = vpop.f32.mrf.mxu0 }
 0xbf0   : > { %v7906_v54 = vpop.f32.mrf.mxu1 }
 0xbf1   : > { %v7456_v0 = vmul.f32 -1.442695, %v5469_v21  ;;  %v7907_v40 = vadd.f32 %v7906_v54, %v7905_v47  ;;  %v7940_v35 = vpop.f32.mrf.mxu0 }
 0xbf2   : > { %v7908_v55 = vpop.f32.mrf.mxu1 }
 0xbf3   : > { %8876 = vpow2.f32 %v7456_v0  ;;  %v5472_v56 = vadd.f32 %v7907_v40, %v5423_v48  ;;  %v7932_v40 = vadd.f32 %v7931_v44, %v7930_v1 }
 0xbf4   : > { %v7909_v61 = vpop.f32.mrf.mxu1 }
 0xbf5   : > { %v7457_v60 = vmul.f32 -1.442695, %v5472_v56  ;;  %v7910_v12 = vadd.f32 %v7909_v61, %v7908_v55  ;;  %v6509_v63 = vadd.f32 %v7932_v40, %v11009_v51 }
 0xbf6   : > { %v7911_v15 = vpop.f32.mrf.mxu1 }
 0xbf7   : > { %8878 = vpow2.f32 %v7457_v60  ;;  %v5477_v6 = vadd.f32 %v7910_v12, %v5428_v8  ;;  %v6512_v60 = vadd.f32 %v7935_v49, %v11009_v51 }
 0xbf8   : > { %v7912_v16 = vpop.f32.mrf.mxu1 }
 0xbf9   : > { %v7458_v17 = vmul.f32 -1.442695, %v5477_v6  ;;  %v7913_v22 = vadd.f32 %v7912_v16, %v7911_v15  ;;  %v7938_v15 = vadd.f32 %v7937_v27, %v7936_v24 }
 0xbfb   : > { %8880 = vpow2.f32 %v7458_v17  ;;  %v5480_v23 = vadd.f32 %v7913_v22, %v5431_v34  ;;  %v7941_v22 = vadd.f32 %v7940_v35, %v7939_v28 }
 0xbfd   : > { %v7459_v33 = vmul.f32 -1.442695, %v5480_v23  ;;  %v6520_v5 = vadd.f32 %v7941_v22, %v11009_v51 }
 0xbff   : > { %8882 = vpow2.f32 %v7459_v33 }
 0xc00   : > { %v8877_v19 = vpop.eup %8876 }
 0xc01   : > { %v5495_v32 = vadd.f32 1.0, %v8877_v19 }
 0xc03   : > { %8884 = vrcp.f32 %v5495_v32  ;;  %v7986_v41 = vpop.f32.mrf.mxu0  ;;  %v6517_v32 = vadd.f32 %v7938_v15, %v11009_v51 }
 0xc04   : > { %v8879_v53 = vpop.eup %8878 }
 0xc05   : > { %v5496_v36 = vadd.f32 1.0, %v8879_v53  ;;  %v7987_v52 = vpop.f32.mrf.mxu0 }
 0xc06   : > { %v7988_v10 = vadd.f32 %v7987_v52, %v7986_v41 }
 0xc07   : > { %8886 = vrcp.f32 %v5496_v36  ;;  %v7989_v38 = vpop.f32.mrf.mxu0 }
 0xc08   : > { %v8881_v14 = vpop.eup %8880 }
 0xc09   : > { %v5497_v39 = vadd.f32 1.0, %v8881_v14  ;;  %v7990_v62 = vpop.f32.mrf.mxu0 }
 0xc0a   : > { %v7991_v23 = vadd.f32 %v7990_v62, %v7989_v38 }
 0xc0b   : > { %8888 = vrcp.f32 %v5497_v39  ;;  %v7958_v11 = vpop.f32.mrf.mxu1  ;;  %v7992_v43 = vpop.f32.mrf.mxu0 }
 0xc0c   : > { %v8883_v2 = vpop.eup %8882 }
 0xc0d   : > { %v5498_v20 = vadd.f32 1.0, %v8883_v2  ;;  %v7959_v7 = vpop.f32.mrf.mxu1  ;;  %v7993_v3 = vpop.f32.mrf.mxu0 }
 0xc0e   : > { %v7960_v55 = vadd.f32 %v7959_v7, %v7958_v11 }
 0xc0f   : > { %8890 = vrcp.f32 %v5498_v20  ;;  %v7961_v29 = vpop.f32.mrf.mxu1  ;;  %v7995_v18 = vpop.f32.mrf.mxu0 }
 0xc10   : > { %v8885_v57 = vpop.eup %8884  ;;  %v6558_v4 = vadd.f32 %v7960_v55, %v6509_v63 }
 0xc11   : > { %5507 = vst.msk [vmem:[%s11018_s25] sm:$0xff] %vm1040_vm1, %v8885_v57  ;;  %v7962_v37 = vpop.f32.mrf.mxu1  ;;  %v7996_v48 = vpop.f32.mrf.mxu0  ;;  %v7994_v57 = vadd.f32 %v7993_v3, %v7992_v43 }
 0xc12   : > { %v7963_v61 = vadd.f32 %v7962_v37, %v7961_v29  ;;  %v6607_v34 = vadd.f32 %v7988_v10, %v6558_v4 }
 0xc13   : > { %v7964_v30 = vpop.f32.mrf.mxu1 }
 0xc14   : > { %v8887_v58 = vpop.eup %8886  ;;  %v6561_v16 = vadd.f32 %v7963_v61, %v6512_v60 }
 0xc15   : > { %5508 = vst.msk [vmem:[%s11018_s25 + $0x8] sm:$0xff] %vm1040_vm1, %v8887_v58  ;;  %v7965_v25 = vpop.f32.mrf.mxu1 }
 0xc16   : > { %v7966_v17 = vadd.f32 %v7965_v25, %v7964_v30  ;;  %v6610_v53 = vadd.f32 %v7991_v23, %v6561_v16 }
 0xc17   : > { %v7967_v42 = vpop.f32.mrf.mxu1 }
 0xc18   : > { %v8889_v26 = vpop.eup %8888  ;;  %v6566_v46 = vadd.f32 %v7966_v17, %v6517_v32 }
 0xc19   : > { %5509 = vst.msk [vmem:[%s11018_s25 + $0x10] sm:$0xff] %vm1040_vm1, %v8889_v26  ;;  %v7968_v47 = vpop.f32.mrf.mxu1 }
 0xc1a   : > { %v7969_v14 = vadd.f32 %v7968_v47, %v7967_v42  ;;  %v6615_v29 = vadd.f32 %v7994_v57, %v6566_v46 }
 0xc1c   : > { %v8891_v9 = vpop.eup %8890  ;;  %v6569_v26 = vadd.f32 %v7969_v14, %v6520_v5 }
 0xc1d   : > { %5510 = vst.msk [vmem:[%s11018_s25 + $0x18] sm:$0xff] %vm1040_vm1, %v8891_v9  ;;  %v7997_v9 = vadd.f32 %v7996_v48, %v7995_v18 }
 0xc1f   : > { %v6618_v47 = vadd.f32 %v7997_v9, %v6569_v26 }
 0xc24   : > { %v8042_v54 = vpop.f32.mrf.mxu0 }
 0xc26   : > { %v8043_v31 = vpop.f32.mrf.mxu0 }
 0xc27   : > { %v8044_v39 = vadd.f32 %v8043_v31, %v8042_v54 }
 0xc28   : > { %v8045_v59 = vpop.f32.mrf.mxu0 }
 0xc2a   : > { %v8046_v8 = vpop.f32.mrf.mxu0 }
 0xc2b   : > { %v8014_v45 = vpop.f32.mrf.mxu1  ;;  %v8047_v7 = vadd.f32 %v8046_v8, %v8045_v59 }
 0xc2c   : > { %v8048_v33 = vpop.f32.mrf.mxu0 }
 0xc2d   : > { %v8015_v21 = vpop.f32.mrf.mxu1 }
 0xc2e   : > { %v8016_v6 = vadd.f32 %v8015_v21, %v8014_v45  ;;  %v8049_v2 = vpop.f32.mrf.mxu0 }
 0xc2f   : > { %v8017_v50 = vpop.f32.mrf.mxu1  ;;  %v8050_v42 = vadd.f32 %v8049_v2, %v8048_v33 }
 0xc30   : > { %v6656_v44 = vadd.f32 %v8016_v6, %v6607_v34  ;;  %v8051_v41 = vpop.f32.mrf.mxu0 }
 0xc31   : > { %v8018_v13 = vpop.f32.mrf.mxu1 }
 0xc32   : > { %v8019_v1 = vadd.f32 %v8018_v13, %v8017_v50  ;;  %v6705_v27 = vadd.f32 %v8044_v39, %v6656_v44  ;;  %v8052_v45 = vpop.f32.mrf.mxu0 }
 0xc33   : > { %v8020_v0 = vpop.f32.mrf.mxu1  ;;  %v8053_v18 = vadd.f32 %v8052_v45, %v8051_v41 }
 0xc34   : > { %v6659_v20 = vadd.f32 %v8019_v1, %v6610_v53 }
 0xc35   : > { %v8021_v56 = vpop.f32.mrf.mxu1 }
 0xc36   : > { %v8022_v11 = vadd.f32 %v8021_v56, %v8020_v0  ;;  %v6708_v37 = vadd.f32 %v8047_v7, %v6659_v20 }
 0xc37   : > { %v8023_v12 = vpop.f32.mrf.mxu1 }
 0xc38   : > { %v6664_v30 = vadd.f32 %v8022_v11, %v6615_v29 }
 0xc39   : > { %v8024_v19 = vpop.f32.mrf.mxu1 }
 0xc3a   : > { %v8025_v38 = vadd.f32 %v8024_v19, %v8023_v12  ;;  %v6713_v54 = vadd.f32 %v8050_v42, %v6664_v30 }
 0xc3c   : > { %v6667_v21 = vadd.f32 %v8025_v38, %v6618_v47 }
 0xc3e   : > { %v6716_v55 = vadd.f32 %v8053_v18, %v6667_v21 }
 0xc4c   : > { %v8070_v36 = vpop.f32.mrf.mxu1 }
 0xc4e   : > { %v8071_v24 = vpop.f32.mrf.mxu1 }
 0xc4f   : > { %v8072_v58 = vadd.f32 %v8071_v24, %v8070_v36 }
 0xc50   : > { %v8073_v28 = vpop.f32.mrf.mxu1 }
 0xc51   : > { %v6754_v35 = vadd.f32 %v8072_v58, %v6705_v27 }
 0xc52   : > { %v8074_v52 = vpop.f32.mrf.mxu1 }
 0xc53   : > { %v7573_v25 = vmul.f32 -1.442695, %v6754_v35  ;;  %v8075_v51 = vadd.f32 %v8074_v52, %v8073_v28 }
 0xc54   : > { %v8076_v62 = vpop.f32.mrf.mxu1 }
 0xc55   : > { %8892 = vpow2.f32 %v7573_v25  ;;  %v6757_v43 = vadd.f32 %v8075_v51, %v6708_v37 }
 0xc56   : > { %v8077_v3 = vpop.f32.mrf.mxu1 }
 0xc57   : > { %v7574_v50 = vmul.f32 -1.442695, %v6757_v43  ;;  %v8078_v13 = vadd.f32 %v8077_v3, %v8076_v62 }
 0xc58   : > { %v8079_v31 = vpop.f32.mrf.mxu1 }
 0xc59   : > { %8894 = vpow2.f32 %v7574_v50  ;;  %v6762_v48 = vadd.f32 %v8078_v13, %v6713_v54 }
 0xc5a   : > { %v8080_v0 = vpop.f32.mrf.mxu1 }
 0xc5b   : > { %v7575_v40 = vmul.f32 -1.442695, %v6762_v48  ;;  %v8081_v49 = vadd.f32 %v8080_v0, %v8079_v31 }
 0xc5d   : > { %8896 = vpow2.f32 %v7575_v40  ;;  %v6765_v59 = vadd.f32 %v8081_v49, %v6716_v55 }
 0xc5f   : > { %v7576_v56 = vmul.f32 -1.442695, %v6765_v59 }
 0xc61   : > { %8898 = vpow2.f32 %v7576_v56 }
 0xc62   : > { %v8893_v63 = vpop.eup %8892 }
 0xc63   : > { %v6780_v61 = vadd.f32 1.0, %v8893_v63 }
 0xc65   : > { %8900 = vrcp.f32 %v6780_v61 }
 0xc66   : > { %v8895_v4 = vpop.eup %8894 }
 0xc67   : > { %v6781_v60 = vadd.f32 1.0, %v8895_v4 }
 0xc69   : > { %8902 = vrcp.f32 %v6781_v60 }
 0xc6a   : > { %v8897_v8 = vpop.eup %8896 }
 0xc6b   : > { %v6782_v12 = vadd.f32 1.0, %v8897_v8 }
 0xc6d   : > { %8904 = vrcp.f32 %v6782_v12 }
 0xc6e   : > { %v8899_v15 = vpop.eup %8898 }
 0xc6f   : > { %v6783_v10 = vadd.f32 1.0, %v8899_v15 }
 0xc71   : > { %8906 = vrcp.f32 %v6783_v10 }
 0xc72   : > { %v8901_v6 = vpop.eup %8900 }
 0xc73   : > { %6792 = vst.msk [vmem:[%s11018_s25 + $0x20] sm:$0xff] %vm1040_vm1, %v8901_v6 }
 0xc76   : > { %v8903_v16 = vpop.eup %8902 }
 0xc77   : > { %6793 = vst.msk [vmem:[%s11018_s25 + $0x28] sm:$0xff] %vm1040_vm1, %v8903_v16 }
 0xc7a   : > { %v8905_v17 = vpop.eup %8904 }
 0xc7b   : > { %6794 = vst.msk [vmem:[%s11018_s25 + $0x30] sm:$0xff] %vm1040_vm1, %v8905_v17 }
 0xc7e   : > { %v8907_v34 = vpop.eup %8906 }
 0xc7f   : > { %6795 = vst.msk [vmem:[%s11018_s25 + $0x38] sm:$0xff] %vm1040_vm1, %v8907_v34 }
 0xc80   : > { %9149 = shalt.err (!%p9146_p4)
}
 0xc81   : > { %s9150_s23 = scalar_lea.hbm %s11043_s21, 1024  ;;  %s9154_s26 = scalar_lea.hbm %s11164_s2, 2048 }
 0xc82   : > { %p9151_p12 = scmp.ne.s32.totalorder %s11043_s21, %s9150_s23  ;;  %p9155_p11 = scmp.lt.s32.totalorder %s11043_s21, %s11164_s2 }
 0xc83   : > { %p9156_p9 = scmp.lt.s32.totalorder %s9154_s26, %s9150_s23 }
 0xc84   : > { %p9152_p7 = pnand %p9151_p12, %p11165_p5 }
 0xc85   : > { %p9157_p0 = por %p9156_p9, %p9155_p11 }
 0xc86   : > { %p9153_p8 = pneg %p9152_p7 }
 0xc88   : > { %p9158_p1 = pnand %p9157_p0, %p9153_p8 }
 0xc8a   : > { %9161 = shalt.err (!%p9158_p1)
}
 0xc8b   : > { %s9234_s1 = smov 128   ;;  %s9235_s24 = smov 8  }
 0xc8c   : > { %8172 = dma.vmem_to_hbm [thread:$0]  (%p11165_p5), %s11045_s5, 1024, %s11043_s21, %s11051_s29, %s9234_s1, %s9234_s1, %s9235_s24  }
 0xc8d PF: > { %s11166_s28 = sld [smem:[#allocation29_spill]] }
 0xc8e   : > { %s11167_s0 = sld [smem:[#allocation27_spill]] }
 0xc8f   : > { %s11168_s25 = sld [smem:[#allocation32_spill]] }
 0xc93   : > { %p8219_p6 = scmp.ge.s32.totalorder %s11166_s28, 2 }
 0xc94   : > { %s6825_s27 = sand.u32 1, %s11167_s0  }
 0xc95   : > { %p11169_p10 = scmp.ne.s32.totalorder %s11168_s25, 0  ;;  %s6826_s23 = scalar_lea.sflag [#allocation8], %s6825_s27 }
 0xc97   : > { %p8200_p13 = pnand %p8219_p6, %p11169_p10 }
 0xc99   : > { %p8201_p3 = pneg %p8200_p13 }
 0xc9b   : > { %9199 = dma.done.wait (%p8201_p3), %s6826_s23, 1024  }
 0xc9c   : > { %9201 = vsyncadd (%p8201_p3), %s6826_s23, 4294966272  ;;  %s11170_s21 = sld [smem:[#allocation30_spill]]  ;;  %s11173_s0 = smov %s9208_s30 }
 0xc9d   : > { %s11171_s26 = sld [smem:[#allocation28_spill]] }
 0xc9e   : > { %s11172_s20 = sld [smem:[#allocation31_spill]] }
 0xca2   : > { %p34_p2 = scmp.ge.s32.totalorder %s11170_s21, 4  }
 0xca3   : > { %s11174_s30 = smov %s11171_s26 }
 0xca4   :  { %36 = sbr.rel (!%p34_p2) target bundleno = 15 (0xf), region = 164 }
 0xca9   :  { %6831 = vsyncpa [#allocation7], 1 }
 0xcaa   :  { %6833 = vsyncpa [#allocation7 + $0x1], 1 }
 0xcab   :  { %6834 = vsyncpa [#allocation10], 1 }
 0xcac   :  { %6835 = vsyncpa [#allocation13], 1 }
 0xcad   :  { %6836 = vsyncpa [#allocation16], 1 }
 0xcae   :  { %6837 = vsyncpa [#allocation19], 1 }
 0xcaf   :  { %6838 = vsyncpa [#allocation8], 1 }
 0xcb0   :  { %6840 = vsyncpa [#allocation8 + $0x1], 1 }

</bundles_post_ra>
